<compile_context>
chip_gen: v5e
topology: v5e:2x2
jax: 0.10.0
libtpu: 0.0.40
codegen_flags: <defaults>
</compile_context>

<pallas_src>
import jax
import jax.numpy as jnp
from jax import lax
from jax.experimental import pallas as pl
from jax.experimental.pallas import tpu as pltpu

KSIZE = 7
PAD = 3  # padding = 3 for kernel_size 7 (as in the PyTorch module)


def _make_kernel(H, W):
    """Build the kernel for a fixed spatial size (H, W)."""
    HW = H * W
    KK = KSIZE * KSIZE

    def kernel(w_ref, row_ref, col_ref, x_ref, o_ref):
        # w_ref   : SMEM (2*7*7,) f32 flattened conv weight (OIHW order)
        # row_ref : VMEM (1, HW) int32, row index of each flattened position
        # col_ref : VMEM (1, HW) int32, col index of each flattened position
        # x_ref   : VMEM (NB, C, HW)
        # o_ref   : VMEM (NB, C, HW)
        NB, C, _ = x_ref.shape

        # ---- channel-wise mean / max, streamed one lane-dense slab at a time ----
        x0 = x_ref[:, 0, :].astype(jnp.float32)            # (NB, HW)
        csum = x0
        cmax = x0
        for c in range(1, C):
            xc = x_ref[:, c, :].astype(jnp.float32)
            csum = csum + xc
            cmax = jnp.maximum(cmax, xc)
        avg = csum / jnp.float32(C)                        # (NB, HW)

        # ---- boundary-validity masks for the "same" padding (no scratch pad) ----
        rowv = row_ref[...]                                # (1, HW) = p // W
        colv = col_ref[...]                                # (1, HW) = p %  W
        col_ok = {d: (colv + d >= 0) & (colv + d < W) for d in range(-PAD, PAD + 1)}
        row_ok = {d: (rowv + d >= 0) & (rowv + d < H) for d in range(-PAD, PAD + 1)}

        # ---- 7x7 conv (2 -> 1 channels) as static lane rolls of the flat maps ----
        # For offset (dh, dw): neighbor value at flat position p is map[p + dh*W + dw]
        # when (row+dh, col+dw) is in bounds, else 0 (zero padding).  A circular
        # roll gives exactly that value wherever the mask is true.
        acc = jnp.zeros((NB, HW), jnp.float32)
        for kh in range(KSIZE):
            dh = kh - PAD
            for kw in range(KSIZE):
                dw = kw - PAD
                shift = (-(dh * W + dw)) % HW              # non-negative static shift
                a_sh = avg if shift == 0 else pltpu.roll(avg, shift, 1)
                m_sh = cmax if shift == 0 else pltpu.roll(cmax, shift, 1)
                valid = row_ok[dh] & col_ok[dw]            # (1, HW), bcast over rows
                term = (w_ref[kh * KSIZE + kw] * a_sh
                        + w_ref[KK + kh * KSIZE + kw] * m_sh)
                acc = acc + jnp.where(valid, term, 0.0)

        attn = jax.nn.sigmoid(acc)                         # (NB, HW), EUP exp + VPU

        # ---- out = x * sigmoid(conv): one lane-dense channel slab per store ----
        for c in range(C):
            xc = x_ref[:, c, :].astype(jnp.float32)
            o_ref[:, c, :] = (xc * attn).astype(o_ref.dtype)

    return kernel


def spatial_attention(x, conv_w, *, target_block_bytes=2 * 1024 * 1024):
    """x: (N, C, H, W); conv_w: (1, 2, 7, 7) (Conv2d(2, 1, 7, padding=3, bias=False))."""
    N, C, H, W = x.shape
    HW = H * W
    assert H >= 4 and W >= 4, "spatial size too small for the flattened 7x7 conv"

    x2 = x.reshape(N, C, HW)                               # lane-dense view (free for NCHW)
    w_flat = conv_w.reshape(-1).astype(jnp.float32)        # (98,)

    # Precomputed (row, col) of every flattened spatial position (avoids in-kernel div/mod).
    pos = jnp.arange(HW, dtype=jnp.int32)
    row_idx = (pos // W).reshape(1, HW)
    col_idx = (pos % W).reshape(1, HW)

    # Fold several batch samples into one block (~target_block_bytes) so the
    # per-grid-step overhead amortizes; the toy shape becomes a single block.
    bytes_per_sample = C * HW * x.dtype.itemsize
    nb = max(1, min(N, target_block_bytes // max(1, bytes_per_sample)))
    while N % nb:                                          # keep blocks evenly sized
        nb -= 1
    grid = (N // nb,)

    out = pl.pallas_call(
        _make_kernel(H, W),
        out_shape=jax.ShapeDtypeStruct((N, C, HW), x.dtype),
        grid_spec=pltpu.PrefetchScalarGridSpec(
            num_scalar_prefetch=0,
            grid=grid,
            in_specs=[
                pl.BlockSpec(memory_space=pltpu.MemorySpace.SMEM),   # conv weights
                pl.BlockSpec((1, HW), lambda n: (0, 0)),             # row index
                pl.BlockSpec((1, HW), lambda n: (0, 0)),             # col index
                pl.BlockSpec((nb, C, HW), lambda n: (n, 0, 0)),      # x block
            ],
            out_specs=pl.BlockSpec((nb, C, HW), lambda n: (n, 0, 0)),
        ),
        compiler_params=pltpu.CompilerParams(
            dimension_semantics=("parallel",),     # independent blocks -> both v7x TCs
            vmem_limit_bytes=32 * 1024 * 1024,     # safe on v5e/v6e/v7x; >> block footprint
        ),
    )(w_flat, row_idx, col_idx, x2)
    return out.reshape(N, C, H, W)


if __name__ == "__main__":
    key = jax.random.PRNGKey(0)
    kx, kw = jax.random.split(key)

    # Small shapes consistent with the module: batch=2, channels=4, spatial=16x16.
    x = jax.random.normal(kx, (2, 4, 16, 16), dtype=jnp.float32)
    # Deterministic synthetic conv weight (shape from nn.Conv2d(2, 1, 7, bias=False)).
    conv_w = jax.random.normal(kw, (1, 2, 7, 7), dtype=jnp.float32) * 0.1

    out = spatial_attention(x, conv_w)
    out = jax.block_until_ready(out)

    # Pure-JAX reference (same math) to validate the kernel.
    avg = jnp.mean(x, axis=1, keepdims=True)
    mx = jnp.max(x, axis=1, keepdims=True)
    cat = jnp.concatenate([avg, mx], axis=1)
    conv = lax.conv_general_dilated(
        cat, conv_w, window_strides=(1, 1),
        padding=[(PAD, PAD), (PAD, PAD)],
        dimension_numbers=("NCHW", "OIHW", "NCHW"))
    ref = x * jax.nn.sigmoid(conv)

    assert jnp.allclose(out, ref, rtol=1e-4, atol=1e-4), "mismatch vs JAX reference"
    print("KERNEL_OK")
</pallas_src>

<mosaic_0001>
module attributes {stable_mosaic.version = 11 : i64} {
  func.func @kernel(%arg0: i32, %arg1: memref<98xf32, #tpu.memory_space<smem>>, %arg2: memref<1x256xi32, #tpu.memory_space<vmem>>, %arg3: memref<1x256xi32, #tpu.memory_space<vmem>>, %arg4: memref<2x4x256xf32, #tpu.memory_space<vmem>>, %arg5: memref<2x4x256xf32, #tpu.memory_space<vmem>>) attributes {dimension_semantics = [#tpu.dimension_semantics<parallel>], iteration_bounds = array<i64: 1>, scalar_prefetch = 0 : i64, scratch_operands = 0 : i64, tpu.core_type = #tpu.core_type<tc>, window_params = [{transform_indices = @transform_0, window_bounds = array<i64: 98>}, {pipeline_mode = #tpu.pipeline_mode<synchronous>, transform_indices = @transform_1, window_bounds = array<i64: 1, 256>}, {pipeline_mode = #tpu.pipeline_mode<synchronous>, transform_indices = @transform_2, window_bounds = array<i64: 1, 256>}, {transform_indices = @transform_3, window_bounds = array<i64: 2, 4, 256>}, {transform_indices = @transform_4, window_bounds = array<i64: 2, 4, 256>}]} {
    %c0 = arith.constant 0 : index
    %c0_0 = arith.constant 0 : index
    %c0_1 = arith.constant 0 : index
    %0 = vector.load %arg4[%c0, %c0_0, %c0_1] : memref<2x4x256xf32, #tpu.memory_space<vmem>>, vector<2x1x256xf32>
    %1 = vector.shape_cast %0 : vector<2x1x256xf32> to vector<2x256xf32>
    %c0_2 = arith.constant 0 : index
    %c1 = arith.constant 1 : index
    %c0_3 = arith.constant 0 : index
    %2 = vector.load %arg4[%c0_2, %c1, %c0_3] : memref<2x4x256xf32, #tpu.memory_space<vmem>>, vector<2x1x256xf32>
    %3 = vector.shape_cast %2 : vector<2x1x256xf32> to vector<2x256xf32>
    %4 = arith.addf %1, %3 : vector<2x256xf32>
    %5 = arith.maximumf %1, %3 : vector<2x256xf32>
    %c0_4 = arith.constant 0 : index
    %c2 = arith.constant 2 : index
    %c0_5 = arith.constant 0 : index
    %6 = vector.load %arg4[%c0_4, %c2, %c0_5] : memref<2x4x256xf32, #tpu.memory_space<vmem>>, vector<2x1x256xf32>
    %7 = vector.shape_cast %6 : vector<2x1x256xf32> to vector<2x256xf32>
    %8 = arith.addf %4, %7 : vector<2x256xf32>
    %9 = arith.maximumf %5, %7 : vector<2x256xf32>
    %c0_6 = arith.constant 0 : index
    %c3 = arith.constant 3 : index
    %c0_7 = arith.constant 0 : index
    %10 = vector.load %arg4[%c0_6, %c3, %c0_7] : memref<2x4x256xf32, #tpu.memory_space<vmem>>, vector<2x1x256xf32>
    %11 = vector.shape_cast %10 : vector<2x1x256xf32> to vector<2x256xf32>
    %12 = arith.addf %8, %11 : vector<2x256xf32>
    %13 = arith.maximumf %9, %11 : vector<2x256xf32>
    %cst = arith.constant 4.000000e+00 : f32
    %14 = vector.broadcast %cst : f32 to vector<2x256xf32>
    %15 = arith.divf %12, %14 : vector<2x256xf32>
    %c0_8 = arith.constant 0 : index
    %c0_9 = arith.constant 0 : index
    %16 = vector.load %arg2[%c0_8, %c0_9] : memref<1x256xi32, #tpu.memory_space<vmem>>, vector<1x256xi32>
    %c0_10 = arith.constant 0 : index
    %c0_11 = arith.constant 0 : index
    %17 = vector.load %arg3[%c0_10, %c0_11] : memref<1x256xi32, #tpu.memory_space<vmem>>, vector<1x256xi32>
    %c-3_i32 = arith.constant -3 : i32
    %18 = vector.broadcast %c-3_i32 : i32 to vector<1x256xi32>
    %19 = arith.addi %17, %18 : vector<1x256xi32>
    %c0_i32 = arith.constant 0 : i32
    %20 = vector.broadcast %c0_i32 : i32 to vector<1x256xi32>
    %21 = arith.cmpi sge, %19, %20 : vector<1x256xi32>
    %c-3_i32_12 = arith.constant -3 : i32
    %22 = vector.broadcast %c-3_i32_12 : i32 to vector<1x256xi32>
    %23 = arith.addi %17, %22 : vector<1x256xi32>
    %c16_i32 = arith.constant 16 : i32
    %24 = vector.broadcast %c16_i32 : i32 to vector<1x256xi32>
    %25 = arith.cmpi slt, %23, %24 : vector<1x256xi32>
    %26 = arith.andi %21, %25 : vector<1x256xi1>
    %c-2_i32 = arith.constant -2 : i32
    %27 = vector.broadcast %c-2_i32 : i32 to vector<1x256xi32>
    %28 = arith.addi %17, %27 : vector<1x256xi32>
    %c0_i32_13 = arith.constant 0 : i32
    %29 = vector.broadcast %c0_i32_13 : i32 to vector<1x256xi32>
    %30 = arith.cmpi sge, %28, %29 : vector<1x256xi32>
    %c-2_i32_14 = arith.constant -2 : i32
    %31 = vector.broadcast %c-2_i32_14 : i32 to vector<1x256xi32>
    %32 = arith.addi %17, %31 : vector<1x256xi32>
    %c16_i32_15 = arith.constant 16 : i32
    %33 = vector.broadcast %c16_i32_15 : i32 to vector<1x256xi32>
    %34 = arith.cmpi slt, %32, %33 : vector<1x256xi32>
    %35 = arith.andi %30, %34 : vector<1x256xi1>
    %c-1_i32 = arith.constant -1 : i32
    %36 = vector.broadcast %c-1_i32 : i32 to vector<1x256xi32>
    %37 = arith.addi %17, %36 : vector<1x256xi32>
    %c0_i32_16 = arith.constant 0 : i32
    %38 = vector.broadcast %c0_i32_16 : i32 to vector<1x256xi32>
    %39 = arith.cmpi sge, %37, %38 : vector<1x256xi32>
    %c-1_i32_17 = arith.constant -1 : i32
    %40 = vector.broadcast %c-1_i32_17 : i32 to vector<1x256xi32>
    %41 = arith.addi %17, %40 : vector<1x256xi32>
    %c16_i32_18 = arith.constant 16 : i32
    %42 = vector.broadcast %c16_i32_18 : i32 to vector<1x256xi32>
    %43 = arith.cmpi slt, %41, %42 : vector<1x256xi32>
    %44 = arith.andi %39, %43 : vector<1x256xi1>
    %c0_i32_19 = arith.constant 0 : i32
    %45 = vector.broadcast %c0_i32_19 : i32 to vector<1x256xi32>
    %46 = arith.addi %17, %45 : vector<1x256xi32>
    %c0_i32_20 = arith.constant 0 : i32
    %47 = vector.broadcast %c0_i32_20 : i32 to vector<1x256xi32>
    %48 = arith.cmpi sge, %46, %47 : vector<1x256xi32>
    %c0_i32_21 = arith.constant 0 : i32
    %49 = vector.broadcast %c0_i32_21 : i32 to vector<1x256xi32>
    %50 = arith.addi %17, %49 : vector<1x256xi32>
    %c16_i32_22 = arith.constant 16 : i32
    %51 = vector.broadcast %c16_i32_22 : i32 to vector<1x256xi32>
    %52 = arith.cmpi slt, %50, %51 : vector<1x256xi32>
    %53 = arith.andi %48, %52 : vector<1x256xi1>
    %c1_i32 = arith.constant 1 : i32
    %54 = vector.broadcast %c1_i32 : i32 to vector<1x256xi32>
    %55 = arith.addi %17, %54 : vector<1x256xi32>
    %c0_i32_23 = arith.constant 0 : i32
    %56 = vector.broadcast %c0_i32_23 : i32 to vector<1x256xi32>
    %57 = arith.cmpi sge, %55, %56 : vector<1x256xi32>
    %c1_i32_24 = arith.constant 1 : i32
    %58 = vector.broadcast %c1_i32_24 : i32 to vector<1x256xi32>
    %59 = arith.addi %17, %58 : vector<1x256xi32>
    %c16_i32_25 = arith.constant 16 : i32
    %60 = vector.broadcast %c16_i32_25 : i32 to vector<1x256xi32>
    %61 = arith.cmpi slt, %59, %60 : vector<1x256xi32>
    %62 = arith.andi %57, %61 : vector<1x256xi1>
    %c2_i32 = arith.constant 2 : i32
    %63 = vector.broadcast %c2_i32 : i32 to vector<1x256xi32>
    %64 = arith.addi %17, %63 : vector<1x256xi32>
    %c0_i32_26 = arith.constant 0 : i32
    %65 = vector.broadcast %c0_i32_26 : i32 to vector<1x256xi32>
    %66 = arith.cmpi sge, %64, %65 : vector<1x256xi32>
    %c2_i32_27 = arith.constant 2 : i32
    %67 = vector.broadcast %c2_i32_27 : i32 to vector<1x256xi32>
    %68 = arith.addi %17, %67 : vector<1x256xi32>
    %c16_i32_28 = arith.constant 16 : i32
    %69 = vector.broadcast %c16_i32_28 : i32 to vector<1x256xi32>
    %70 = arith.cmpi slt, %68, %69 : vector<1x256xi32>
    %71 = arith.andi %66, %70 : vector<1x256xi1>
    %c3_i32 = arith.constant 3 : i32
    %72 = vector.broadcast %c3_i32 : i32 to vector<1x256xi32>
    %73 = arith.addi %17, %72 : vector<1x256xi32>
    %c0_i32_29 = arith.constant 0 : i32
    %74 = vector.broadcast %c0_i32_29 : i32 to vector<1x256xi32>
    %75 = arith.cmpi sge, %73, %74 : vector<1x256xi32>
    %c3_i32_30 = arith.constant 3 : i32
    %76 = vector.broadcast %c3_i32_30 : i32 to vector<1x256xi32>
    %77 = arith.addi %17, %76 : vector<1x256xi32>
    %c16_i32_31 = arith.constant 16 : i32
    %78 = vector.broadcast %c16_i32_31 : i32 to vector<1x256xi32>
    %79 = arith.cmpi slt, %77, %78 : vector<1x256xi32>
    %80 = arith.andi %75, %79 : vector<1x256xi1>
    %c-3_i32_32 = arith.constant -3 : i32
    %81 = vector.broadcast %c-3_i32_32 : i32 to vector<1x256xi32>
    %82 = arith.addi %16, %81 : vector<1x256xi32>
    %c0_i32_33 = arith.constant 0 : i32
    %83 = vector.broadcast %c0_i32_33 : i32 to vector<1x256xi32>
    %84 = arith.cmpi sge, %82, %83 : vector<1x256xi32>
    %c-3_i32_34 = arith.constant -3 : i32
    %85 = vector.broadcast %c-3_i32_34 : i32 to vector<1x256xi32>
    %86 = arith.addi %16, %85 : vector<1x256xi32>
    %c16_i32_35 = arith.constant 16 : i32
    %87 = vector.broadcast %c16_i32_35 : i32 to vector<1x256xi32>
    %88 = arith.cmpi slt, %86, %87 : vector<1x256xi32>
    %89 = arith.andi %84, %88 : vector<1x256xi1>
    %c-2_i32_36 = arith.constant -2 : i32
    %90 = vector.broadcast %c-2_i32_36 : i32 to vector<1x256xi32>
    %91 = arith.addi %16, %90 : vector<1x256xi32>
    %c0_i32_37 = arith.constant 0 : i32
    %92 = vector.broadcast %c0_i32_37 : i32 to vector<1x256xi32>
    %93 = arith.cmpi sge, %91, %92 : vector<1x256xi32>
    %c-2_i32_38 = arith.constant -2 : i32
    %94 = vector.broadcast %c-2_i32_38 : i32 to vector<1x256xi32>
    %95 = arith.addi %16, %94 : vector<1x256xi32>
    %c16_i32_39 = arith.constant 16 : i32
    %96 = vector.broadcast %c16_i32_39 : i32 to vector<1x256xi32>
    %97 = arith.cmpi slt, %95, %96 : vector<1x256xi32>
    %98 = arith.andi %93, %97 : vector<1x256xi1>
    %c-1_i32_40 = arith.constant -1 : i32
    %99 = vector.broadcast %c-1_i32_40 : i32 to vector<1x256xi32>
    %100 = arith.addi %16, %99 : vector<1x256xi32>
    %c0_i32_41 = arith.constant 0 : i32
    %101 = vector.broadcast %c0_i32_41 : i32 to vector<1x256xi32>
    %102 = arith.cmpi sge, %100, %101 : vector<1x256xi32>
    %c-1_i32_42 = arith.constant -1 : i32
    %103 = vector.broadcast %c-1_i32_42 : i32 to vector<1x256xi32>
    %104 = arith.addi %16, %103 : vector<1x256xi32>
    %c16_i32_43 = arith.constant 16 : i32
    %105 = vector.broadcast %c16_i32_43 : i32 to vector<1x256xi32>
    %106 = arith.cmpi slt, %104, %105 : vector<1x256xi32>
    %107 = arith.andi %102, %106 : vector<1x256xi1>
    %c0_i32_44 = arith.constant 0 : i32
    %108 = vector.broadcast %c0_i32_44 : i32 to vector<1x256xi32>
    %109 = arith.addi %16, %108 : vector<1x256xi32>
    %c0_i32_45 = arith.constant 0 : i32
    %110 = vector.broadcast %c0_i32_45 : i32 to vector<1x256xi32>
    %111 = arith.cmpi sge, %109, %110 : vector<1x256xi32>
    %c0_i32_46 = arith.constant 0 : i32
    %112 = vector.broadcast %c0_i32_46 : i32 to vector<1x256xi32>
    %113 = arith.addi %16, %112 : vector<1x256xi32>
    %c16_i32_47 = arith.constant 16 : i32
    %114 = vector.broadcast %c16_i32_47 : i32 to vector<1x256xi32>
    %115 = arith.cmpi slt, %113, %114 : vector<1x256xi32>
    %116 = arith.andi %111, %115 : vector<1x256xi1>
    %c1_i32_48 = arith.constant 1 : i32
    %117 = vector.broadcast %c1_i32_48 : i32 to vector<1x256xi32>
    %118 = arith.addi %16, %117 : vector<1x256xi32>
    %c0_i32_49 = arith.constant 0 : i32
    %119 = vector.broadcast %c0_i32_49 : i32 to vector<1x256xi32>
    %120 = arith.cmpi sge, %118, %119 : vector<1x256xi32>
    %c1_i32_50 = arith.constant 1 : i32
    %121 = vector.broadcast %c1_i32_50 : i32 to vector<1x256xi32>
    %122 = arith.addi %16, %121 : vector<1x256xi32>
    %c16_i32_51 = arith.constant 16 : i32
    %123 = vector.broadcast %c16_i32_51 : i32 to vector<1x256xi32>
    %124 = arith.cmpi slt, %122, %123 : vector<1x256xi32>
    %125 = arith.andi %120, %124 : vector<1x256xi1>
    %c2_i32_52 = arith.constant 2 : i32
    %126 = vector.broadcast %c2_i32_52 : i32 to vector<1x256xi32>
    %127 = arith.addi %16, %126 : vector<1x256xi32>
    %c0_i32_53 = arith.constant 0 : i32
    %128 = vector.broadcast %c0_i32_53 : i32 to vector<1x256xi32>
    %129 = arith.cmpi sge, %127, %128 : vector<1x256xi32>
    %c2_i32_54 = arith.constant 2 : i32
    %130 = vector.broadcast %c2_i32_54 : i32 to vector<1x256xi32>
    %131 = arith.addi %16, %130 : vector<1x256xi32>
    %c16_i32_55 = arith.constant 16 : i32
    %132 = vector.broadcast %c16_i32_55 : i32 to vector<1x256xi32>
    %133 = arith.cmpi slt, %131, %132 : vector<1x256xi32>
    %134 = arith.andi %129, %133 : vector<1x256xi1>
    %c3_i32_56 = arith.constant 3 : i32
    %135 = vector.broadcast %c3_i32_56 : i32 to vector<1x256xi32>
    %136 = arith.addi %16, %135 : vector<1x256xi32>
    %c0_i32_57 = arith.constant 0 : i32
    %137 = vector.broadcast %c0_i32_57 : i32 to vector<1x256xi32>
    %138 = arith.cmpi sge, %136, %137 : vector<1x256xi32>
    %c3_i32_58 = arith.constant 3 : i32
    %139 = vector.broadcast %c3_i32_58 : i32 to vector<1x256xi32>
    %140 = arith.addi %16, %139 : vector<1x256xi32>
    %c16_i32_59 = arith.constant 16 : i32
    %141 = vector.broadcast %c16_i32_59 : i32 to vector<1x256xi32>
    %142 = arith.cmpi slt, %140, %141 : vector<1x256xi32>
    %143 = arith.andi %138, %142 : vector<1x256xi1>
    %cst_60 = arith.constant 0.000000e+00 : f32
    %144 = vector.broadcast %cst_60 : f32 to vector<2x256xf32>
    %c51_i32 = arith.constant 51 : i32
    %145 = tpu.dynamic_rotate %15 by %c51_i32 dim 1 : vector<2x256xf32>, i32 -> vector<2x256xf32>
    %c51_i32_61 = arith.constant 51 : i32
    %146 = tpu.dynamic_rotate %13 by %c51_i32_61 dim 1 : vector<2x256xf32>, i32 -> vector<2x256xf32>
    %147 = arith.andi %89, %26 : vector<1x256xi1>
    %c0_62 = arith.constant 0 : index
    %148 = memref.load %arg1[%c0_62] : memref<98xf32, #tpu.memory_space<smem>>
    %149 = vector.broadcast %148 : f32 to vector<2x256xf32>
    %150 = arith.mulf %149, %145 : vector<2x256xf32>
    %c49 = arith.constant 49 : index
    %151 = memref.load %arg1[%c49] : memref<98xf32, #tpu.memory_space<smem>>
    %152 = vector.broadcast %151 : f32 to vector<2x256xf32>
    %153 = arith.mulf %152, %146 : vector<2x256xf32>
    %154 = arith.addf %150, %153 : vector<2x256xf32>
    %cst_63 = arith.constant 0.000000e+00 : f32
    %155 = vector.shape_cast %147 : vector<1x256xi1> to vector<1x256xi1>
    %156 = vector.broadcast %155 : vector<1x256xi1> to vector<2x256xi1>
    %157 = vector.broadcast %cst_63 : f32 to vector<2x256xf32>
    %158 = arith.select %156, %154, %157 : vector<2x256xi1>, vector<2x256xf32>
    %159 = arith.addf %144, %158 : vector<2x256xf32>
    %c50_i32 = arith.constant 50 : i32
    %160 = tpu.dynamic_rotate %15 by %c50_i32 dim 1 : vector<2x256xf32>, i32 -> vector<2x256xf32>
    %c50_i32_64 = arith.constant 50 : i32
    %161 = tpu.dynamic_rotate %13 by %c50_i32_64 dim 1 : vector<2x256xf32>, i32 -> vector<2x256xf32>
    %162 = arith.andi %89, %35 : vector<1x256xi1>
    %c1_65 = arith.constant 1 : index
    %163 = memref.load %arg1[%c1_65] : memref<98xf32, #tpu.memory_space<smem>>
    %164 = vector.broadcast %163 : f32 to vector<2x256xf32>
    %165 = arith.mulf %164, %160 : vector<2x256xf32>
    %c50 = arith.constant 50 : index
    %166 = memref.load %arg1[%c50] : memref<98xf32, #tpu.memory_space<smem>>
    %167 = vector.broadcast %166 : f32 to vector<2x256xf32>
    %168 = arith.mulf %167, %161 : vector<2x256xf32>
    %169 = arith.addf %165, %168 : vector<2x256xf32>
    %cst_66 = arith.constant 0.000000e+00 : f32
    %170 = vector.shape_cast %162 : vector<1x256xi1> to vector<1x256xi1>
    %171 = vector.broadcast %170 : vector<1x256xi1> to vector<2x256xi1>
    %172 = vector.broadcast %cst_66 : f32 to vector<2x256xf32>
    %173 = arith.select %171, %169, %172 : vector<2x256xi1>, vector<2x256xf32>
    %174 = arith.addf %159, %173 : vector<2x256xf32>
    %c49_i32 = arith.constant 49 : i32
    %175 = tpu.dynamic_rotate %15 by %c49_i32 dim 1 : vector<2x256xf32>, i32 -> vector<2x256xf32>
    %c49_i32_67 = arith.constant 49 : i32
    %176 = tpu.dynamic_rotate %13 by %c49_i32_67 dim 1 : vector<2x256xf32>, i32 -> vector<2x256xf32>
    %177 = arith.andi %89, %44 : vector<1x256xi1>
    %c2_68 = arith.constant 2 : index
    %178 = memref.load %arg1[%c2_68] : memref<98xf32, #tpu.memory_space<smem>>
    %179 = vector.broadcast %178 : f32 to vector<2x256xf32>
    %180 = arith.mulf %179, %175 : vector<2x256xf32>
    %c51 = arith.constant 51 : index
    %181 = memref.load %arg1[%c51] : memref<98xf32, #tpu.memory_space<smem>>
    %182 = vector.broadcast %181 : f32 to vector<2x256xf32>
    %183 = arith.mulf %182, %176 : vector<2x256xf32>
    %184 = arith.addf %180, %183 : vector<2x256xf32>
    %cst_69 = arith.constant 0.000000e+00 : f32
    %185 = vector.shape_cast %177 : vector<1x256xi1> to vector<1x256xi1>
    %186 = vector.broadcast %185 : vector<1x256xi1> to vector<2x256xi1>
    %187 = vector.broadcast %cst_69 : f32 to vector<2x256xf32>
    %188 = arith.select %186, %184, %187 : vector<2x256xi1>, vector<2x256xf32>
    %189 = arith.addf %174, %188 : vector<2x256xf32>
    %c48_i32 = arith.constant 48 : i32
    %190 = tpu.dynamic_rotate %15 by %c48_i32 dim 1 : vector<2x256xf32>, i32 -> vector<2x256xf32>
    %c48_i32_70 = arith.constant 48 : i32
    %191 = tpu.dynamic_rotate %13 by %c48_i32_70 dim 1 : vector<2x256xf32>, i32 -> vector<2x256xf32>
    %192 = arith.andi %89, %53 : vector<1x256xi1>
    %c3_71 = arith.constant 3 : index
    %193 = memref.load %arg1[%c3_71] : memref<98xf32, #tpu.memory_space<smem>>
    %194 = vector.broadcast %193 : f32 to vector<2x256xf32>
    %195 = arith.mulf %194, %190 : vector<2x256xf32>
    %c52 = arith.constant 52 : index
    %196 = memref.load %arg1[%c52] : memref<98xf32, #tpu.memory_space<smem>>
    %197 = vector.broadcast %196 : f32 to vector<2x256xf32>
    %198 = arith.mulf %197, %191 : vector<2x256xf32>
    %199 = arith.addf %195, %198 : vector<2x256xf32>
    %cst_72 = arith.constant 0.000000e+00 : f32
    %200 = vector.shape_cast %192 : vector<1x256xi1> to vector<1x256xi1>
    %201 = vector.broadcast %200 : vector<1x256xi1> to vector<2x256xi1>
    %202 = vector.broadcast %cst_72 : f32 to vector<2x256xf32>
    %203 = arith.select %201, %199, %202 : vector<2x256xi1>, vector<2x256xf32>
    %204 = arith.addf %189, %203 : vector<2x256xf32>
    %c47_i32 = arith.constant 47 : i32
    %205 = tpu.dynamic_rotate %15 by %c47_i32 dim 1 : vector<2x256xf32>, i32 -> vector<2x256xf32>
    %c47_i32_73 = arith.constant 47 : i32
    %206 = tpu.dynamic_rotate %13 by %c47_i32_73 dim 1 : vector<2x256xf32>, i32 -> vector<2x256xf32>
    %207 = arith.andi %89, %62 : vector<1x256xi1>
    %c4 = arith.constant 4 : index
    %208 = memref.load %arg1[%c4] : memref<98xf32, #tpu.memory_space<smem>>
    %209 = vector.broadcast %208 : f32 to vector<2x256xf32>
    %210 = arith.mulf %209, %205 : vector<2x256xf32>
    %c53 = arith.constant 53 : index
    %211 = memref.load %arg1[%c53] : memref<98xf32, #tpu.memory_space<smem>>
    %212 = vector.broadcast %211 : f32 to vector<2x256xf32>
    %213 = arith.mulf %212, %206 : vector<2x256xf32>
    %214 = arith.addf %210, %213 : vector<2x256xf32>
    %cst_74 = arith.constant 0.000000e+00 : f32
    %215 = vector.shape_cast %207 : vector<1x256xi1> to vector<1x256xi1>
    %216 = vector.broadcast %215 : vector<1x256xi1> to vector<2x256xi1>
    %217 = vector.broadcast %cst_74 : f32 to vector<2x256xf32>
    %218 = arith.select %216, %214, %217 : vector<2x256xi1>, vector<2x256xf32>
    %219 = arith.addf %204, %218 : vector<2x256xf32>
    %c46_i32 = arith.constant 46 : i32
    %220 = tpu.dynamic_rotate %15 by %c46_i32 dim 1 : vector<2x256xf32>, i32 -> vector<2x256xf32>
    %c46_i32_75 = arith.constant 46 : i32
    %221 = tpu.dynamic_rotate %13 by %c46_i32_75 dim 1 : vector<2x256xf32>, i32 -> vector<2x256xf32>
    %222 = arith.andi %89, %71 : vector<1x256xi1>
    %c5 = arith.constant 5 : index
    %223 = memref.load %arg1[%c5] : memref<98xf32, #tpu.memory_space<smem>>
    %224 = vector.broadcast %223 : f32 to vector<2x256xf32>
    %225 = arith.mulf %224, %220 : vector<2x256xf32>
    %c54 = arith.constant 54 : index
    %226 = memref.load %arg1[%c54] : memref<98xf32, #tpu.memory_space<smem>>
    %227 = vector.broadcast %226 : f32 to vector<2x256xf32>
    %228 = arith.mulf %227, %221 : vector<2x256xf32>
    %229 = arith.addf %225, %228 : vector<2x256xf32>
    %cst_76 = arith.constant 0.000000e+00 : f32
    %230 = vector.shape_cast %222 : vector<1x256xi1> to vector<1x256xi1>
    %231 = vector.broadcast %230 : vector<1x256xi1> to vector<2x256xi1>
    %232 = vector.broadcast %cst_76 : f32 to vector<2x256xf32>
    %233 = arith.select %231, %229, %232 : vector<2x256xi1>, vector<2x256xf32>
    %234 = arith.addf %219, %233 : vector<2x256xf32>
    %c45_i32 = arith.constant 45 : i32
    %235 = tpu.dynamic_rotate %15 by %c45_i32 dim 1 : vector<2x256xf32>, i32 -> vector<2x256xf32>
    %c45_i32_77 = arith.constant 45 : i32
    %236 = tpu.dynamic_rotate %13 by %c45_i32_77 dim 1 : vector<2x256xf32>, i32 -> vector<2x256xf32>
    %237 = arith.andi %89, %80 : vector<1x256xi1>
    %c6 = arith.constant 6 : index
    %238 = memref.load %arg1[%c6] : memref<98xf32, #tpu.memory_space<smem>>
    %239 = vector.broadcast %238 : f32 to vector<2x256xf32>
    %240 = arith.mulf %239, %235 : vector<2x256xf32>
    %c55 = arith.constant 55 : index
    %241 = memref.load %arg1[%c55] : memref<98xf32, #tpu.memory_space<smem>>
    %242 = vector.broadcast %241 : f32 to vector<2x256xf32>
    %243 = arith.mulf %242, %236 : vector<2x256xf32>
    %244 = arith.addf %240, %243 : vector<2x256xf32>
    %cst_78 = arith.constant 0.000000e+00 : f32
    %245 = vector.shape_cast %237 : vector<1x256xi1> to vector<1x256xi1>
    %246 = vector.broadcast %245 : vector<1x256xi1> to vector<2x256xi1>
    %247 = vector.broadcast %cst_78 : f32 to vector<2x256xf32>
    %248 = arith.select %246, %244, %247 : vector<2x256xi1>, vector<2x256xf32>
    %249 = arith.addf %234, %248 : vector<2x256xf32>
    %c35_i32 = arith.constant 35 : i32
    %250 = tpu.dynamic_rotate %15 by %c35_i32 dim 1 : vector<2x256xf32>, i32 -> vector<2x256xf32>
    %c35_i32_79 = arith.constant 35 : i32
    %251 = tpu.dynamic_rotate %13 by %c35_i32_79 dim 1 : vector<2x256xf32>, i32 -> vector<2x256xf32>
    %252 = arith.andi %98, %26 : vector<1x256xi1>
    %c7 = arith.constant 7 : index
    %253 = memref.load %arg1[%c7] : memref<98xf32, #tpu.memory_space<smem>>
    %254 = vector.broadcast %253 : f32 to vector<2x256xf32>
    %255 = arith.mulf %254, %250 : vector<2x256xf32>
    %c56 = arith.constant 56 : index
    %256 = memref.load %arg1[%c56] : memref<98xf32, #tpu.memory_space<smem>>
    %257 = vector.broadcast %256 : f32 to vector<2x256xf32>
    %258 = arith.mulf %257, %251 : vector<2x256xf32>
    %259 = arith.addf %255, %258 : vector<2x256xf32>
    %cst_80 = arith.constant 0.000000e+00 : f32
    %260 = vector.shape_cast %252 : vector<1x256xi1> to vector<1x256xi1>
    %261 = vector.broadcast %260 : vector<1x256xi1> to vector<2x256xi1>
    %262 = vector.broadcast %cst_80 : f32 to vector<2x256xf32>
    %263 = arith.select %261, %259, %262 : vector<2x256xi1>, vector<2x256xf32>
    %264 = arith.addf %249, %263 : vector<2x256xf32>
    %c34_i32 = arith.constant 34 : i32
    %265 = tpu.dynamic_rotate %15 by %c34_i32 dim 1 : vector<2x256xf32>, i32 -> vector<2x256xf32>
    %c34_i32_81 = arith.constant 34 : i32
    %266 = tpu.dynamic_rotate %13 by %c34_i32_81 dim 1 : vector<2x256xf32>, i32 -> vector<2x256xf32>
    %267 = arith.andi %98, %35 : vector<1x256xi1>
    %c8 = arith.constant 8 : index
    %268 = memref.load %arg1[%c8] : memref<98xf32, #tpu.memory_space<smem>>
    %269 = vector.broadcast %268 : f32 to vector<2x256xf32>
    %270 = arith.mulf %269, %265 : vector<2x256xf32>
    %c57 = arith.constant 57 : index
    %271 = memref.load %arg1[%c57] : memref<98xf32, #tpu.memory_space<smem>>
    %272 = vector.broadcast %271 : f32 to vector<2x256xf32>
    %273 = arith.mulf %272, %266 : vector<2x256xf32>
    %274 = arith.addf %270, %273 : vector<2x256xf32>
    %cst_82 = arith.constant 0.000000e+00 : f32
    %275 = vector.shape_cast %267 : vector<1x256xi1> to vector<1x256xi1>
    %276 = vector.broadcast %275 : vector<1x256xi1> to vector<2x256xi1>
    %277 = vector.broadcast %cst_82 : f32 to vector<2x256xf32>
    %278 = arith.select %276, %274, %277 : vector<2x256xi1>, vector<2x256xf32>
    %279 = arith.addf %264, %278 : vector<2x256xf32>
    %c33_i32 = arith.constant 33 : i32
    %280 = tpu.dynamic_rotate %15 by %c33_i32 dim 1 : vector<2x256xf32>, i32 -> vector<2x256xf32>
    %c33_i32_83 = arith.constant 33 : i32
    %281 = tpu.dynamic_rotate %13 by %c33_i32_83 dim 1 : vector<2x256xf32>, i32 -> vector<2x256xf32>
    %282 = arith.andi %98, %44 : vector<1x256xi1>
    %c9 = arith.constant 9 : index
    %283 = memref.load %arg1[%c9] : memref<98xf32, #tpu.memory_space<smem>>
    %284 = vector.broadcast %283 : f32 to vector<2x256xf32>
    %285 = arith.mulf %284, %280 : vector<2x256xf32>
    %c58 = arith.constant 58 : index
    %286 = memref.load %arg1[%c58] : memref<98xf32, #tpu.memory_space<smem>>
    %287 = vector.broadcast %286 : f32 to vector<2x256xf32>
    %288 = arith.mulf %287, %281 : vector<2x256xf32>
    %289 = arith.addf %285, %288 : vector<2x256xf32>
    %cst_84 = arith.constant 0.000000e+00 : f32
    %290 = vector.shape_cast %282 : vector<1x256xi1> to vector<1x256xi1>
    %291 = vector.broadcast %290 : vector<1x256xi1> to vector<2x256xi1>
    %292 = vector.broadcast %cst_84 : f32 to vector<2x256xf32>
    %293 = arith.select %291, %289, %292 : vector<2x256xi1>, vector<2x256xf32>
    %294 = arith.addf %279, %293 : vector<2x256xf32>
    %c32_i32 = arith.constant 32 : i32
    %295 = tpu.dynamic_rotate %15 by %c32_i32 dim 1 : vector<2x256xf32>, i32 -> vector<2x256xf32>
    %c32_i32_85 = arith.constant 32 : i32
    %296 = tpu.dynamic_rotate %13 by %c32_i32_85 dim 1 : vector<2x256xf32>, i32 -> vector<2x256xf32>
    %297 = arith.andi %98, %53 : vector<1x256xi1>
    %c10 = arith.constant 10 : index
    %298 = memref.load %arg1[%c10] : memref<98xf32, #tpu.memory_space<smem>>
    %299 = vector.broadcast %298 : f32 to vector<2x256xf32>
    %300 = arith.mulf %299, %295 : vector<2x256xf32>
    %c59 = arith.constant 59 : index
    %301 = memref.load %arg1[%c59] : memref<98xf32, #tpu.memory_space<smem>>
    %302 = vector.broadcast %301 : f32 to vector<2x256xf32>
    %303 = arith.mulf %302, %296 : vector<2x256xf32>
    %304 = arith.addf %300, %303 : vector<2x256xf32>
    %cst_86 = arith.constant 0.000000e+00 : f32
    %305 = vector.shape_cast %297 : vector<1x256xi1> to vector<1x256xi1>
    %306 = vector.broadcast %305 : vector<1x256xi1> to vector<2x256xi1>
    %307 = vector.broadcast %cst_86 : f32 to vector<2x256xf32>
    %308 = arith.select %306, %304, %307 : vector<2x256xi1>, vector<2x256xf32>
    %309 = arith.addf %294, %308 : vector<2x256xf32>
    %c31_i32 = arith.constant 31 : i32
    %310 = tpu.dynamic_rotate %15 by %c31_i32 dim 1 : vector<2x256xf32>, i32 -> vector<2x256xf32>
    %c31_i32_87 = arith.constant 31 : i32
    %311 = tpu.dynamic_rotate %13 by %c31_i32_87 dim 1 : vector<2x256xf32>, i32 -> vector<2x256xf32>
    %312 = arith.andi %98, %62 : vector<1x256xi1>
    %c11 = arith.constant 11 : index
    %313 = memref.load %arg1[%c11] : memref<98xf32, #tpu.memory_space<smem>>
    %314 = vector.broadcast %313 : f32 to vector<2x256xf32>
    %315 = arith.mulf %314, %310 : vector<2x256xf32>
    %c60 = arith.constant 60 : index
    %316 = memref.load %arg1[%c60] : memref<98xf32, #tpu.memory_space<smem>>
    %317 = vector.broadcast %316 : f32 to vector<2x256xf32>
    %318 = arith.mulf %317, %311 : vector<2x256xf32>
    %319 = arith.addf %315, %318 : vector<2x256xf32>
    %cst_88 = arith.constant 0.000000e+00 : f32
    %320 = vector.shape_cast %312 : vector<1x256xi1> to vector<1x256xi1>
    %321 = vector.broadcast %320 : vector<1x256xi1> to vector<2x256xi1>
    %322 = vector.broadcast %cst_88 : f32 to vector<2x256xf32>
    %323 = arith.select %321, %319, %322 : vector<2x256xi1>, vector<2x256xf32>
    %324 = arith.addf %309, %323 : vector<2x256xf32>
    %c30_i32 = arith.constant 30 : i32
    %325 = tpu.dynamic_rotate %15 by %c30_i32 dim 1 : vector<2x256xf32>, i32 -> vector<2x256xf32>
    %c30_i32_89 = arith.constant 30 : i32
    %326 = tpu.dynamic_rotate %13 by %c30_i32_89 dim 1 : vector<2x256xf32>, i32 -> vector<2x256xf32>
    %327 = arith.andi %98, %71 : vector<1x256xi1>
    %c12 = arith.constant 12 : index
    %328 = memref.load %arg1[%c12] : memref<98xf32, #tpu.memory_space<smem>>
    %329 = vector.broadcast %328 : f32 to vector<2x256xf32>
    %330 = arith.mulf %329, %325 : vector<2x256xf32>
    %c61 = arith.constant 61 : index
    %331 = memref.load %arg1[%c61] : memref<98xf32, #tpu.memory_space<smem>>
    %332 = vector.broadcast %331 : f32 to vector<2x256xf32>
    %333 = arith.mulf %332, %326 : vector<2x256xf32>
    %334 = arith.addf %330, %333 : vector<2x256xf32>
    %cst_90 = arith.constant 0.000000e+00 : f32
    %335 = vector.shape_cast %327 : vector<1x256xi1> to vector<1x256xi1>
    %336 = vector.broadcast %335 : vector<1x256xi1> to vector<2x256xi1>
    %337 = vector.broadcast %cst_90 : f32 to vector<2x256xf32>
    %338 = arith.select %336, %334, %337 : vector<2x256xi1>, vector<2x256xf32>
    %339 = arith.addf %324, %338 : vector<2x256xf32>
    %c29_i32 = arith.constant 29 : i32
    %340 = tpu.dynamic_rotate %15 by %c29_i32 dim 1 : vector<2x256xf32>, i32 -> vector<2x256xf32>
    %c29_i32_91 = arith.constant 29 : i32
    %341 = tpu.dynamic_rotate %13 by %c29_i32_91 dim 1 : vector<2x256xf32>, i32 -> vector<2x256xf32>
    %342 = arith.andi %98, %80 : vector<1x256xi1>
    %c13 = arith.constant 13 : index
    %343 = memref.load %arg1[%c13] : memref<98xf32, #tpu.memory_space<smem>>
    %344 = vector.broadcast %343 : f32 to vector<2x256xf32>
    %345 = arith.mulf %344, %340 : vector<2x256xf32>
    %c62 = arith.constant 62 : index
    %346 = memref.load %arg1[%c62] : memref<98xf32, #tpu.memory_space<smem>>
    %347 = vector.broadcast %346 : f32 to vector<2x256xf32>
    %348 = arith.mulf %347, %341 : vector<2x256xf32>
    %349 = arith.addf %345, %348 : vector<2x256xf32>
    %cst_92 = arith.constant 0.000000e+00 : f32
    %350 = vector.shape_cast %342 : vector<1x256xi1> to vector<1x256xi1>
    %351 = vector.broadcast %350 : vector<1x256xi1> to vector<2x256xi1>
    %352 = vector.broadcast %cst_92 : f32 to vector<2x256xf32>
    %353 = arith.select %351, %349, %352 : vector<2x256xi1>, vector<2x256xf32>
    %354 = arith.addf %339, %353 : vector<2x256xf32>
    %c19_i32 = arith.constant 19 : i32
    %355 = tpu.dynamic_rotate %15 by %c19_i32 dim 1 : vector<2x256xf32>, i32 -> vector<2x256xf32>
    %c19_i32_93 = arith.constant 19 : i32
    %356 = tpu.dynamic_rotate %13 by %c19_i32_93 dim 1 : vector<2x256xf32>, i32 -> vector<2x256xf32>
    %357 = arith.andi %107, %26 : vector<1x256xi1>
    %c14 = arith.constant 14 : index
    %358 = memref.load %arg1[%c14] : memref<98xf32, #tpu.memory_space<smem>>
    %359 = vector.broadcast %358 : f32 to vector<2x256xf32>
    %360 = arith.mulf %359, %355 : vector<2x256xf32>
    %c63 = arith.constant 63 : index
    %361 = memref.load %arg1[%c63] : memref<98xf32, #tpu.memory_space<smem>>
    %362 = vector.broadcast %361 : f32 to vector<2x256xf32>
    %363 = arith.mulf %362, %356 : vector<2x256xf32>
    %364 = arith.addf %360, %363 : vector<2x256xf32>
    %cst_94 = arith.constant 0.000000e+00 : f32
    %365 = vector.shape_cast %357 : vector<1x256xi1> to vector<1x256xi1>
    %366 = vector.broadcast %365 : vector<1x256xi1> to vector<2x256xi1>
    %367 = vector.broadcast %cst_94 : f32 to vector<2x256xf32>
    %368 = arith.select %366, %364, %367 : vector<2x256xi1>, vector<2x256xf32>
    %369 = arith.addf %354, %368 : vector<2x256xf32>
    %c18_i32 = arith.constant 18 : i32
    %370 = tpu.dynamic_rotate %15 by %c18_i32 dim 1 : vector<2x256xf32>, i32 -> vector<2x256xf32>
    %c18_i32_95 = arith.constant 18 : i32
    %371 = tpu.dynamic_rotate %13 by %c18_i32_95 dim 1 : vector<2x256xf32>, i32 -> vector<2x256xf32>
    %372 = arith.andi %107, %35 : vector<1x256xi1>
    %c15 = arith.constant 15 : index
    %373 = memref.load %arg1[%c15] : memref<98xf32, #tpu.memory_space<smem>>
    %374 = vector.broadcast %373 : f32 to vector<2x256xf32>
    %375 = arith.mulf %374, %370 : vector<2x256xf32>
    %c64 = arith.constant 64 : index
    %376 = memref.load %arg1[%c64] : memref<98xf32, #tpu.memory_space<smem>>
    %377 = vector.broadcast %376 : f32 to vector<2x256xf32>
    %378 = arith.mulf %377, %371 : vector<2x256xf32>
    %379 = arith.addf %375, %378 : vector<2x256xf32>
    %cst_96 = arith.constant 0.000000e+00 : f32
    %380 = vector.shape_cast %372 : vector<1x256xi1> to vector<1x256xi1>
    %381 = vector.broadcast %380 : vector<1x256xi1> to vector<2x256xi1>
    %382 = vector.broadcast %cst_96 : f32 to vector<2x256xf32>
    %383 = arith.select %381, %379, %382 : vector<2x256xi1>, vector<2x256xf32>
    %384 = arith.addf %369, %383 : vector<2x256xf32>
    %c17_i32 = arith.constant 17 : i32
    %385 = tpu.dynamic_rotate %15 by %c17_i32 dim 1 : vector<2x256xf32>, i32 -> vector<2x256xf32>
    %c17_i32_97 = arith.constant 17 : i32
    %386 = tpu.dynamic_rotate %13 by %c17_i32_97 dim 1 : vector<2x256xf32>, i32 -> vector<2x256xf32>
    %387 = arith.andi %107, %44 : vector<1x256xi1>
    %c16 = arith.constant 16 : index
    %388 = memref.load %arg1[%c16] : memref<98xf32, #tpu.memory_space<smem>>
    %389 = vector.broadcast %388 : f32 to vector<2x256xf32>
    %390 = arith.mulf %389, %385 : vector<2x256xf32>
    %c65 = arith.constant 65 : index
    %391 = memref.load %arg1[%c65] : memref<98xf32, #tpu.memory_space<smem>>
    %392 = vector.broadcast %391 : f32 to vector<2x256xf32>
    %393 = arith.mulf %392, %386 : vector<2x256xf32>
    %394 = arith.addf %390, %393 : vector<2x256xf32>
    %cst_98 = arith.constant 0.000000e+00 : f32
    %395 = vector.shape_cast %387 : vector<1x256xi1> to vector<1x256xi1>
    %396 = vector.broadcast %395 : vector<1x256xi1> to vector<2x256xi1>
    %397 = vector.broadcast %cst_98 : f32 to vector<2x256xf32>
    %398 = arith.select %396, %394, %397 : vector<2x256xi1>, vector<2x256xf32>
    %399 = arith.addf %384, %398 : vector<2x256xf32>
    %c16_i32_99 = arith.constant 16 : i32
    %400 = tpu.dynamic_rotate %15 by %c16_i32_99 dim 1 : vector<2x256xf32>, i32 -> vector<2x256xf32>
    %c16_i32_100 = arith.constant 16 : i32
    %401 = tpu.dynamic_rotate %13 by %c16_i32_100 dim 1 : vector<2x256xf32>, i32 -> vector<2x256xf32>
    %402 = arith.andi %107, %53 : vector<1x256xi1>
    %c17 = arith.constant 17 : index
    %403 = memref.load %arg1[%c17] : memref<98xf32, #tpu.memory_space<smem>>
    %404 = vector.broadcast %403 : f32 to vector<2x256xf32>
    %405 = arith.mulf %404, %400 : vector<2x256xf32>
    %c66 = arith.constant 66 : index
    %406 = memref.load %arg1[%c66] : memref<98xf32, #tpu.memory_space<smem>>
    %407 = vector.broadcast %406 : f32 to vector<2x256xf32>
    %408 = arith.mulf %407, %401 : vector<2x256xf32>
    %409 = arith.addf %405, %408 : vector<2x256xf32>
    %cst_101 = arith.constant 0.000000e+00 : f32
    %410 = vector.shape_cast %402 : vector<1x256xi1> to vector<1x256xi1>
    %411 = vector.broadcast %410 : vector<1x256xi1> to vector<2x256xi1>
    %412 = vector.broadcast %cst_101 : f32 to vector<2x256xf32>
    %413 = arith.select %411, %409, %412 : vector<2x256xi1>, vector<2x256xf32>
    %414 = arith.addf %399, %413 : vector<2x256xf32>
    %c15_i32 = arith.constant 15 : i32
    %415 = tpu.dynamic_rotate %15 by %c15_i32 dim 1 : vector<2x256xf32>, i32 -> vector<2x256xf32>
    %c15_i32_102 = arith.constant 15 : i32
    %416 = tpu.dynamic_rotate %13 by %c15_i32_102 dim 1 : vector<2x256xf32>, i32 -> vector<2x256xf32>
    %417 = arith.andi %107, %62 : vector<1x256xi1>
    %c18 = arith.constant 18 : index
    %418 = memref.load %arg1[%c18] : memref<98xf32, #tpu.memory_space<smem>>
    %419 = vector.broadcast %418 : f32 to vector<2x256xf32>
    %420 = arith.mulf %419, %415 : vector<2x256xf32>
    %c67 = arith.constant 67 : index
    %421 = memref.load %arg1[%c67] : memref<98xf32, #tpu.memory_space<smem>>
    %422 = vector.broadcast %421 : f32 to vector<2x256xf32>
    %423 = arith.mulf %422, %416 : vector<2x256xf32>
    %424 = arith.addf %420, %423 : vector<2x256xf32>
    %cst_103 = arith.constant 0.000000e+00 : f32
    %425 = vector.shape_cast %417 : vector<1x256xi1> to vector<1x256xi1>
    %426 = vector.broadcast %425 : vector<1x256xi1> to vector<2x256xi1>
    %427 = vector.broadcast %cst_103 : f32 to vector<2x256xf32>
    %428 = arith.select %426, %424, %427 : vector<2x256xi1>, vector<2x256xf32>
    %429 = arith.addf %414, %428 : vector<2x256xf32>
    %c14_i32 = arith.constant 14 : i32
    %430 = tpu.dynamic_rotate %15 by %c14_i32 dim 1 : vector<2x256xf32>, i32 -> vector<2x256xf32>
    %c14_i32_104 = arith.constant 14 : i32
    %431 = tpu.dynamic_rotate %13 by %c14_i32_104 dim 1 : vector<2x256xf32>, i32 -> vector<2x256xf32>
    %432 = arith.andi %107, %71 : vector<1x256xi1>
    %c19 = arith.constant 19 : index
    %433 = memref.load %arg1[%c19] : memref<98xf32, #tpu.memory_space<smem>>
    %434 = vector.broadcast %433 : f32 to vector<2x256xf32>
    %435 = arith.mulf %434, %430 : vector<2x256xf32>
    %c68 = arith.constant 68 : index
    %436 = memref.load %arg1[%c68] : memref<98xf32, #tpu.memory_space<smem>>
    %437 = vector.broadcast %436 : f32 to vector<2x256xf32>
    %438 = arith.mulf %437, %431 : vector<2x256xf32>
    %439 = arith.addf %435, %438 : vector<2x256xf32>
    %cst_105 = arith.constant 0.000000e+00 : f32
    %440 = vector.shape_cast %432 : vector<1x256xi1> to vector<1x256xi1>
    %441 = vector.broadcast %440 : vector<1x256xi1> to vector<2x256xi1>
    %442 = vector.broadcast %cst_105 : f32 to vector<2x256xf32>
    %443 = arith.select %441, %439, %442 : vector<2x256xi1>, vector<2x256xf32>
    %444 = arith.addf %429, %443 : vector<2x256xf32>
    %c13_i32 = arith.constant 13 : i32
    %445 = tpu.dynamic_rotate %15 by %c13_i32 dim 1 : vector<2x256xf32>, i32 -> vector<2x256xf32>
    %c13_i32_106 = arith.constant 13 : i32
    %446 = tpu.dynamic_rotate %13 by %c13_i32_106 dim 1 : vector<2x256xf32>, i32 -> vector<2x256xf32>
    %447 = arith.andi %107, %80 : vector<1x256xi1>
    %c20 = arith.constant 20 : index
    %448 = memref.load %arg1[%c20] : memref<98xf32, #tpu.memory_space<smem>>
    %449 = vector.broadcast %448 : f32 to vector<2x256xf32>
    %450 = arith.mulf %449, %445 : vector<2x256xf32>
    %c69 = arith.constant 69 : index
    %451 = memref.load %arg1[%c69] : memref<98xf32, #tpu.memory_space<smem>>
    %452 = vector.broadcast %451 : f32 to vector<2x256xf32>
    %453 = arith.mulf %452, %446 : vector<2x256xf32>
    %454 = arith.addf %450, %453 : vector<2x256xf32>
    %cst_107 = arith.constant 0.000000e+00 : f32
    %455 = vector.shape_cast %447 : vector<1x256xi1> to vector<1x256xi1>
    %456 = vector.broadcast %455 : vector<1x256xi1> to vector<2x256xi1>
    %457 = vector.broadcast %cst_107 : f32 to vector<2x256xf32>
    %458 = arith.select %456, %454, %457 : vector<2x256xi1>, vector<2x256xf32>
    %459 = arith.addf %444, %458 : vector<2x256xf32>
    %c3_i32_108 = arith.constant 3 : i32
    %460 = tpu.dynamic_rotate %15 by %c3_i32_108 dim 1 : vector<2x256xf32>, i32 -> vector<2x256xf32>
    %c3_i32_109 = arith.constant 3 : i32
    %461 = tpu.dynamic_rotate %13 by %c3_i32_109 dim 1 : vector<2x256xf32>, i32 -> vector<2x256xf32>
    %462 = arith.andi %116, %26 : vector<1x256xi1>
    %c21 = arith.constant 21 : index
    %463 = memref.load %arg1[%c21] : memref<98xf32, #tpu.memory_space<smem>>
    %464 = vector.broadcast %463 : f32 to vector<2x256xf32>
    %465 = arith.mulf %464, %460 : vector<2x256xf32>
    %c70 = arith.constant 70 : index
    %466 = memref.load %arg1[%c70] : memref<98xf32, #tpu.memory_space<smem>>
    %467 = vector.broadcast %466 : f32 to vector<2x256xf32>
    %468 = arith.mulf %467, %461 : vector<2x256xf32>
    %469 = arith.addf %465, %468 : vector<2x256xf32>
    %cst_110 = arith.constant 0.000000e+00 : f32
    %470 = vector.shape_cast %462 : vector<1x256xi1> to vector<1x256xi1>
    %471 = vector.broadcast %470 : vector<1x256xi1> to vector<2x256xi1>
    %472 = vector.broadcast %cst_110 : f32 to vector<2x256xf32>
    %473 = arith.select %471, %469, %472 : vector<2x256xi1>, vector<2x256xf32>
    %474 = arith.addf %459, %473 : vector<2x256xf32>
    %c2_i32_111 = arith.constant 2 : i32
    %475 = tpu.dynamic_rotate %15 by %c2_i32_111 dim 1 : vector<2x256xf32>, i32 -> vector<2x256xf32>
    %c2_i32_112 = arith.constant 2 : i32
    %476 = tpu.dynamic_rotate %13 by %c2_i32_112 dim 1 : vector<2x256xf32>, i32 -> vector<2x256xf32>
    %477 = arith.andi %116, %35 : vector<1x256xi1>
    %c22 = arith.constant 22 : index
    %478 = memref.load %arg1[%c22] : memref<98xf32, #tpu.memory_space<smem>>
    %479 = vector.broadcast %478 : f32 to vector<2x256xf32>
    %480 = arith.mulf %479, %475 : vector<2x256xf32>
    %c71 = arith.constant 71 : index
    %481 = memref.load %arg1[%c71] : memref<98xf32, #tpu.memory_space<smem>>
    %482 = vector.broadcast %481 : f32 to vector<2x256xf32>
    %483 = arith.mulf %482, %476 : vector<2x256xf32>
    %484 = arith.addf %480, %483 : vector<2x256xf32>
    %cst_113 = arith.constant 0.000000e+00 : f32
    %485 = vector.shape_cast %477 : vector<1x256xi1> to vector<1x256xi1>
    %486 = vector.broadcast %485 : vector<1x256xi1> to vector<2x256xi1>
    %487 = vector.broadcast %cst_113 : f32 to vector<2x256xf32>
    %488 = arith.select %486, %484, %487 : vector<2x256xi1>, vector<2x256xf32>
    %489 = arith.addf %474, %488 : vector<2x256xf32>
    %c1_i32_114 = arith.constant 1 : i32
    %490 = tpu.dynamic_rotate %15 by %c1_i32_114 dim 1 : vector<2x256xf32>, i32 -> vector<2x256xf32>
    %c1_i32_115 = arith.constant 1 : i32
    %491 = tpu.dynamic_rotate %13 by %c1_i32_115 dim 1 : vector<2x256xf32>, i32 -> vector<2x256xf32>
    %492 = arith.andi %116, %44 : vector<1x256xi1>
    %c23 = arith.constant 23 : index
    %493 = memref.load %arg1[%c23] : memref<98xf32, #tpu.memory_space<smem>>
    %494 = vector.broadcast %493 : f32 to vector<2x256xf32>
    %495 = arith.mulf %494, %490 : vector<2x256xf32>
    %c72 = arith.constant 72 : index
    %496 = memref.load %arg1[%c72] : memref<98xf32, #tpu.memory_space<smem>>
    %497 = vector.broadcast %496 : f32 to vector<2x256xf32>
    %498 = arith.mulf %497, %491 : vector<2x256xf32>
    %499 = arith.addf %495, %498 : vector<2x256xf32>
    %cst_116 = arith.constant 0.000000e+00 : f32
    %500 = vector.shape_cast %492 : vector<1x256xi1> to vector<1x256xi1>
    %501 = vector.broadcast %500 : vector<1x256xi1> to vector<2x256xi1>
    %502 = vector.broadcast %cst_116 : f32 to vector<2x256xf32>
    %503 = arith.select %501, %499, %502 : vector<2x256xi1>, vector<2x256xf32>
    %504 = arith.addf %489, %503 : vector<2x256xf32>
    %505 = arith.andi %116, %53 : vector<1x256xi1>
    %c24 = arith.constant 24 : index
    %506 = memref.load %arg1[%c24] : memref<98xf32, #tpu.memory_space<smem>>
    %507 = vector.broadcast %506 : f32 to vector<2x256xf32>
    %508 = arith.mulf %507, %15 : vector<2x256xf32>
    %c73 = arith.constant 73 : index
    %509 = memref.load %arg1[%c73] : memref<98xf32, #tpu.memory_space<smem>>
    %510 = vector.broadcast %509 : f32 to vector<2x256xf32>
    %511 = arith.mulf %510, %13 : vector<2x256xf32>
    %512 = arith.addf %508, %511 : vector<2x256xf32>
    %cst_117 = arith.constant 0.000000e+00 : f32
    %513 = vector.shape_cast %505 : vector<1x256xi1> to vector<1x256xi1>
    %514 = vector.broadcast %513 : vector<1x256xi1> to vector<2x256xi1>
    %515 = vector.broadcast %cst_117 : f32 to vector<2x256xf32>
    %516 = arith.select %514, %512, %515 : vector<2x256xi1>, vector<2x256xf32>
    %517 = arith.addf %504, %516 : vector<2x256xf32>
    %c255_i32 = arith.constant 255 : i32
    %518 = tpu.dynamic_rotate %15 by %c255_i32 dim 1 : vector<2x256xf32>, i32 -> vector<2x256xf32>
    %c255_i32_118 = arith.constant 255 : i32
    %519 = tpu.dynamic_rotate %13 by %c255_i32_118 dim 1 : vector<2x256xf32>, i32 -> vector<2x256xf32>
    %520 = arith.andi %116, %62 : vector<1x256xi1>
    %c25 = arith.constant 25 : index
    %521 = memref.load %arg1[%c25] : memref<98xf32, #tpu.memory_space<smem>>
    %522 = vector.broadcast %521 : f32 to vector<2x256xf32>
    %523 = arith.mulf %522, %518 : vector<2x256xf32>
    %c74 = arith.constant 74 : index
    %524 = memref.load %arg1[%c74] : memref<98xf32, #tpu.memory_space<smem>>
    %525 = vector.broadcast %524 : f32 to vector<2x256xf32>
    %526 = arith.mulf %525, %519 : vector<2x256xf32>
    %527 = arith.addf %523, %526 : vector<2x256xf32>
    %cst_119 = arith.constant 0.000000e+00 : f32
    %528 = vector.shape_cast %520 : vector<1x256xi1> to vector<1x256xi1>
    %529 = vector.broadcast %528 : vector<1x256xi1> to vector<2x256xi1>
    %530 = vector.broadcast %cst_119 : f32 to vector<2x256xf32>
    %531 = arith.select %529, %527, %530 : vector<2x256xi1>, vector<2x256xf32>
    %532 = arith.addf %517, %531 : vector<2x256xf32>
    %c254_i32 = arith.constant 254 : i32
    %533 = tpu.dynamic_rotate %15 by %c254_i32 dim 1 : vector<2x256xf32>, i32 -> vector<2x256xf32>
    %c254_i32_120 = arith.constant 254 : i32
    %534 = tpu.dynamic_rotate %13 by %c254_i32_120 dim 1 : vector<2x256xf32>, i32 -> vector<2x256xf32>
    %535 = arith.andi %116, %71 : vector<1x256xi1>
    %c26 = arith.constant 26 : index
    %536 = memref.load %arg1[%c26] : memref<98xf32, #tpu.memory_space<smem>>
    %537 = vector.broadcast %536 : f32 to vector<2x256xf32>
    %538 = arith.mulf %537, %533 : vector<2x256xf32>
    %c75 = arith.constant 75 : index
    %539 = memref.load %arg1[%c75] : memref<98xf32, #tpu.memory_space<smem>>
    %540 = vector.broadcast %539 : f32 to vector<2x256xf32>
    %541 = arith.mulf %540, %534 : vector<2x256xf32>
    %542 = arith.addf %538, %541 : vector<2x256xf32>
    %cst_121 = arith.constant 0.000000e+00 : f32
    %543 = vector.shape_cast %535 : vector<1x256xi1> to vector<1x256xi1>
    %544 = vector.broadcast %543 : vector<1x256xi1> to vector<2x256xi1>
    %545 = vector.broadcast %cst_121 : f32 to vector<2x256xf32>
    %546 = arith.select %544, %542, %545 : vector<2x256xi1>, vector<2x256xf32>
    %547 = arith.addf %532, %546 : vector<2x256xf32>
    %c253_i32 = arith.constant 253 : i32
    %548 = tpu.dynamic_rotate %15 by %c253_i32 dim 1 : vector<2x256xf32>, i32 -> vector<2x256xf32>
    %c253_i32_122 = arith.constant 253 : i32
    %549 = tpu.dynamic_rotate %13 by %c253_i32_122 dim 1 : vector<2x256xf32>, i32 -> vector<2x256xf32>
    %550 = arith.andi %116, %80 : vector<1x256xi1>
    %c27 = arith.constant 27 : index
    %551 = memref.load %arg1[%c27] : memref<98xf32, #tpu.memory_space<smem>>
    %552 = vector.broadcast %551 : f32 to vector<2x256xf32>
    %553 = arith.mulf %552, %548 : vector<2x256xf32>
    %c76 = arith.constant 76 : index
    %554 = memref.load %arg1[%c76] : memref<98xf32, #tpu.memory_space<smem>>
    %555 = vector.broadcast %554 : f32 to vector<2x256xf32>
    %556 = arith.mulf %555, %549 : vector<2x256xf32>
    %557 = arith.addf %553, %556 : vector<2x256xf32>
    %cst_123 = arith.constant 0.000000e+00 : f32
    %558 = vector.shape_cast %550 : vector<1x256xi1> to vector<1x256xi1>
    %559 = vector.broadcast %558 : vector<1x256xi1> to vector<2x256xi1>
    %560 = vector.broadcast %cst_123 : f32 to vector<2x256xf32>
    %561 = arith.select %559, %557, %560 : vector<2x256xi1>, vector<2x256xf32>
    %562 = arith.addf %547, %561 : vector<2x256xf32>
    %c243_i32 = arith.constant 243 : i32
    %563 = tpu.dynamic_rotate %15 by %c243_i32 dim 1 : vector<2x256xf32>, i32 -> vector<2x256xf32>
    %c243_i32_124 = arith.constant 243 : i32
    %564 = tpu.dynamic_rotate %13 by %c243_i32_124 dim 1 : vector<2x256xf32>, i32 -> vector<2x256xf32>
    %565 = arith.andi %125, %26 : vector<1x256xi1>
    %c28 = arith.constant 28 : index
    %566 = memref.load %arg1[%c28] : memref<98xf32, #tpu.memory_space<smem>>
    %567 = vector.broadcast %566 : f32 to vector<2x256xf32>
    %568 = arith.mulf %567, %563 : vector<2x256xf32>
    %c77 = arith.constant 77 : index
    %569 = memref.load %arg1[%c77] : memref<98xf32, #tpu.memory_space<smem>>
    %570 = vector.broadcast %569 : f32 to vector<2x256xf32>
    %571 = arith.mulf %570, %564 : vector<2x256xf32>
    %572 = arith.addf %568, %571 : vector<2x256xf32>
    %cst_125 = arith.constant 0.000000e+00 : f32
    %573 = vector.shape_cast %565 : vector<1x256xi1> to vector<1x256xi1>
    %574 = vector.broadcast %573 : vector<1x256xi1> to vector<2x256xi1>
    %575 = vector.broadcast %cst_125 : f32 to vector<2x256xf32>
    %576 = arith.select %574, %572, %575 : vector<2x256xi1>, vector<2x256xf32>
    %577 = arith.addf %562, %576 : vector<2x256xf32>
    %c242_i32 = arith.constant 242 : i32
    %578 = tpu.dynamic_rotate %15 by %c242_i32 dim 1 : vector<2x256xf32>, i32 -> vector<2x256xf32>
    %c242_i32_126 = arith.constant 242 : i32
    %579 = tpu.dynamic_rotate %13 by %c242_i32_126 dim 1 : vector<2x256xf32>, i32 -> vector<2x256xf32>
    %580 = arith.andi %125, %35 : vector<1x256xi1>
    %c29 = arith.constant 29 : index
    %581 = memref.load %arg1[%c29] : memref<98xf32, #tpu.memory_space<smem>>
    %582 = vector.broadcast %581 : f32 to vector<2x256xf32>
    %583 = arith.mulf %582, %578 : vector<2x256xf32>
    %c78 = arith.constant 78 : index
    %584 = memref.load %arg1[%c78] : memref<98xf32, #tpu.memory_space<smem>>
    %585 = vector.broadcast %584 : f32 to vector<2x256xf32>
    %586 = arith.mulf %585, %579 : vector<2x256xf32>
    %587 = arith.addf %583, %586 : vector<2x256xf32>
    %cst_127 = arith.constant 0.000000e+00 : f32
    %588 = vector.shape_cast %580 : vector<1x256xi1> to vector<1x256xi1>
    %589 = vector.broadcast %588 : vector<1x256xi1> to vector<2x256xi1>
    %590 = vector.broadcast %cst_127 : f32 to vector<2x256xf32>
    %591 = arith.select %589, %587, %590 : vector<2x256xi1>, vector<2x256xf32>
    %592 = arith.addf %577, %591 : vector<2x256xf32>
    %c241_i32 = arith.constant 241 : i32
    %593 = tpu.dynamic_rotate %15 by %c241_i32 dim 1 : vector<2x256xf32>, i32 -> vector<2x256xf32>
    %c241_i32_128 = arith.constant 241 : i32
    %594 = tpu.dynamic_rotate %13 by %c241_i32_128 dim 1 : vector<2x256xf32>, i32 -> vector<2x256xf32>
    %595 = arith.andi %125, %44 : vector<1x256xi1>
    %c30 = arith.constant 30 : index
    %596 = memref.load %arg1[%c30] : memref<98xf32, #tpu.memory_space<smem>>
    %597 = vector.broadcast %596 : f32 to vector<2x256xf32>
    %598 = arith.mulf %597, %593 : vector<2x256xf32>
    %c79 = arith.constant 79 : index
    %599 = memref.load %arg1[%c79] : memref<98xf32, #tpu.memory_space<smem>>
    %600 = vector.broadcast %599 : f32 to vector<2x256xf32>
    %601 = arith.mulf %600, %594 : vector<2x256xf32>
    %602 = arith.addf %598, %601 : vector<2x256xf32>
    %cst_129 = arith.constant 0.000000e+00 : f32
    %603 = vector.shape_cast %595 : vector<1x256xi1> to vector<1x256xi1>
    %604 = vector.broadcast %603 : vector<1x256xi1> to vector<2x256xi1>
    %605 = vector.broadcast %cst_129 : f32 to vector<2x256xf32>
    %606 = arith.select %604, %602, %605 : vector<2x256xi1>, vector<2x256xf32>
    %607 = arith.addf %592, %606 : vector<2x256xf32>
    %c240_i32 = arith.constant 240 : i32
    %608 = tpu.dynamic_rotate %15 by %c240_i32 dim 1 : vector<2x256xf32>, i32 -> vector<2x256xf32>
    %c240_i32_130 = arith.constant 240 : i32
    %609 = tpu.dynamic_rotate %13 by %c240_i32_130 dim 1 : vector<2x256xf32>, i32 -> vector<2x256xf32>
    %610 = arith.andi %125, %53 : vector<1x256xi1>
    %c31 = arith.constant 31 : index
    %611 = memref.load %arg1[%c31] : memref<98xf32, #tpu.memory_space<smem>>
    %612 = vector.broadcast %611 : f32 to vector<2x256xf32>
    %613 = arith.mulf %612, %608 : vector<2x256xf32>
    %c80 = arith.constant 80 : index
    %614 = memref.load %arg1[%c80] : memref<98xf32, #tpu.memory_space<smem>>
    %615 = vector.broadcast %614 : f32 to vector<2x256xf32>
    %616 = arith.mulf %615, %609 : vector<2x256xf32>
    %617 = arith.addf %613, %616 : vector<2x256xf32>
    %cst_131 = arith.constant 0.000000e+00 : f32
    %618 = vector.shape_cast %610 : vector<1x256xi1> to vector<1x256xi1>
    %619 = vector.broadcast %618 : vector<1x256xi1> to vector<2x256xi1>
    %620 = vector.broadcast %cst_131 : f32 to vector<2x256xf32>
    %621 = arith.select %619, %617, %620 : vector<2x256xi1>, vector<2x256xf32>
    %622 = arith.addf %607, %621 : vector<2x256xf32>
    %c239_i32 = arith.constant 239 : i32
    %623 = tpu.dynamic_rotate %15 by %c239_i32 dim 1 : vector<2x256xf32>, i32 -> vector<2x256xf32>
    %c239_i32_132 = arith.constant 239 : i32
    %624 = tpu.dynamic_rotate %13 by %c239_i32_132 dim 1 : vector<2x256xf32>, i32 -> vector<2x256xf32>
    %625 = arith.andi %125, %62 : vector<1x256xi1>
    %c32 = arith.constant 32 : index
    %626 = memref.load %arg1[%c32] : memref<98xf32, #tpu.memory_space<smem>>
    %627 = vector.broadcast %626 : f32 to vector<2x256xf32>
    %628 = arith.mulf %627, %623 : vector<2x256xf32>
    %c81 = arith.constant 81 : index
    %629 = memref.load %arg1[%c81] : memref<98xf32, #tpu.memory_space<smem>>
    %630 = vector.broadcast %629 : f32 to vector<2x256xf32>
    %631 = arith.mulf %630, %624 : vector<2x256xf32>
    %632 = arith.addf %628, %631 : vector<2x256xf32>
    %cst_133 = arith.constant 0.000000e+00 : f32
    %633 = vector.shape_cast %625 : vector<1x256xi1> to vector<1x256xi1>
    %634 = vector.broadcast %633 : vector<1x256xi1> to vector<2x256xi1>
    %635 = vector.broadcast %cst_133 : f32 to vector<2x256xf32>
    %636 = arith.select %634, %632, %635 : vector<2x256xi1>, vector<2x256xf32>
    %637 = arith.addf %622, %636 : vector<2x256xf32>
    %c238_i32 = arith.constant 238 : i32
    %638 = tpu.dynamic_rotate %15 by %c238_i32 dim 1 : vector<2x256xf32>, i32 -> vector<2x256xf32>
    %c238_i32_134 = arith.constant 238 : i32
    %639 = tpu.dynamic_rotate %13 by %c238_i32_134 dim 1 : vector<2x256xf32>, i32 -> vector<2x256xf32>
    %640 = arith.andi %125, %71 : vector<1x256xi1>
    %c33 = arith.constant 33 : index
    %641 = memref.load %arg1[%c33] : memref<98xf32, #tpu.memory_space<smem>>
    %642 = vector.broadcast %641 : f32 to vector<2x256xf32>
    %643 = arith.mulf %642, %638 : vector<2x256xf32>
    %c82 = arith.constant 82 : index
    %644 = memref.load %arg1[%c82] : memref<98xf32, #tpu.memory_space<smem>>
    %645 = vector.broadcast %644 : f32 to vector<2x256xf32>
    %646 = arith.mulf %645, %639 : vector<2x256xf32>
    %647 = arith.addf %643, %646 : vector<2x256xf32>
    %cst_135 = arith.constant 0.000000e+00 : f32
    %648 = vector.shape_cast %640 : vector<1x256xi1> to vector<1x256xi1>
    %649 = vector.broadcast %648 : vector<1x256xi1> to vector<2x256xi1>
    %650 = vector.broadcast %cst_135 : f32 to vector<2x256xf32>
    %651 = arith.select %649, %647, %650 : vector<2x256xi1>, vector<2x256xf32>
    %652 = arith.addf %637, %651 : vector<2x256xf32>
    %c237_i32 = arith.constant 237 : i32
    %653 = tpu.dynamic_rotate %15 by %c237_i32 dim 1 : vector<2x256xf32>, i32 -> vector<2x256xf32>
    %c237_i32_136 = arith.constant 237 : i32
    %654 = tpu.dynamic_rotate %13 by %c237_i32_136 dim 1 : vector<2x256xf32>, i32 -> vector<2x256xf32>
    %655 = arith.andi %125, %80 : vector<1x256xi1>
    %c34 = arith.constant 34 : index
    %656 = memref.load %arg1[%c34] : memref<98xf32, #tpu.memory_space<smem>>
    %657 = vector.broadcast %656 : f32 to vector<2x256xf32>
    %658 = arith.mulf %657, %653 : vector<2x256xf32>
    %c83 = arith.constant 83 : index
    %659 = memref.load %arg1[%c83] : memref<98xf32, #tpu.memory_space<smem>>
    %660 = vector.broadcast %659 : f32 to vector<2x256xf32>
    %661 = arith.mulf %660, %654 : vector<2x256xf32>
    %662 = arith.addf %658, %661 : vector<2x256xf32>
    %cst_137 = arith.constant 0.000000e+00 : f32
    %663 = vector.shape_cast %655 : vector<1x256xi1> to vector<1x256xi1>
    %664 = vector.broadcast %663 : vector<1x256xi1> to vector<2x256xi1>
    %665 = vector.broadcast %cst_137 : f32 to vector<2x256xf32>
    %666 = arith.select %664, %662, %665 : vector<2x256xi1>, vector<2x256xf32>
    %667 = arith.addf %652, %666 : vector<2x256xf32>
    %c227_i32 = arith.constant 227 : i32
    %668 = tpu.dynamic_rotate %15 by %c227_i32 dim 1 : vector<2x256xf32>, i32 -> vector<2x256xf32>
    %c227_i32_138 = arith.constant 227 : i32
    %669 = tpu.dynamic_rotate %13 by %c227_i32_138 dim 1 : vector<2x256xf32>, i32 -> vector<2x256xf32>
    %670 = arith.andi %134, %26 : vector<1x256xi1>
    %c35 = arith.constant 35 : index
    %671 = memref.load %arg1[%c35] : memref<98xf32, #tpu.memory_space<smem>>
    %672 = vector.broadcast %671 : f32 to vector<2x256xf32>
    %673 = arith.mulf %672, %668 : vector<2x256xf32>
    %c84 = arith.constant 84 : index
    %674 = memref.load %arg1[%c84] : memref<98xf32, #tpu.memory_space<smem>>
    %675 = vector.broadcast %674 : f32 to vector<2x256xf32>
    %676 = arith.mulf %675, %669 : vector<2x256xf32>
    %677 = arith.addf %673, %676 : vector<2x256xf32>
    %cst_139 = arith.constant 0.000000e+00 : f32
    %678 = vector.shape_cast %670 : vector<1x256xi1> to vector<1x256xi1>
    %679 = vector.broadcast %678 : vector<1x256xi1> to vector<2x256xi1>
    %680 = vector.broadcast %cst_139 : f32 to vector<2x256xf32>
    %681 = arith.select %679, %677, %680 : vector<2x256xi1>, vector<2x256xf32>
    %682 = arith.addf %667, %681 : vector<2x256xf32>
    %c226_i32 = arith.constant 226 : i32
    %683 = tpu.dynamic_rotate %15 by %c226_i32 dim 1 : vector<2x256xf32>, i32 -> vector<2x256xf32>
    %c226_i32_140 = arith.constant 226 : i32
    %684 = tpu.dynamic_rotate %13 by %c226_i32_140 dim 1 : vector<2x256xf32>, i32 -> vector<2x256xf32>
    %685 = arith.andi %134, %35 : vector<1x256xi1>
    %c36 = arith.constant 36 : index
    %686 = memref.load %arg1[%c36] : memref<98xf32, #tpu.memory_space<smem>>
    %687 = vector.broadcast %686 : f32 to vector<2x256xf32>
    %688 = arith.mulf %687, %683 : vector<2x256xf32>
    %c85 = arith.constant 85 : index
    %689 = memref.load %arg1[%c85] : memref<98xf32, #tpu.memory_space<smem>>
    %690 = vector.broadcast %689 : f32 to vector<2x256xf32>
    %691 = arith.mulf %690, %684 : vector<2x256xf32>
    %692 = arith.addf %688, %691 : vector<2x256xf32>
    %cst_141 = arith.constant 0.000000e+00 : f32
    %693 = vector.shape_cast %685 : vector<1x256xi1> to vector<1x256xi1>
    %694 = vector.broadcast %693 : vector<1x256xi1> to vector<2x256xi1>
    %695 = vector.broadcast %cst_141 : f32 to vector<2x256xf32>
    %696 = arith.select %694, %692, %695 : vector<2x256xi1>, vector<2x256xf32>
    %697 = arith.addf %682, %696 : vector<2x256xf32>
    %c225_i32 = arith.constant 225 : i32
    %698 = tpu.dynamic_rotate %15 by %c225_i32 dim 1 : vector<2x256xf32>, i32 -> vector<2x256xf32>
    %c225_i32_142 = arith.constant 225 : i32
    %699 = tpu.dynamic_rotate %13 by %c225_i32_142 dim 1 : vector<2x256xf32>, i32 -> vector<2x256xf32>
    %700 = arith.andi %134, %44 : vector<1x256xi1>
    %c37 = arith.constant 37 : index
    %701 = memref.load %arg1[%c37] : memref<98xf32, #tpu.memory_space<smem>>
    %702 = vector.broadcast %701 : f32 to vector<2x256xf32>
    %703 = arith.mulf %702, %698 : vector<2x256xf32>
    %c86 = arith.constant 86 : index
    %704 = memref.load %arg1[%c86] : memref<98xf32, #tpu.memory_space<smem>>
    %705 = vector.broadcast %704 : f32 to vector<2x256xf32>
    %706 = arith.mulf %705, %699 : vector<2x256xf32>
    %707 = arith.addf %703, %706 : vector<2x256xf32>
    %cst_143 = arith.constant 0.000000e+00 : f32
    %708 = vector.shape_cast %700 : vector<1x256xi1> to vector<1x256xi1>
    %709 = vector.broadcast %708 : vector<1x256xi1> to vector<2x256xi1>
    %710 = vector.broadcast %cst_143 : f32 to vector<2x256xf32>
    %711 = arith.select %709, %707, %710 : vector<2x256xi1>, vector<2x256xf32>
    %712 = arith.addf %697, %711 : vector<2x256xf32>
    %c224_i32 = arith.constant 224 : i32
    %713 = tpu.dynamic_rotate %15 by %c224_i32 dim 1 : vector<2x256xf32>, i32 -> vector<2x256xf32>
    %c224_i32_144 = arith.constant 224 : i32
    %714 = tpu.dynamic_rotate %13 by %c224_i32_144 dim 1 : vector<2x256xf32>, i32 -> vector<2x256xf32>
    %715 = arith.andi %134, %53 : vector<1x256xi1>
    %c38 = arith.constant 38 : index
    %716 = memref.load %arg1[%c38] : memref<98xf32, #tpu.memory_space<smem>>
    %717 = vector.broadcast %716 : f32 to vector<2x256xf32>
    %718 = arith.mulf %717, %713 : vector<2x256xf32>
    %c87 = arith.constant 87 : index
    %719 = memref.load %arg1[%c87] : memref<98xf32, #tpu.memory_space<smem>>
    %720 = vector.broadcast %719 : f32 to vector<2x256xf32>
    %721 = arith.mulf %720, %714 : vector<2x256xf32>
    %722 = arith.addf %718, %721 : vector<2x256xf32>
    %cst_145 = arith.constant 0.000000e+00 : f32
    %723 = vector.shape_cast %715 : vector<1x256xi1> to vector<1x256xi1>
    %724 = vector.broadcast %723 : vector<1x256xi1> to vector<2x256xi1>
    %725 = vector.broadcast %cst_145 : f32 to vector<2x256xf32>
    %726 = arith.select %724, %722, %725 : vector<2x256xi1>, vector<2x256xf32>
    %727 = arith.addf %712, %726 : vector<2x256xf32>
    %c223_i32 = arith.constant 223 : i32
    %728 = tpu.dynamic_rotate %15 by %c223_i32 dim 1 : vector<2x256xf32>, i32 -> vector<2x256xf32>
    %c223_i32_146 = arith.constant 223 : i32
    %729 = tpu.dynamic_rotate %13 by %c223_i32_146 dim 1 : vector<2x256xf32>, i32 -> vector<2x256xf32>
    %730 = arith.andi %134, %62 : vector<1x256xi1>
    %c39 = arith.constant 39 : index
    %731 = memref.load %arg1[%c39] : memref<98xf32, #tpu.memory_space<smem>>
    %732 = vector.broadcast %731 : f32 to vector<2x256xf32>
    %733 = arith.mulf %732, %728 : vector<2x256xf32>
    %c88 = arith.constant 88 : index
    %734 = memref.load %arg1[%c88] : memref<98xf32, #tpu.memory_space<smem>>
    %735 = vector.broadcast %734 : f32 to vector<2x256xf32>
    %736 = arith.mulf %735, %729 : vector<2x256xf32>
    %737 = arith.addf %733, %736 : vector<2x256xf32>
    %cst_147 = arith.constant 0.000000e+00 : f32
    %738 = vector.shape_cast %730 : vector<1x256xi1> to vector<1x256xi1>
    %739 = vector.broadcast %738 : vector<1x256xi1> to vector<2x256xi1>
    %740 = vector.broadcast %cst_147 : f32 to vector<2x256xf32>
    %741 = arith.select %739, %737, %740 : vector<2x256xi1>, vector<2x256xf32>
    %742 = arith.addf %727, %741 : vector<2x256xf32>
    %c222_i32 = arith.constant 222 : i32
    %743 = tpu.dynamic_rotate %15 by %c222_i32 dim 1 : vector<2x256xf32>, i32 -> vector<2x256xf32>
    %c222_i32_148 = arith.constant 222 : i32
    %744 = tpu.dynamic_rotate %13 by %c222_i32_148 dim 1 : vector<2x256xf32>, i32 -> vector<2x256xf32>
    %745 = arith.andi %134, %71 : vector<1x256xi1>
    %c40 = arith.constant 40 : index
    %746 = memref.load %arg1[%c40] : memref<98xf32, #tpu.memory_space<smem>>
    %747 = vector.broadcast %746 : f32 to vector<2x256xf32>
    %748 = arith.mulf %747, %743 : vector<2x256xf32>
    %c89 = arith.constant 89 : index
    %749 = memref.load %arg1[%c89] : memref<98xf32, #tpu.memory_space<smem>>
    %750 = vector.broadcast %749 : f32 to vector<2x256xf32>
    %751 = arith.mulf %750, %744 : vector<2x256xf32>
    %752 = arith.addf %748, %751 : vector<2x256xf32>
    %cst_149 = arith.constant 0.000000e+00 : f32
    %753 = vector.shape_cast %745 : vector<1x256xi1> to vector<1x256xi1>
    %754 = vector.broadcast %753 : vector<1x256xi1> to vector<2x256xi1>
    %755 = vector.broadcast %cst_149 : f32 to vector<2x256xf32>
    %756 = arith.select %754, %752, %755 : vector<2x256xi1>, vector<2x256xf32>
    %757 = arith.addf %742, %756 : vector<2x256xf32>
    %c221_i32 = arith.constant 221 : i32
    %758 = tpu.dynamic_rotate %15 by %c221_i32 dim 1 : vector<2x256xf32>, i32 -> vector<2x256xf32>
    %c221_i32_150 = arith.constant 221 : i32
    %759 = tpu.dynamic_rotate %13 by %c221_i32_150 dim 1 : vector<2x256xf32>, i32 -> vector<2x256xf32>
    %760 = arith.andi %134, %80 : vector<1x256xi1>
    %c41 = arith.constant 41 : index
    %761 = memref.load %arg1[%c41] : memref<98xf32, #tpu.memory_space<smem>>
    %762 = vector.broadcast %761 : f32 to vector<2x256xf32>
    %763 = arith.mulf %762, %758 : vector<2x256xf32>
    %c90 = arith.constant 90 : index
    %764 = memref.load %arg1[%c90] : memref<98xf32, #tpu.memory_space<smem>>
    %765 = vector.broadcast %764 : f32 to vector<2x256xf32>
    %766 = arith.mulf %765, %759 : vector<2x256xf32>
    %767 = arith.addf %763, %766 : vector<2x256xf32>
    %cst_151 = arith.constant 0.000000e+00 : f32
    %768 = vector.shape_cast %760 : vector<1x256xi1> to vector<1x256xi1>
    %769 = vector.broadcast %768 : vector<1x256xi1> to vector<2x256xi1>
    %770 = vector.broadcast %cst_151 : f32 to vector<2x256xf32>
    %771 = arith.select %769, %767, %770 : vector<2x256xi1>, vector<2x256xf32>
    %772 = arith.addf %757, %771 : vector<2x256xf32>
    %c211_i32 = arith.constant 211 : i32
    %773 = tpu.dynamic_rotate %15 by %c211_i32 dim 1 : vector<2x256xf32>, i32 -> vector<2x256xf32>
    %c211_i32_152 = arith.constant 211 : i32
    %774 = tpu.dynamic_rotate %13 by %c211_i32_152 dim 1 : vector<2x256xf32>, i32 -> vector<2x256xf32>
    %775 = arith.andi %143, %26 : vector<1x256xi1>
    %c42 = arith.constant 42 : index
    %776 = memref.load %arg1[%c42] : memref<98xf32, #tpu.memory_space<smem>>
    %777 = vector.broadcast %776 : f32 to vector<2x256xf32>
    %778 = arith.mulf %777, %773 : vector<2x256xf32>
    %c91 = arith.constant 91 : index
    %779 = memref.load %arg1[%c91] : memref<98xf32, #tpu.memory_space<smem>>
    %780 = vector.broadcast %779 : f32 to vector<2x256xf32>
    %781 = arith.mulf %780, %774 : vector<2x256xf32>
    %782 = arith.addf %778, %781 : vector<2x256xf32>
    %cst_153 = arith.constant 0.000000e+00 : f32
    %783 = vector.shape_cast %775 : vector<1x256xi1> to vector<1x256xi1>
    %784 = vector.broadcast %783 : vector<1x256xi1> to vector<2x256xi1>
    %785 = vector.broadcast %cst_153 : f32 to vector<2x256xf32>
    %786 = arith.select %784, %782, %785 : vector<2x256xi1>, vector<2x256xf32>
    %787 = arith.addf %772, %786 : vector<2x256xf32>
    %c210_i32 = arith.constant 210 : i32
    %788 = tpu.dynamic_rotate %15 by %c210_i32 dim 1 : vector<2x256xf32>, i32 -> vector<2x256xf32>
    %c210_i32_154 = arith.constant 210 : i32
    %789 = tpu.dynamic_rotate %13 by %c210_i32_154 dim 1 : vector<2x256xf32>, i32 -> vector<2x256xf32>
    %790 = arith.andi %143, %35 : vector<1x256xi1>
    %c43 = arith.constant 43 : index
    %791 = memref.load %arg1[%c43] : memref<98xf32, #tpu.memory_space<smem>>
    %792 = vector.broadcast %791 : f32 to vector<2x256xf32>
    %793 = arith.mulf %792, %788 : vector<2x256xf32>
    %c92 = arith.constant 92 : index
    %794 = memref.load %arg1[%c92] : memref<98xf32, #tpu.memory_space<smem>>
    %795 = vector.broadcast %794 : f32 to vector<2x256xf32>
    %796 = arith.mulf %795, %789 : vector<2x256xf32>
    %797 = arith.addf %793, %796 : vector<2x256xf32>
    %cst_155 = arith.constant 0.000000e+00 : f32
    %798 = vector.shape_cast %790 : vector<1x256xi1> to vector<1x256xi1>
    %799 = vector.broadcast %798 : vector<1x256xi1> to vector<2x256xi1>
    %800 = vector.broadcast %cst_155 : f32 to vector<2x256xf32>
    %801 = arith.select %799, %797, %800 : vector<2x256xi1>, vector<2x256xf32>
    %802 = arith.addf %787, %801 : vector<2x256xf32>
    %c209_i32 = arith.constant 209 : i32
    %803 = tpu.dynamic_rotate %15 by %c209_i32 dim 1 : vector<2x256xf32>, i32 -> vector<2x256xf32>
    %c209_i32_156 = arith.constant 209 : i32
    %804 = tpu.dynamic_rotate %13 by %c209_i32_156 dim 1 : vector<2x256xf32>, i32 -> vector<2x256xf32>
    %805 = arith.andi %143, %44 : vector<1x256xi1>
    %c44 = arith.constant 44 : index
    %806 = memref.load %arg1[%c44] : memref<98xf32, #tpu.memory_space<smem>>
    %807 = vector.broadcast %806 : f32 to vector<2x256xf32>
    %808 = arith.mulf %807, %803 : vector<2x256xf32>
    %c93 = arith.constant 93 : index
    %809 = memref.load %arg1[%c93] : memref<98xf32, #tpu.memory_space<smem>>
    %810 = vector.broadcast %809 : f32 to vector<2x256xf32>
    %811 = arith.mulf %810, %804 : vector<2x256xf32>
    %812 = arith.addf %808, %811 : vector<2x256xf32>
    %cst_157 = arith.constant 0.000000e+00 : f32
    %813 = vector.shape_cast %805 : vector<1x256xi1> to vector<1x256xi1>
    %814 = vector.broadcast %813 : vector<1x256xi1> to vector<2x256xi1>
    %815 = vector.broadcast %cst_157 : f32 to vector<2x256xf32>
    %816 = arith.select %814, %812, %815 : vector<2x256xi1>, vector<2x256xf32>
    %817 = arith.addf %802, %816 : vector<2x256xf32>
    %c208_i32 = arith.constant 208 : i32
    %818 = tpu.dynamic_rotate %15 by %c208_i32 dim 1 : vector<2x256xf32>, i32 -> vector<2x256xf32>
    %c208_i32_158 = arith.constant 208 : i32
    %819 = tpu.dynamic_rotate %13 by %c208_i32_158 dim 1 : vector<2x256xf32>, i32 -> vector<2x256xf32>
    %820 = arith.andi %143, %53 : vector<1x256xi1>
    %c45 = arith.constant 45 : index
    %821 = memref.load %arg1[%c45] : memref<98xf32, #tpu.memory_space<smem>>
    %822 = vector.broadcast %821 : f32 to vector<2x256xf32>
    %823 = arith.mulf %822, %818 : vector<2x256xf32>
    %c94 = arith.constant 94 : index
    %824 = memref.load %arg1[%c94] : memref<98xf32, #tpu.memory_space<smem>>
    %825 = vector.broadcast %824 : f32 to vector<2x256xf32>
    %826 = arith.mulf %825, %819 : vector<2x256xf32>
    %827 = arith.addf %823, %826 : vector<2x256xf32>
    %cst_159 = arith.constant 0.000000e+00 : f32
    %828 = vector.shape_cast %820 : vector<1x256xi1> to vector<1x256xi1>
    %829 = vector.broadcast %828 : vector<1x256xi1> to vector<2x256xi1>
    %830 = vector.broadcast %cst_159 : f32 to vector<2x256xf32>
    %831 = arith.select %829, %827, %830 : vector<2x256xi1>, vector<2x256xf32>
    %832 = arith.addf %817, %831 : vector<2x256xf32>
    %c207_i32 = arith.constant 207 : i32
    %833 = tpu.dynamic_rotate %15 by %c207_i32 dim 1 : vector<2x256xf32>, i32 -> vector<2x256xf32>
    %c207_i32_160 = arith.constant 207 : i32
    %834 = tpu.dynamic_rotate %13 by %c207_i32_160 dim 1 : vector<2x256xf32>, i32 -> vector<2x256xf32>
    %835 = arith.andi %143, %62 : vector<1x256xi1>
    %c46 = arith.constant 46 : index
    %836 = memref.load %arg1[%c46] : memref<98xf32, #tpu.memory_space<smem>>
    %837 = vector.broadcast %836 : f32 to vector<2x256xf32>
    %838 = arith.mulf %837, %833 : vector<2x256xf32>
    %c95 = arith.constant 95 : index
    %839 = memref.load %arg1[%c95] : memref<98xf32, #tpu.memory_space<smem>>
    %840 = vector.broadcast %839 : f32 to vector<2x256xf32>
    %841 = arith.mulf %840, %834 : vector<2x256xf32>
    %842 = arith.addf %838, %841 : vector<2x256xf32>
    %cst_161 = arith.constant 0.000000e+00 : f32
    %843 = vector.shape_cast %835 : vector<1x256xi1> to vector<1x256xi1>
    %844 = vector.broadcast %843 : vector<1x256xi1> to vector<2x256xi1>
    %845 = vector.broadcast %cst_161 : f32 to vector<2x256xf32>
    %846 = arith.select %844, %842, %845 : vector<2x256xi1>, vector<2x256xf32>
    %847 = arith.addf %832, %846 : vector<2x256xf32>
    %c206_i32 = arith.constant 206 : i32
    %848 = tpu.dynamic_rotate %15 by %c206_i32 dim 1 : vector<2x256xf32>, i32 -> vector<2x256xf32>
    %c206_i32_162 = arith.constant 206 : i32
    %849 = tpu.dynamic_rotate %13 by %c206_i32_162 dim 1 : vector<2x256xf32>, i32 -> vector<2x256xf32>
    %850 = arith.andi %143, %71 : vector<1x256xi1>
    %c47 = arith.constant 47 : index
    %851 = memref.load %arg1[%c47] : memref<98xf32, #tpu.memory_space<smem>>
    %852 = vector.broadcast %851 : f32 to vector<2x256xf32>
    %853 = arith.mulf %852, %848 : vector<2x256xf32>
    %c96 = arith.constant 96 : index
    %854 = memref.load %arg1[%c96] : memref<98xf32, #tpu.memory_space<smem>>
    %855 = vector.broadcast %854 : f32 to vector<2x256xf32>
    %856 = arith.mulf %855, %849 : vector<2x256xf32>
    %857 = arith.addf %853, %856 : vector<2x256xf32>
    %cst_163 = arith.constant 0.000000e+00 : f32
    %858 = vector.shape_cast %850 : vector<1x256xi1> to vector<1x256xi1>
    %859 = vector.broadcast %858 : vector<1x256xi1> to vector<2x256xi1>
    %860 = vector.broadcast %cst_163 : f32 to vector<2x256xf32>
    %861 = arith.select %859, %857, %860 : vector<2x256xi1>, vector<2x256xf32>
    %862 = arith.addf %847, %861 : vector<2x256xf32>
    %c205_i32 = arith.constant 205 : i32
    %863 = tpu.dynamic_rotate %15 by %c205_i32 dim 1 : vector<2x256xf32>, i32 -> vector<2x256xf32>
    %c205_i32_164 = arith.constant 205 : i32
    %864 = tpu.dynamic_rotate %13 by %c205_i32_164 dim 1 : vector<2x256xf32>, i32 -> vector<2x256xf32>
    %865 = arith.andi %143, %80 : vector<1x256xi1>
    %c48 = arith.constant 48 : index
    %866 = memref.load %arg1[%c48] : memref<98xf32, #tpu.memory_space<smem>>
    %867 = vector.broadcast %866 : f32 to vector<2x256xf32>
    %868 = arith.mulf %867, %863 : vector<2x256xf32>
    %c97 = arith.constant 97 : index
    %869 = memref.load %arg1[%c97] : memref<98xf32, #tpu.memory_space<smem>>
    %870 = vector.broadcast %869 : f32 to vector<2x256xf32>
    %871 = arith.mulf %870, %864 : vector<2x256xf32>
    %872 = arith.addf %868, %871 : vector<2x256xf32>
    %cst_165 = arith.constant 0.000000e+00 : f32
    %873 = vector.shape_cast %865 : vector<1x256xi1> to vector<1x256xi1>
    %874 = vector.broadcast %873 : vector<1x256xi1> to vector<2x256xi1>
    %875 = vector.broadcast %cst_165 : f32 to vector<2x256xf32>
    %876 = arith.select %874, %872, %875 : vector<2x256xi1>, vector<2x256xf32>
    %877 = arith.addf %862, %876 : vector<2x256xf32>
    %878 = arith.negf %877 : vector<2x256xf32>
    %879 = math.exp %878 : vector<2x256xf32>
    %cst_166 = arith.constant 1.000000e+00 : f32
    %880 = vector.broadcast %cst_166 : f32 to vector<2x256xf32>
    %881 = arith.addf %880, %879 : vector<2x256xf32>
    %882 = arith.divf %880, %881 : vector<2x256xf32>
    %c0_167 = arith.constant 0 : index
    %c0_168 = arith.constant 0 : index
    %c0_169 = arith.constant 0 : index
    %883 = vector.load %arg4[%c0_167, %c0_168, %c0_169] : memref<2x4x256xf32, #tpu.memory_space<vmem>>, vector<2x1x256xf32>
    %884 = vector.shape_cast %883 : vector<2x1x256xf32> to vector<2x256xf32>
    %885 = arith.mulf %884, %882 : vector<2x256xf32>
    %c0_170 = arith.constant 0 : index
    %c0_171 = arith.constant 0 : index
    %c0_172 = arith.constant 0 : index
    %886 = vector.load %arg5[%c0_170, %c0_171, %c0_172] : memref<2x4x256xf32, #tpu.memory_space<vmem>>, vector<2x1x256xf32>
    %887 = vector.shape_cast %886 : vector<2x1x256xf32> to vector<2x256xf32>
    %888 = vector.shape_cast %885 : vector<2x256xf32> to vector<2x1x256xf32>
    tpu.vector_store %arg5[%c0_170, %c0_171, %c0_172], %888 {strides = array<i32>} : memref<2x4x256xf32, #tpu.memory_space<vmem>>, vector<2x1x256xf32>,
    %c0_173 = arith.constant 0 : index
    %c1_174 = arith.constant 1 : index
    %c0_175 = arith.constant 0 : index
    %889 = vector.load %arg4[%c0_173, %c1_174, %c0_175] : memref<2x4x256xf32, #tpu.memory_space<vmem>>, vector<2x1x256xf32>
    %890 = vector.shape_cast %889 : vector<2x1x256xf32> to vector<2x256xf32>
    %891 = arith.mulf %890, %882 : vector<2x256xf32>
    %c0_176 = arith.constant 0 : index
    %c1_177 = arith.constant 1 : index
    %c0_178 = arith.constant 0 : index
    %892 = vector.load %arg5[%c0_176, %c1_177, %c0_178] : memref<2x4x256xf32, #tpu.memory_space<vmem>>, vector<2x1x256xf32>
    %893 = vector.shape_cast %892 : vector<2x1x256xf32> to vector<2x256xf32>
    %894 = vector.shape_cast %891 : vector<2x256xf32> to vector<2x1x256xf32>
    tpu.vector_store %arg5[%c0_176, %c1_177, %c0_178], %894 {strides = array<i32>} : memref<2x4x256xf32, #tpu.memory_space<vmem>>, vector<2x1x256xf32>,
    %c0_179 = arith.constant 0 : index
    %c2_180 = arith.constant 2 : index
    %c0_181 = arith.constant 0 : index
    %895 = vector.load %arg4[%c0_179, %c2_180, %c0_181] : memref<2x4x256xf32, #tpu.memory_space<vmem>>, vector<2x1x256xf32>
    %896 = vector.shape_cast %895 : vector<2x1x256xf32> to vector<2x256xf32>
    %897 = arith.mulf %896, %882 : vector<2x256xf32>
    %c0_182 = arith.constant 0 : index
    %c2_183 = arith.constant 2 : index
    %c0_184 = arith.constant 0 : index
    %898 = vector.load %arg5[%c0_182, %c2_183, %c0_184] : memref<2x4x256xf32, #tpu.memory_space<vmem>>, vector<2x1x256xf32>
    %899 = vector.shape_cast %898 : vector<2x1x256xf32> to vector<2x256xf32>
    %900 = vector.shape_cast %897 : vector<2x256xf32> to vector<2x1x256xf32>
    tpu.vector_store %arg5[%c0_182, %c2_183, %c0_184], %900 {strides = array<i32>} : memref<2x4x256xf32, #tpu.memory_space<vmem>>, vector<2x1x256xf32>,
    %c0_185 = arith.constant 0 : index
    %c3_186 = arith.constant 3 : index
    %c0_187 = arith.constant 0 : index
    %901 = vector.load %arg4[%c0_185, %c3_186, %c0_187] : memref<2x4x256xf32, #tpu.memory_space<vmem>>, vector<2x1x256xf32>
    %902 = vector.shape_cast %901 : vector<2x1x256xf32> to vector<2x256xf32>
    %903 = arith.mulf %902, %882 : vector<2x256xf32>
    %c0_188 = arith.constant 0 : index
    %c3_189 = arith.constant 3 : index
    %c0_190 = arith.constant 0 : index
    %904 = vector.load %arg5[%c0_188, %c3_189, %c0_190] : memref<2x4x256xf32, #tpu.memory_space<vmem>>, vector<2x1x256xf32>
    %905 = vector.shape_cast %904 : vector<2x1x256xf32> to vector<2x256xf32>
    %906 = vector.shape_cast %903 : vector<2x256xf32> to vector<2x1x256xf32>
    tpu.vector_store %arg5[%c0_188, %c3_189, %c0_190], %906 {strides = array<i32>} : memref<2x4x256xf32, #tpu.memory_space<vmem>>, vector<2x1x256xf32>,
    return
  }
  func.func @transform_0(%arg0: i32) -> i32 {
    %c0_i32 = arith.constant 0 : i32
    %c0_i32_0 = arith.constant 0 : i32
    return %c0_i32 : i32
  }
  func.func @transform_1(%arg0: i32) -> (i32, i32) {
    %c0_i32 = arith.constant 0 : i32
    %c0_i32_0 = arith.constant 0 : i32
    %c0_i32_1 = arith.constant 0 : i32
    return %c0_i32, %c0_i32_0 : i32, i32
  }
  func.func @transform_2(%arg0: i32) -> (i32, i32) {
    %c0_i32 = arith.constant 0 : i32
    %c0_i32_0 = arith.constant 0 : i32
    %c0_i32_1 = arith.constant 0 : i32
    return %c0_i32, %c0_i32_0 : i32, i32
  }
  func.func @transform_3(%arg0: i32) -> (i32, i32, i32) {
    %c0_i32 = arith.constant 0 : i32
    %c0_i32_0 = arith.constant 0 : i32
    %c0_i32_1 = arith.constant 0 : i32
    return %arg0, %c0_i32, %c0_i32_0 : i32, i32, i32
  }
  func.func @transform_4(%arg0: i32) -> (i32, i32, i32) {
    %c0_i32 = arith.constant 0 : i32
    %c0_i32_0 = arith.constant 0 : i32
    %c0_i32_1 = arith.constant 0 : i32
    return %arg0, %c0_i32, %c0_i32_0 : i32, i32, i32
  }
}

</mosaic_0001>

<bundles_post_ra>
// kernel: tpu_custom_call.1
= control target key start
LH: loop header
LB: loop body
LE: loop exit
PB: predicated region body
PF: predicated region fallthrough
CT: control target
= control target key end

     0   :  { %9 = vsyncpa [#allocation5], 0  ;;  %s4579_s0 = inlined_call_operand.hbm [shape: f32[98], index: 0, kind: input, shape index: {}]   ;;  %s4580_s1 = inlined_call_operand.hbm [shape: s32[1,256], index: 1, kind: input, shape index: {}]   ;;  %s4581_s2 = inlined_call_operand.hbm [shape: s32[1,256], index: 2, kind: input, shape index: {}]   ;;  %s4582_s3 = inlined_call_operand.hbm [shape: f32[2,4,256], index: 3, kind: input, shape index: {}]   ;;  %s4583_s4 = inlined_call_operand.hbm [shape: f32[2,4,256], index: 4, kind: output, shape index: {}]  }
   0x1   :  { %10 = vsyncpa [#allocation3], 0 }
   0x2   :  { %11 = vsyncpa [#allocation8], 0  ;;  %s38_s17 = sshll.u32 %s4581_s2, 4  ;;  %s39_s17 = int_to_ptr.hbm [resolvable:$true] %s38_s17 }
   0x3   :  { %12 = vsyncpa [#allocation4], 0  ;;  %s2845_s18 = smov [#allocation7]   ;;  %s18_s22 = sshll.u32 %s4579_s0, 4  ;;  %s19_s22 = int_to_ptr.hbm [resolvable:$true] %s18_s22 }
   0x4   :  { %s40_s19 = sshll.u32 %s2845_s18, 4  ;;  %s2846_s23 = smov [#allocation2]   ;;  %s41_s19 = int_to_ptr.vmem [resolvable:$true] %s40_s19 }
   0x5   :  { %43 = dma.hbm_to_vmem [thread:$0]  %s39_s17, 32, %s41_s19, [#allocation8]  }
   0x6   :  { %21 = dma.hbm_to_smem %s19_s22, 16, %s2846_s23, [#allocation5]  }
   0x7   :  { %s27_s26 = sshll.u32 %s4580_s1, 4  ;;  %s2847_s27 = smov [#allocation6]   ;;  %s28_s26 = int_to_ptr.hbm [resolvable:$true] %s27_s26 }
   0x8   :  { %s29_s2 = sshll.u32 %s2847_s27, 4  ;;  %s48_s30 = sshll.u32 %s4582_s3, 4  ;;  %s30_s2 = int_to_ptr.vmem [resolvable:$true] %s29_s2  ;;  %s49_s30 = int_to_ptr.hbm [resolvable:$true] %s48_s30 }
   0x9   :  { %32 = dma.hbm_to_vmem [thread:$0]  %s28_s26, 32, %s30_s2, [#allocation3]  }
   0xa   :  { %s2848_s5 = smov [#allocation9]   ;;  %s2849_s6 = smov 128  }
   0xb   :  { %s50_s0 = sshll.u32 %s2848_s5, 4  ;;  %s2850_s7 = smov 8   ;;  %s51_s0 = int_to_ptr.vmem [resolvable:$true] %s50_s0 }
   0xc   :  { %56 = dma.hbm_to_vmem [thread:$0]  %s49_s30, 256, %s51_s0, [#allocation8], %s2849_s6, %s2849_s6, %s2850_s7  }
   0xd   :  { %2837 = dma.done.wait [#allocation5], 16  }
   0xe   :  { %2838 = vsyncadd [#allocation5], 4294967280 }
   0xf   :  { %2839 = dma.done.wait [#allocation3], 32  }
  0x10   :  { %2840 = vsyncadd [#allocation3], 4294967264 }
  0x11   :  { %2841 = dma.done.wait [#allocation8], 288  }
  0x12   :  { %2842 = vsyncadd [#allocation8], 4294967008 }
  0x13   :  { %73 = sfence }
  0x14   :  { %v74_v0 = vld [vmem:[#allocation9] ss:$4 sm:$0x3]  ;;  %v76_v1 = vld [vmem:[#allocation9 + $0x8] ss:$4 sm:$0x3] }
  0x15   :  { %v2851_v2 = vmov 4.0   ;;  %v78_v3 = vld [vmem:[#allocation9 + $0x1] ss:$4 sm:$0x3]  ;;  %s2852_s1 = smov 51   ;;  %s2853_s3 = smov 50  }
  0x16   :  { %2715 = vrcp.f32 %v2851_v2  ;;  %v80_v4 = vld [vmem:[#allocation9 + $0x9] ss:$4 sm:$0x3]  ;;  %v81_v5 = vadd.f32 %v78_v3, %v74_v0  ;;  %v86_v7 = vld [vmem:[#allocation9 + $0x2] ss:$4 sm:$0x3]  ;;  %v83_v21 = vmax.f32 %v74_v0, %v78_v3 }
  0x17   :  { %v82_v6 = vadd.f32 %v80_v4, %v76_v1  ;;  %v88_v8 = vld [vmem:[#allocation9 + $0xa] ss:$4 sm:$0x3]  ;;  %v94_v13 = vld [vmem:[#allocation9 + $0x3] ss:$4 sm:$0x3]  ;;  %v84_v24 = vmax.f32 %v76_v1, %v80_v4 }
  0x18   :  { %v89_v11 = vadd.f32 %v86_v7, %v81_v5  ;;  %v96_v14 = vld [vmem:[#allocation9 + $0xb] ss:$4 sm:$0x3]  ;;  %v91_v25 = vmax.f32 %v83_v21, %v86_v7  ;;  %s2854_s8 = smov 49   ;;  %s2855_s9 = smov 48  }
  0x19   :  { %v90_v12 = vadd.f32 %v88_v8, %v82_v6  ;;  %v92_v26 = vmax.f32 %v84_v24, %v88_v8  ;;  %s2856_s10 = smov 47   ;;  %s2857_s11 = smov 46  }
  0x1a   :  { %v97_v17 = vadd.f32 %v94_v13, %v89_v11  ;;  %v2948_v27 = vmax.f32 %v91_v25, %v94_v13  ;;  %s2858_s12 = smov 45   ;;  %s2859_s13 = smov 35  }
  0x1b   :  { %v98_v18 = vadd.f32 %v96_v14, %v90_v12  ;;  %v2950_v28 = vmax.f32 %v92_v26, %v96_v14  ;;  %s2860_s14 = smov 34   ;;  %s2861_s15 = smov 33  }
  0x1c   :  { %v2716_v9 = vpop.eup %2715  ;;  %s2862_s16 = smov 32   ;;  %s2863_s17 = smov 31  }
  0x1d   :  { %v102_v10 = vmul.f32 4.0, %v2716_v9  ;;  %vm106_vm0 = vweird.f32 %v2716_v9  ;;  %s2864_s18 = smov 30   ;;  %s2865_s19 = smov 29  }
  0x1e   :  { %s2866_s20 = smov 19   ;;  %s3061_s21 = sld [smem:[#allocation2]] }
  0x1f   :  { %v103_v15 = vsub.f32 1.0, %v102_v10  ;;  %s2867_s22 = smov 18   ;;  %s3067_s23 = sld [smem:[#allocation2 + $0x31]] }
  0x20   :  { %s3080_s24 = sld [smem:[#allocation2 + $0x1]]  ;;  %s2869_s29 = smov 17  }
  0x21   :  { %v104_v16 = vmul.f32 %v2716_v9, %v103_v15  ;;  %s3087_s25 = sld [smem:[#allocation2 + $0x32]] }
  0x22   :  { %s3115_s26 = sld [smem:[#allocation2 + $0x2]] }
  0x23   :  { %v105_v19 = vadd.f32 %v2716_v9, %v104_v16  ;;  %s3123_s27 = sld [smem:[#allocation2 + $0x33]] }
  0x24   :  { %s3167_s2 = sld [smem:[#allocation2 + $0x3]] }
  0x25   :  { %v107_v20 = vsel %vm106_vm0, %v2716_v9, %v105_v19  ;;  %s3169_s28 = sld [smem:[#allocation2 + $0x34]] }
  0x26   :  { %v2942_v22 = vmul.f32 %v107_v20, %v97_v17  ;;  %v2944_v23 = vmul.f32 %v107_v20, %v98_v18  ;;  %s3251_s30 = sld [smem:[#allocation2 + $0x4]] }
  0x27   :  { %s3262_s5 = sld [smem:[#allocation2 + $0x35]] }
  0x28   :  { %168 = vst [vmem:[#allocation1] ss:$9 sm:$0xff] %v2942_v22  ;;  %s3299_s0 = sld [smem:[#allocation2 + $0x5]] }
  0x29   :  { %170 = vst [vmem:[#allocation1 + $0x1] ss:$9 sm:$0xff] %v2944_v23 }
  0x30   :  { %v171_v29 = vld [vmem:[#allocation1] sm:$0xff]  ;;  %v172_v30 = vld [vmem:[#allocation1 + $0x9] sm:$0xff] }
  0x31   :  { %175 = vrot.lane.b32.xlu0 %v171_v29, %s2852_s1  ;;  %186 = vst [vmem:[#allocation1] ss:$9 sm:$0xff] %v2948_v27 }
  0x32   :  { %188 = vst [vmem:[#allocation1 + $0x1] ss:$9 sm:$0xff] %v2950_v28 }
  0x39   :  { %v189_v31 = vld [vmem:[#allocation1] sm:$0xff]  ;;  %177 = vrot.lane.b32.xlu0 %v172_v30, %s2852_s1  ;;  %v190_v32 = vld [vmem:[#allocation1 + $0x9] sm:$0xff] }
  0x3a   :  { %193 = vrot.lane.b32.xlu1 %v189_v31, %s2852_s1  ;;  %219 = vst [vmem:[#allocation1] ss:$9 sm:$0xff] %v2942_v22 }
  0x3b   :  { %221 = vst [vmem:[#allocation1 + $0x1] ss:$9 sm:$0xff] %v2944_v23 }
  0x42   :  { %195 = vrot.lane.b32.xlu1 %v190_v32, %s2852_s1  ;;  %v222_v33 = vld [vmem:[#allocation1] sm:$0xff]  ;;  %v223_v34 = vld [vmem:[#allocation1 + $0x9] sm:$0xff]  ;;  %s3309_s1 = sld [smem:[#allocation2 + $0x36]] }
  0x43   :  { %233 = vst [vmem:[#allocation1] ss:$9 sm:$0xff] %v2948_v27  ;;  %226 = vrot.lane.b32.xlu2 %v222_v33, %s2853_s3 }
  0x44   :  { %235 = vst [vmem:[#allocation1 + $0x1] ss:$9 sm:$0xff] %v2950_v28 }
  0x4b   :  { %v236_v35 = vld [vmem:[#allocation1] sm:$0xff]  ;;  %v237_v36 = vld [vmem:[#allocation1 + $0x9] sm:$0xff]  ;;  %228 = vrot.lane.b32.xlu2 %v223_v34, %s2853_s3 }
  0x4c   :  { %240 = vrot.lane.b32.xlu0 %v236_v35, %s2853_s3  ;;  %242 = vrot.lane.b32.xlu1 %v237_v36, %s2853_s3  ;;  %266 = vst [vmem:[#allocation1] ss:$9 sm:$0xff] %v2942_v22  ;;  %s3343_s3 = sld [smem:[#allocation2 + $0x6]] }
  0x4d   :  { %268 = vst [vmem:[#allocation1 + $0x1] ss:$9 sm:$0xff] %v2944_v23 }
  0x54   :  { %v270_v37 = vld [vmem:[#allocation1 + $0x9] sm:$0xff]  ;;  %v269_v38 = vld [vmem:[#allocation1] sm:$0xff] }
  0x55   :  { %275 = vrot.lane.b32.xlu0 %v270_v37, %s2854_s8  ;;  %280 = vst [vmem:[#allocation1] ss:$9 sm:$0xff] %v2948_v27  ;;  %273 = vrot.lane.b32.xlu2 %v269_v38, %s2854_s8 }
  0x56   :  { %282 = vst [vmem:[#allocation1 + $0x1] ss:$9 sm:$0xff] %v2950_v28 }
  0x5d   :  { %v283_v39 = vld [vmem:[#allocation1] sm:$0xff]  ;;  %v284_v40 = vld [vmem:[#allocation1 + $0x9] sm:$0xff] }
  0x5e   :  { %287 = vrot.lane.b32.xlu1 %v283_v39, %s2854_s8  ;;  %313 = vst [vmem:[#allocation1] ss:$9 sm:$0xff] %v2942_v22  ;;  %289 = vrot.lane.b32.xlu2 %v284_v40, %s2854_s8  ;;  %s2870_s8 = smov 16  }
  0x5f   :  { %315 = vst [vmem:[#allocation1 + $0x1] ss:$9 sm:$0xff] %v2944_v23 }
  0x66   :  { %v316_v41 = vld [vmem:[#allocation1] sm:$0xff]  ;;  %v317_v42 = vld [vmem:[#allocation1 + $0x9] sm:$0xff] }
  0x67   :  { %320 = vrot.lane.b32.xlu0 %v316_v41, %s2855_s9  ;;  %322 = vrot.lane.b32.xlu1 %v317_v42, %s2855_s9  ;;  %327 = vst [vmem:[#allocation1] ss:$9 sm:$0xff] %v2948_v27 }
  0x68   :  { %329 = vst [vmem:[#allocation1 + $0x1] ss:$9 sm:$0xff] %v2950_v28 }
  0x6f   :  { %v331_v43 = vld [vmem:[#allocation1 + $0x9] sm:$0xff]  ;;  %v330_v44 = vld [vmem:[#allocation1] sm:$0xff] }
  0x70   :  { %336 = vrot.lane.b32.xlu0 %v331_v43, %s2855_s9  ;;  %360 = vst [vmem:[#allocation1] ss:$9 sm:$0xff] %v2942_v22  ;;  %334 = vrot.lane.b32.xlu2 %v330_v44, %s2855_s9  ;;  %s3356_s9 = sld [smem:[#allocation2 + $0x37]] }
  0x71   :  { %362 = vst [vmem:[#allocation1 + $0x1] ss:$9 sm:$0xff] %v2944_v23 }
  0x78   :  { %v363_v45 = vld [vmem:[#allocation1] sm:$0xff]  ;;  %v364_v46 = vld [vmem:[#allocation1 + $0x9] sm:$0xff] }
  0x79   :  { %367 = vrot.lane.b32.xlu1 %v363_v45, %s2856_s10  ;;  %374 = vst [vmem:[#allocation1] ss:$9 sm:$0xff] %v2948_v27  ;;  %369 = vrot.lane.b32.xlu2 %v364_v46, %s2856_s10 }
  0x7a   :  { %376 = vst [vmem:[#allocation1 + $0x1] ss:$9 sm:$0xff] %v2950_v28 }
  0x81   :  { %v377_v47 = vld [vmem:[#allocation1] sm:$0xff]  ;;  %v378_v48 = vld [vmem:[#allocation1 + $0x9] sm:$0xff] }
  0x82   :  { %381 = vrot.lane.b32.xlu0 %v377_v47, %s2856_s10  ;;  %383 = vrot.lane.b32.xlu1 %v378_v48, %s2856_s10  ;;  %407 = vst [vmem:[#allocation1] ss:$9 sm:$0xff] %v2942_v22  ;;  %s3402_s10 = sld [smem:[#allocation2 + $0x7]] }
  0x83   :  { %409 = vst [vmem:[#allocation1 + $0x1] ss:$9 sm:$0xff] %v2944_v23 }
  0x8a   :  { %v411_v49 = vld [vmem:[#allocation1 + $0x9] sm:$0xff]  ;;  %v410_v50 = vld [vmem:[#allocation1] sm:$0xff] }
  0x8b   :  { %416 = vrot.lane.b32.xlu0 %v411_v49, %s2857_s11  ;;  %421 = vst [vmem:[#allocation1] ss:$9 sm:$0xff] %v2948_v27  ;;  %414 = vrot.lane.b32.xlu2 %v410_v50, %s2857_s11 }
  0x8c   :  { %423 = vst [vmem:[#allocation1 + $0x1] ss:$9 sm:$0xff] %v2950_v28 }
  0x93   :  { %v424_v51 = vld [vmem:[#allocation1] sm:$0xff]  ;;  %v425_v52 = vld [vmem:[#allocation1 + $0x9] sm:$0xff] }
  0x94   :  { %428 = vrot.lane.b32.xlu1 %v424_v51, %s2857_s11  ;;  %454 = vst [vmem:[#allocation1] ss:$9 sm:$0xff] %v2942_v22  ;;  %430 = vrot.lane.b32.xlu2 %v425_v52, %s2857_s11  ;;  %v3056_v51 = vld [vmem:[#allocation7] sm:$0x3]  ;;  %v3058_v52 = vld [vmem:[#allocation6] sm:$0x3] }
  0x95   :  { %456 = vst [vmem:[#allocation1 + $0x1] ss:$9 sm:$0xff] %v2944_v23  ;;  %s3408_s11 = sld [smem:[#allocation2 + $0x38]] }
  0x9c   :  { %v457_v53 = vld [vmem:[#allocation1] sm:$0xff]  ;;  %v458_v54 = vld [vmem:[#allocation1 + $0x9] sm:$0xff] }
  0x9d   :  { %461 = vrot.lane.b32.xlu0 %v457_v53, %s2858_s12  ;;  %463 = vrot.lane.b32.xlu1 %v458_v54, %s2858_s12  ;;  %468 = vst [vmem:[#allocation1] ss:$9 sm:$0xff] %v2948_v27  ;;  %v3004_v14 = vpop.permute.xlu2 %226  ;;  %v179_v53 = vlaneseq  ;;  %v112_v54 = vadd.s32 4294967293, %v3056_v51 }
  0x9e   :  { %470 = vst [vmem:[#allocation1 + $0x1] ss:$9 sm:$0xff] %v2950_v28 }
  0x9f   :  { %vm113_vm1 = vcmp.ge.s32.totalorder %v112_v54, 0  ;;  %vm114_vm2 = vcmp.lt.s32.totalorder %v112_v54, 16 }
  0xa0   :  { %vm3083_vm6 = vmand %vm113_vm1, %vm114_vm2 }
  0xa3   :  { %v2996_v9 = vpop.permute.xlu0 %175 }
  0xa5   :  { %v472_v55 = vld [vmem:[#allocation1 + $0x9] sm:$0xff]  ;;  %v471_v56 = vld [vmem:[#allocation1] sm:$0xff]  ;;  %v3010_v18 = vpop.permute.xlu2 %228 }
  0xa6   :  { %477 = vrot.lane.b32.xlu0 %v472_v55, %s2858_s12  ;;  %501 = vst [vmem:[#allocation1] ss:$9 sm:$0xff] %v2942_v22  ;;  %475 = vrot.lane.b32.xlu2 %v471_v56, %s2858_s12  ;;  %s3452_s12 = sld [smem:[#allocation2 + $0x8]] }
  0xa7   :  { %503 = vst [vmem:[#allocation1 + $0x1] ss:$9 sm:$0xff] %v2944_v23 }
  0xab   :  { %v3002_v13 = vpop.permute.xlu0 %177 }
  0xac   :  { %v3000_v12 = vpop.permute.xlu1 %193 }
  0xae   :  { %v504_v57 = vld [vmem:[#allocation1] sm:$0xff]  ;;  %v505_v58 = vld [vmem:[#allocation1 + $0x9] sm:$0xff] }
  0xaf   :  { %508 = vrot.lane.b32.xlu1 %v504_v57, %s2859_s13  ;;  %515 = vst [vmem:[#allocation1] ss:$9 sm:$0xff] %v2948_v27  ;;  %510 = vrot.lane.b32.xlu2 %v505_v58, %s2859_s13  ;;  %v3020_v26 = vpop.permute.xlu2 %273  ;;  %v139_v57 = vadd.s32 4294967293, %v3058_v52 }
  0xb0   :  { %517 = vst [vmem:[#allocation1 + $0x1] ss:$9 sm:$0xff] %v2950_v28 }
  0xb1   :  { %vm140_vm3 = vcmp.ge.s32.totalorder %v139_v57, 0  ;;  %vm141_vm4 = vcmp.lt.s32.totalorder %v139_v57, 16 }
  0xb2   :  { %vm3089_vm9 = vmand %vm140_vm3, %vm141_vm4  ;;  %vm124_vm3 = vcmp.ge.s32.totalorder %v3056_v51, 0  ;;  %vm125_vm4 = vcmp.lt.s32.totalorder %v3056_v51, 16 }
  0xb3   :  { %vm199_vm11 = vmand %vm3089_vm9, %vm3083_vm6 }
  0xb4   :  { %v3008_v17 = vpop.permute.xlu1 %195 }
  0xb7   :  { %v518_v59 = vld [vmem:[#allocation1] sm:$0xff]  ;;  %v519_v60 = vld [vmem:[#allocation1 + $0x9] sm:$0xff] }
  0xb8   :  { %522 = vrot.lane.b32.xlu0 %v518_v59, %s2859_s13  ;;  %524 = vrot.lane.b32.xlu1 %v519_v60, %s2859_s13  ;;  %548 = vst [vmem:[#allocation1] ss:$9 sm:$0xff] %v2942_v22  ;;  %v3026_v32 = vpop.permute.xlu2 %289  ;;  %v3073_v59 = vand.u32 127, %v179_v53  ;;  %v116_v60 = vadd.s32 4294967294, %v3056_v51  ;;  %s3463_s13 = sld [smem:[#allocation2 + $0x39]] }
  0xb9   :  { %550 = vst [vmem:[#allocation1 + $0x1] ss:$9 sm:$0xff] %v2944_v23 }
  0xba   :  { %vm181_vm5 = vcmp.lt.s32.totalorder %v3073_v59, 51  ;;  %vm117_vm7 = vcmp.ge.s32.totalorder %v116_v60, 0  ;;  %vm118_vm8 = vcmp.lt.s32.totalorder %v116_v60, 16  ;;  %vm230_vm12 = vcmp.lt.s32.totalorder %v3073_v59, 50 }
  0xbb   :  { %vm3104_vm10 = vmand %vm117_vm7, %vm118_vm8  ;;  %vm277_vm1 = vcmp.lt.s32.totalorder %v3073_v59, 49 }
  0xbc   :  { %vm246_vm13 = vmand %vm3089_vm9, %vm3104_vm10 }
  0xbd   :  { %vm3213_vm7 = vmand %vm124_vm3, %vm125_vm4 }
  0xbe   :  { %v3012_v19 = vpop.permute.xlu0 %240  ;;  %v3016_v24 = vpop.permute.xlu1 %242 }
  0xc0   :  { %v552_v61 = vld [vmem:[#allocation1 + $0x9] sm:$0xff]  ;;  %v551_v62 = vld [vmem:[#allocation1] sm:$0xff] }
  0xc1   :  { %557 = vrot.lane.b32.xlu0 %v552_v61, %s2860_s14  ;;  %562 = vst [vmem:[#allocation1] ss:$9 sm:$0xff] %v2948_v27  ;;  %555 = vrot.lane.b32.xlu2 %v551_v62, %s2860_s14 }
  0xc2   :  { %564 = vst [vmem:[#allocation1 + $0x1] ss:$9 sm:$0xff] %v2950_v28 }
  0xc7   :  { %v3018_v25 = vpop.permute.xlu0 %275 }
  0xc9   :  { %v565_v63 = vld [vmem:[#allocation1] sm:$0xff]  ;;  %v566_v0 = vld [vmem:[#allocation1 + $0x9] sm:$0xff] }
  0xca   :  { %569 = vrot.lane.b32.xlu1 %v565_v63, %s2860_s14  ;;  %595 = vst [vmem:[#allocation1] ss:$9 sm:$0xff] %v2942_v22  ;;  %571 = vrot.lane.b32.xlu2 %v566_v0, %s2860_s14  ;;  %v3036_v40 = vpop.permute.xlu2 %334  ;;  %s2871_s14 = smov 15  }
  0xcb   :  { %597 = vst [vmem:[#allocation1 + $0x1] ss:$9 sm:$0xff] %v2944_v23 }
  0xd0   :  { %v3024_v31 = vpop.permute.xlu1 %287 }
  0xd2   :  { %v598_v1 = vld [vmem:[#allocation1] sm:$0xff]  ;;  %v599_v2 = vld [vmem:[#allocation1 + $0x9] sm:$0xff] }
  0xd3   :  { %602 = vrot.lane.b32.xlu0 %v598_v1, %s2861_s15  ;;  %604 = vrot.lane.b32.xlu1 %v599_v2, %s2861_s15  ;;  %609 = vst [vmem:[#allocation1] ss:$9 sm:$0xff] %v2948_v27  ;;  %v3043_v44 = vpop.permute.xlu2 %369  ;;  %v120_v1 = vadd.s32 4294967295, %v3056_v51 }
  0xd4   :  { %611 = vst [vmem:[#allocation1 + $0x1] ss:$9 sm:$0xff] %v2950_v28 }
  0xd5   :  { %vm121_vm14 = vcmp.ge.s32.totalorder %v120_v1, 0  ;;  %vm122_vm15 = vcmp.lt.s32.totalorder %v120_v1, 16  ;;  %v295_v1 = vstv %s3115_s26  ;;  %s2585_s26 = sld [smem:[#allocation2 + $0x3e]] }
  0xd6   :  { %vm3160_vm0 = vmand %vm121_vm14, %vm122_vm15 }
  0xd7   :  { %vm293_vm2 = vmand %vm3089_vm9, %vm3160_vm0 }
  0xd8   :  { %vm340_vm14 = vmand %vm3089_vm9, %vm3213_vm7 }
  0xd9   :  { %v3028_v33 = vpop.permute.xlu0 %320  ;;  %v3032_v36 = vpop.permute.xlu1 %322 }
  0xdb   :  { %v613_v3 = vld [vmem:[#allocation1 + $0x9] sm:$0xff]  ;;  %v612_v4 = vld [vmem:[#allocation1] sm:$0xff] }
  0xdc   :  { %618 = vrot.lane.b32.xlu0 %v613_v3, %s2861_s15  ;;  %642 = vst [vmem:[#allocation1] ss:$9 sm:$0xff] %v2942_v22  ;;  %616 = vrot.lane.b32.xlu2 %v612_v4, %s2861_s15  ;;  %v201_v4 = vstv %s3061_s21  ;;  %s3520_s15 = sld [smem:[#allocation2 + $0x9]]  ;;  %s2872_s21 = smov 14  }
  0xdd   :  { %644 = vst [vmem:[#allocation1 + $0x1] ss:$9 sm:$0xff] %v2944_v23 }
  0xe2   :  { %v3034_v39 = vpop.permute.xlu0 %336 }
  0xe4   :  { %v645_v5 = vld [vmem:[#allocation1] sm:$0xff]  ;;  %v646_v6 = vld [vmem:[#allocation1 + $0x9] sm:$0xff] }
  0xe5   :  { %649 = vrot.lane.b32.xlu1 %v645_v5, %s2862_s16  ;;  %656 = vst [vmem:[#allocation1] ss:$9 sm:$0xff] %v2948_v27  ;;  %651 = vrot.lane.b32.xlu2 %v646_v6, %s2862_s16  ;;  %v3054_v50 = vpop.permute.xlu2 %414  ;;  %v183_v5 = vsel %vm181_vm5, %v3002_v13, %v2996_v9  ;;  %v205_v6 = vstv %s3067_s23  ;;  %s3669_s23 = sld [smem:[#allocation2 + $0x3d]] }
  0xe6   :  { %658 = vst [vmem:[#allocation1 + $0x1] ss:$9 sm:$0xff] %v2950_v28 }
  0xeb   :  { %v3040_v43 = vpop.permute.xlu1 %367 }
  0xed   :  { %v659_v7 = vld [vmem:[#allocation1] sm:$0xff]  ;;  %v660_v8 = vld [vmem:[#allocation1 + $0x9] sm:$0xff] }
  0xee   :  { %663 = vrot.lane.b32.xlu0 %v659_v7, %s2862_s16  ;;  %665 = vrot.lane.b32.xlu1 %v660_v8, %s2862_s16  ;;  %689 = vst [vmem:[#allocation1] ss:$9 sm:$0xff] %v2942_v22  ;;  %v3076_v61 = vpop.permute.xlu2 %430  ;;  %v198_v7 = vsel %vm181_vm5, %v3008_v17, %v3000_v12  ;;  %s3535_s16 = sld [smem:[#allocation2 + $0x3a]] }
  0xef   :  { %691 = vst [vmem:[#allocation1 + $0x1] ss:$9 sm:$0xff] %v2944_v23 }
  0xf4   :  { %v3045_v45 = vpop.permute.xlu0 %381  ;;  %v3049_v48 = vpop.permute.xlu1 %383 }
  0xf6   :  { %v693_v10 = vld [vmem:[#allocation1 + $0x9] sm:$0xff]  ;;  %v692_v11 = vld [vmem:[#allocation1] sm:$0xff] }
  0xf7   :  { %698 = vrot.lane.b32.xlu0 %v693_v10, %s2863_s17  ;;  %703 = vst [vmem:[#allocation1] ss:$9 sm:$0xff] %v2948_v27  ;;  %696 = vrot.lane.b32.xlu2 %v692_v11, %s2863_s17  ;;  %v182_v10 = vsel %vm181_vm5, %v2996_v9, %v3002_v13  ;;  %v2868_v9 = vmov 0  }
  0xf8   :  { %705 = vst [vmem:[#allocation1 + $0x1] ss:$9 sm:$0xff] %v2950_v28  ;;  %v210_v13 = vsel %vm199_vm11, 1, %v2868_v9  ;;  %vm324_vm11 = vcmp.lt.s32.totalorder %v3073_v59, 48 }
  0xfd   :  { %v3052_v49 = vpop.permute.xlu0 %416 }
  0xff   :  { %v706_v15 = vld [vmem:[#allocation1] sm:$0xff]  ;;  %v707_v16 = vld [vmem:[#allocation1 + $0x9] sm:$0xff] }
 0x100   :  { %710 = vrot.lane.b32.xlu1 %v706_v15, %s2863_s17  ;;  %736 = vst [vmem:[#allocation1] ss:$9 sm:$0xff] %v2942_v22  ;;  %712 = vrot.lane.b32.xlu2 %v707_v16, %s2863_s17  ;;  %v202_v15 = vmul.f32 %v201_v4, %v183_v5  ;;  %v206_v16 = vmul.f32 %v205_v6, %v198_v7  ;;  %s3558_s17 = sld [smem:[#allocation2 + $0xa]] }
 0x101   :  { %738 = vst [vmem:[#allocation1 + $0x1] ss:$9 sm:$0xff] %v2944_v23 }
 0x106   :  { %v3070_v58 = vpop.permute.xlu1 %428 }
 0x108   :  { %v739_v20 = vld [vmem:[#allocation1] sm:$0xff]  ;;  %v740_v21 = vld [vmem:[#allocation1 + $0x9] sm:$0xff] }
 0x109   :  { %743 = vrot.lane.b32.xlu0 %v739_v20, %s2864_s18  ;;  %745 = vrot.lane.b32.xlu1 %v740_v21, %s2864_s18  ;;  %750 = vst [vmem:[#allocation1] ss:$9 sm:$0xff] %v2948_v27  ;;  %v3133_v21 = vpop.permute.xlu2 %475 }
 0x10a   :  { %752 = vst [vmem:[#allocation1 + $0x1] ss:$9 sm:$0xff] %v2950_v28 }
 0x10f   :  { %v3078_v62 = vpop.permute.xlu0 %461  ;;  %v3125_v11 = vpop.permute.xlu1 %463 }
 0x111   :  { %v754_v29 = vld [vmem:[#allocation1 + $0x9] sm:$0xff]  ;;  %v753_v30 = vld [vmem:[#allocation1] sm:$0xff] }
 0x112   :  { %759 = vrot.lane.b32.xlu0 %v754_v29, %s2864_s18  ;;  %783 = vst [vmem:[#allocation1] ss:$9 sm:$0xff] %v2942_v22  ;;  %757 = vrot.lane.b32.xlu2 %v753_v30, %s2864_s18  ;;  %v197_v29 = vsel %vm181_vm5, %v3000_v12, %v3008_v17  ;;  %v248_v30 = vstv %s3080_s24  ;;  %v257_v12 = vsel %vm246_vm13, 1, %v2868_v9  ;;  %v244_v17 = vsel %vm230_vm12, %v3012_v19, %v3016_v24  ;;  %s3560_s18 = sld [smem:[#allocation2 + $0x3b]]  ;;  %s2873_s24 = smov 13  }
 0x113   :  { %785 = vst [vmem:[#allocation1 + $0x1] ss:$9 sm:$0xff] %v2944_v23  ;;  %v258_v57 = vperm.slane %v257_v12, 0  ;;  %v259_v7 = vperm.slane %v257_v12, 1 }
 0x115   :  { %vm3219_vm8 = vcmp.eq.s32.totalorder %v258_v57, 1  ;;  %vm3236_vm13 = vcmp.eq.s32.totalorder %v259_v7, 1  ;;  %v339_v57 = vsel %vm324_vm11, %v3034_v39, %v3036_v40 }
 0x118   :  { %v3131_v20 = vpop.permute.xlu0 %477 }
 0x11a   :  { %v786_v34 = vld [vmem:[#allocation1] sm:$0xff]  ;;  %v787_v35 = vld [vmem:[#allocation1 + $0x9] sm:$0xff] }
 0x11b   :  { %790 = vrot.lane.b32.xlu1 %v786_v34, %s2865_s19  ;;  %797 = vst [vmem:[#allocation1] ss:$9 sm:$0xff] %v2948_v27  ;;  %792 = vrot.lane.b32.xlu2 %v787_v35, %s2865_s19  ;;  %v231_v34 = vsel %vm230_vm12, %v3004_v14, %v3010_v18  ;;  %v232_v35 = vsel %vm230_vm12, %v3010_v18, %v3004_v14  ;;  %v211_v14 = vperm.slane %v210_v13, 0 }
 0x11c   :  { %799 = vst [vmem:[#allocation1 + $0x1] ss:$9 sm:$0xff] %v2950_v28  ;;  %v207_v18 = vmul.f32 %v205_v6, %v197_v29  ;;  %v249_v54 = vmul.f32 %v248_v30, %v232_v35 }
 0x11d   :  { %vm3191_vm5 = vcmp.eq.s32.totalorder %v211_v14, 1 }
 0x123   :  { %v800_v37 = vld [vmem:[#allocation1] sm:$0xff]  ;;  %v801_v38 = vld [vmem:[#allocation1 + $0x9] sm:$0xff] }
 0x124   :  { %804 = vrot.lane.b32.xlu0 %v800_v37, %s2865_s19  ;;  %806 = vrot.lane.b32.xlu1 %v801_v38, %s2865_s19  ;;  %830 = vst [vmem:[#allocation1] ss:$9 sm:$0xff] %v2942_v22  ;;  %v252_v37 = vstv %s3087_s25  ;;  %v245_v38 = vsel %vm230_vm12, %v3016_v24, %v3012_v19  ;;  %s3591_s19 = sld [smem:[#allocation2 + $0xb]] }
 0x125   :  { %832 = vst [vmem:[#allocation1 + $0x1] ss:$9 sm:$0xff] %v2944_v23  ;;  %v254_v60 = vmul.f32 %v252_v37, %v244_v17  ;;  %s2584_s25 = sld [smem:[#allocation2 + $0xd]] }
 0x12c   :  { %v834_v41 = vld [vmem:[#allocation1 + $0x9] sm:$0xff]  ;;  %v833_v42 = vld [vmem:[#allocation1] sm:$0xff] }
 0x12d   :  { %839 = vrot.lane.b32.xlu0 %v834_v41, %s2866_s20  ;;  %844 = vst [vmem:[#allocation1] ss:$9 sm:$0xff] %v2948_v27  ;;  %837 = vrot.lane.b32.xlu2 %v833_v42, %s2866_s20  ;;  %v203_v41 = vmul.f32 %v201_v4, %v182_v10  ;;  %v292_v4 = vsel %vm277_vm1, %v3026_v32, %v3024_v31 }
 0x12e   :  { %846 = vst [vmem:[#allocation1 + $0x1] ss:$9 sm:$0xff] %v2950_v28 }
 0x12f   :  { %v209_v6 = vadd.f32 %v207_v18, %v203_v41  ;;  %v127_v41 = vadd.s32 1, %v3056_v51 }
 0x131   :  { %vm128_vm15 = vcmp.ge.s32.totalorder %v127_v41, 0 }
 0x135   :  { %v847_v46 = vld [vmem:[#allocation1] sm:$0xff]  ;;  %v848_v47 = vld [vmem:[#allocation1 + $0x9] sm:$0xff] }
 0x136   :  { %851 = vrot.lane.b32.xlu1 %v847_v46, %s2866_s20  ;;  %877 = vst [vmem:[#allocation1] ss:$9 sm:$0xff] %v2942_v22  ;;  %853 = vrot.lane.b32.xlu2 %v848_v47, %s2866_s20  ;;  %v3164_v46 = vadd.f32 %v206_v16, %v202_v15  ;;  %v212_v47 = vperm.slane %v210_v13, 1  ;;  %v278_v15 = vsel %vm277_vm1, %v3020_v26, %v3018_v25  ;;  %v304_v16 = vsel %vm293_vm2, 1, %v2868_v9  ;;  %s3608_s20 = sld [smem:[#allocation2 + $0x3c]] }
 0x137   :  { %879 = vst [vmem:[#allocation1 + $0x1] ss:$9 sm:$0xff] %v2944_v23  ;;  %v291_v13 = vsel %vm277_vm1, %v3024_v31, %v3026_v32  ;;  %v3224_v31 = vpop.permute.xlu2 %510  ;;  %v3226_v32 = vpop.permute.xlu0 %522  ;;  %v297_v17 = vmul.f32 %v295_v1, %v278_v15  ;;  %v305_v14 = vperm.slane %v304_v16, 0 }
 0x138   :  { %vm3228_vm12 = vcmp.eq.s32.totalorder %v212_v47, 1 }
 0x139   :  { %vm3276_vm2 = vcmp.eq.s32.totalorder %v305_v14, 1 }
 0x13e   :  { %v880_v55 = vld [vmem:[#allocation1] sm:$0xff]  ;;  %v881_v56 = vld [vmem:[#allocation1 + $0x9] sm:$0xff] }
 0x13f   :  { %884 = vrot.lane.b32.xlu0 %v880_v55, %s2867_s22  ;;  %886 = vrot.lane.b32.xlu1 %v881_v56, %s2867_s22  ;;  %891 = vst [vmem:[#allocation1] ss:$9 sm:$0xff] %v2948_v27  ;;  %v250_v55 = vmul.f32 %v248_v30, %v231_v34  ;;  %v253_v56 = vmul.f32 %v252_v37, %v245_v38  ;;  %v215_v37 = vsel %vm3191_vm5, %v3164_v46, 0.0  ;;  %v342_v46 = vstv %s3167_s2  ;;  %s3724_s2 = sld [smem:[#allocation2 + $0x3f]] }
 0x140   :  { %893 = vst [vmem:[#allocation1 + $0x1] ss:$9 sm:$0xff] %v2950_v28  ;;  %vm371_vm5 = vcmp.lt.s32.totalorder %v3073_v59, 47 }
 0x141   :  { %v255_v10 = vadd.f32 %v253_v56, %v249_v54  ;;  %v256_v38 = vadd.f32 %v254_v60, %v250_v55  ;;  %v306_v54 = vperm.slane %v304_v16, 1  ;;  %v325_v55 = vsel %vm324_vm11, %v3028_v33, %v3032_v36 }
 0x143   :  { %v262_v47 = vsel %vm3219_vm8, %v255_v10, 0.0  ;;  %vm3281_vm3 = vcmp.eq.s32.totalorder %v306_v54, 1  ;;  %v131_v10 = vadd.s32 2, %v3056_v51  ;;  %v135_v54 = vadd.s32 3, %v3056_v51 }
 0x144   :  { %v264_v15 = vadd.f32 %v262_v47, %v215_v37  ;;  %v3301_v37 = vpop.permute.xlu0 %557 }
 0x147   :  { %v895_v2 = vld [vmem:[#allocation1 + $0x9] sm:$0xff]  ;;  %v894_v3 = vld [vmem:[#allocation1] sm:$0xff] }
 0x148   :  { %900 = vrot.lane.b32.xlu0 %v895_v2, %s2867_s22  ;;  %924 = vst [vmem:[#allocation1] ss:$9 sm:$0xff] %v2942_v22  ;;  %898 = vrot.lane.b32.xlu2 %v894_v3, %s2867_s22  ;;  %v279_v2 = vsel %vm277_vm1, %v3018_v25, %v3020_v26  ;;  %v299_v3 = vstv %s3123_s27  ;;  %v3217_v25 = vpop.permute.xlu1 %508  ;;  %vm129_vm1 = vcmp.lt.s32.totalorder %v127_v41, 16  ;;  %v3303_v41 = vpop.permute.xlu2 %555  ;;  %s3667_s22 = sld [smem:[#allocation2 + $0xc]] }
 0x149   :  { %926 = vst [vmem:[#allocation1 + $0x1] ss:$9 sm:$0xff] %v2944_v23  ;;  %v296_v30 = vmul.f32 %v295_v1, %v279_v2  ;;  %v300_v34 = vmul.f32 %v299_v3, %v292_v4  ;;  %v301_v18 = vmul.f32 %v299_v3, %v291_v13  ;;  %v351_v2 = vsel %vm340_vm14, 1, %v2868_v9  ;;  %vm3288_vm4 = vmand %vm128_vm15, %vm129_vm1  ;;  %s3716_s27 = sld [smem:[#allocation2 + $0xe]] }
 0x14a   :  { %v338_v3 = vsel %vm324_vm11, %v3036_v40, %v3034_v39  ;;  %v352_v16 = vperm.slane %v351_v2, 0  ;;  %v353_v12 = vperm.slane %v351_v2, 1  ;;  %vm387_vm8 = vmand %vm3089_vm9, %vm3288_vm4  ;;  %vm418_vm1 = vcmp.lt.s32.totalorder %v3073_v59, 46 }
 0x14b   :  { %v302_v56 = vadd.f32 %v300_v34, %v296_v30  ;;  %v303_v5 = vadd.f32 %v301_v18, %v297_v17  ;;  %v398_v51 = vsel %vm387_vm8, 1, %v2868_v9 }
 0x14c   :  { %vm3348_vm15 = vcmp.eq.s32.totalorder %v353_v12, 1 }
 0x14d   :  { %v309_v30 = vsel %vm3276_vm2, %v302_v56, 0.0  ;;  %v393_v56 = vstv %s3262_s5  ;;  %vm136_vm2 = vcmp.ge.s32.totalorder %v135_v54, 0  ;;  %s2875_s5 = smov 2  }
 0x14e   :  { %v311_v14 = vadd.f32 %v309_v30, %v264_v15  ;;  %v420_v15 = vsel %vm418_vm1, %v3052_v49, %v3054_v50 }
 0x150   :  { %v927_v19 = vld [vmem:[#allocation1] sm:$0xff]  ;;  %v928_v24 = vld [vmem:[#allocation1 + $0x9] sm:$0xff]  ;;  %v3294_v34 = vpop.permute.xlu1 %524 }
 0x151   :  { %931 = vrot.lane.b32.xlu1 %v927_v19, %s2869_s29  ;;  %938 = vst [vmem:[#allocation1] ss:$9 sm:$0xff] %v2948_v27  ;;  %933 = vrot.lane.b32.xlu2 %v928_v24, %s2869_s29  ;;  %v326_v19 = vsel %vm324_vm11, %v3032_v36, %v3028_v33  ;;  %v346_v24 = vstv %s3169_s28  ;;  %v216_v33 = vsel %vm3228_vm12, %v209_v6, 0.0  ;;  %v263_v36 = vsel %vm3236_vm13, %v256_v38, 0.0  ;;  %s2874_s28 = smov 3  }
 0x152   :  { %940 = vst [vmem:[#allocation1 + $0x1] ss:$9 sm:$0xff] %v2950_v28  ;;  %v343_v40 = vmul.f32 %v342_v46, %v326_v19  ;;  %v347_v7 = vmul.f32 %v346_v24, %v339_v57  ;;  %v344_v6 = vmul.f32 %v342_v46, %v325_v55  ;;  %v348_v13 = vmul.f32 %v346_v24, %v338_v3 }
 0x153   :  { %v265_v35 = vadd.f32 %v263_v36, %v216_v33  ;;  %v310_v38 = vsel %vm3281_vm3, %v303_v5, 0.0  ;;  %vm132_vm11 = vcmp.ge.s32.totalorder %v131_v10, 0  ;;  %vm133_vm12 = vcmp.lt.s32.totalorder %v131_v10, 16 }
 0x154   :  { %v349_v17 = vadd.f32 %v347_v7, %v343_v40  ;;  %vm3311_vm13 = vcmp.eq.s32.totalorder %v352_v16, 1  ;;  %v3315_v47 = vadd.f32 %v348_v13, %v344_v6  ;;  %v389_v46 = vstv %s3251_s30  ;;  %vm3339_vm14 = vmand %vm132_vm11, %vm133_vm12  ;;  %s3756_s30 = sld [smem:[#allocation2 + $0x40]] }
 0x155   :  { %v373_v55 = vsel %vm371_vm5, %v3043_v44, %v3040_v43  ;;  %v386_v19 = vsel %vm371_vm5, %v3049_v48, %v3045_v45  ;;  %vm137_vm3 = vcmp.lt.s32.totalorder %v135_v54, 16  ;;  %v399_v36 = vperm.slane %v398_v51, 0 }
 0x156   :  { %v394_v3 = vmul.f32 %v393_v56, %v386_v19  ;;  %v143_v5 = vadd.s32 4294967294, %v3058_v52  ;;  %v357_v39 = vsel %vm3348_vm15, %v3315_v47, 0.0  ;;  %v400_v40 = vperm.slane %v398_v51, 1  ;;  %vm3386_vm8 = vmand %vm136_vm2, %vm137_vm3 }
 0x157   :  { %v436_v7 = vstv %s3299_s0  ;;  %v419_v10 = vsel %vm418_vm1, %v3054_v50, %v3052_v49  ;;  %v440_v6 = vstv %s3309_s1  ;;  %v432_v16 = vsel %vm418_vm1, %v3070_v58, %v3076_v61  ;;  %v3392_v49 = vpop.permute.xlu2 %571  ;;  %s2590_s0 = sld [smem:[#allocation2 + $0x10]] }
 0x158   :  { %v433_v13 = vsel %vm418_vm1, %v3076_v61, %v3070_v58  ;;  %vm465_vm11 = vcmp.lt.s32.totalorder %v3073_v59, 45  ;;  %vm3398_vm12 = vcmp.eq.s32.totalorder %v399_v36, 1  ;;  %vm145_vm15 = vcmp.lt.s32.totalorder %v143_v5, 16  ;;  %vm481_vm1 = vmand %vm3089_vm9, %vm3386_vm8  ;;  %s2591_s1 = sld [smem:[#allocation2 + $0x41]] }
 0x159   :  { %v941_v60 = vld [vmem:[#allocation1] sm:$0xff]  ;;  %v942_v1 = vld [vmem:[#allocation1 + $0x9] sm:$0xff]  ;;  %v437_v18 = vmul.f32 %v436_v7, %v420_v15  ;;  %v438_v47 = vmul.f32 %v436_v7, %v419_v10  ;;  %v442_v54 = vmul.f32 %v440_v6, %v432_v16  ;;  %vm3410_vm2 = vcmp.eq.s32.totalorder %v400_v40, 1 }
 0x15a   :  { %945 = vrot.lane.b32.xlu0 %v941_v60, %s2869_s29  ;;  %947 = vrot.lane.b32.xlu1 %v942_v1, %s2869_s29  ;;  %971 = vst [vmem:[#allocation1] ss:$9 sm:$0xff] %v2942_v22  ;;  %v372_v60 = vsel %vm371_vm5, %v3040_v43, %v3043_v44  ;;  %v385_v1 = vsel %vm371_vm5, %v3045_v45, %v3049_v48  ;;  %v356_v45 = vsel %vm3311_vm13, %v349_v17, 0.0  ;;  %vm434_vm5 = vmand %vm3089_vm9, %vm3339_vm14  ;;  %v3396_v17 = vpop.permute.xlu0 %602  ;;  %vm144_vm13 = vcmp.ge.s32.totalorder %v143_v5, 0  ;;  %s3750_s29 = sld [smem:[#allocation2 + $0xf]] }
 0x15b   :  { %973 = vst [vmem:[#allocation1 + $0x1] ss:$9 sm:$0xff] %v2944_v23  ;;  %v312_v43 = vadd.f32 %v310_v38, %v265_v35  ;;  %v390_v48 = vmul.f32 %v389_v46, %v373_v55  ;;  %v391_v33 = vmul.f32 %v389_v46, %v372_v60  ;;  %v395_v4 = vmul.f32 %v393_v56, %v385_v1  ;;  %v3390_v35 = vpop.permute.xlu1 %569  ;;  %vm3434_vm3 = vmand %vm144_vm13, %vm145_vm15 }
 0x15c   :  { %v358_v50 = vadd.f32 %v356_v45, %v311_v14  ;;  %v445_v12 = vsel %vm434_vm5, 1, %v2868_v9  ;;  %v441_v14 = vmul.f32 %v440_v6, %v433_v13  ;;  %v466_v51 = vsel %vm465_vm11, %v3078_v62, %v3125_v11 }
 0x15d   :  { %v396_v38 = vadd.f32 %v394_v3, %v390_v48  ;;  %v397_v61 = vadd.f32 %v395_v4, %v391_v33  ;;  %v446_v19 = vperm.slane %v445_v12, 0  ;;  %v447_v60 = vperm.slane %v445_v12, 1 }
 0x15e   :  { %v487_v1 = vstv %s3356_s9  ;;  %v480_v44 = vsel %vm465_vm11, %v3131_v20, %v3133_v21  ;;  %v359_v48 = vadd.f32 %v357_v39, %v312_v43  ;;  %v443_v36 = vadd.f32 %v441_v14, %v437_v18  ;;  %s2876_s9 = smov 1  }
 0x15f   :  { %v403_v3 = vsel %vm3398_vm12, %v396_v38, 0.0  ;;  %v404_v33 = vsel %vm3410_vm2, %v397_v61, 0.0  ;;  %v444_v43 = vadd.f32 %v442_v54, %v438_v47  ;;  %vm3454_vm5 = vcmp.eq.s32.totalorder %v446_v19, 1  ;;  %v3474_v38 = vpop.permute.xlu2 %616  ;;  %vm575_vm2 = vmand %vm3434_vm3, %vm3104_vm10 }
 0x160   :  { %v488_v39 = vmul.f32 %v487_v1, %v480_v44  ;;  %vm512_vm9 = vcmp.lt.s32.totalorder %v3073_v59, 35  ;;  %vm3465_vm12 = vcmp.eq.s32.totalorder %v447_v60, 1  ;;  %v405_v6 = vadd.f32 %v403_v3, %v358_v50 }
 0x161   :  { %v406_v16 = vadd.f32 %v404_v33, %v359_v48  ;;  %v530_v13 = vstv %s3402_s10  ;;  %v514_v12 = vsel %vm512_vm9, %v3224_v31, %v3217_v25  ;;  %v534_v58 = vstv %s3408_s11  ;;  %s2592_s10 = sld [smem:[#allocation2 + $0x11]] }
 0x162   :  { %v975_v24 = vld [vmem:[#allocation1 + $0x9] sm:$0xff]  ;;  %v974_v57 = vld [vmem:[#allocation1] sm:$0xff]  ;;  %v3471_v15 = vpop.permute.xlu0 %618  ;;  %v527_v18 = vsel %vm512_vm9, %v3294_v34, %v3226_v32  ;;  %v450_v50 = vsel %vm3454_vm5, %v443_v36, 0.0  ;;  %v451_v47 = vsel %vm3465_vm12, %v444_v43, 0.0  ;;  %vm559_vm13 = vcmp.lt.s32.totalorder %v3073_v59, 34  ;;  %s2593_s11 = sld [smem:[#allocation2 + $0x42]] }
 0x163   :  { %980 = vrot.lane.b32.xlu0 %v975_v24, %s2870_s8  ;;  %985 = vst [vmem:[#allocation1] ss:$9 sm:$0xff] %v2948_v27  ;;  %978 = vrot.lane.b32.xlu2 %v974_v57, %s2870_s8  ;;  %v483_v24 = vstv %s3343_s3  ;;  %v467_v57 = vsel %vm465_vm11, %v3125_v11, %v3078_v62  ;;  %v492_v62 = vsel %vm481_vm1, 1, %v2868_v9  ;;  %v479_v11 = vsel %vm465_vm11, %v3133_v21, %v3131_v20  ;;  %vm528_vm11 = vmand %vm3434_vm3, %vm3083_vm6  ;;  %v3469_v10 = vpop.permute.xlu1 %604  ;;  %s3777_s3 = sld [smem:[#allocation2 + $0x18]] }
 0x164   :  { %987 = vst [vmem:[#allocation1 + $0x1] ss:$9 sm:$0xff] %v2950_v28  ;;  %v484_v4 = vmul.f32 %v483_v24, %v467_v57  ;;  %v485_v5 = vmul.f32 %v483_v24, %v466_v51  ;;  %v493_v21 = vperm.slane %v492_v62, 0  ;;  %v494_v40 = vperm.slane %v492_v62, 1 }
 0x165   :  { %v489_v7 = vmul.f32 %v487_v1, %v479_v11  ;;  %v539_v61 = vsel %vm528_vm11, 1, %v2868_v9  ;;  %v513_v24 = vsel %vm512_vm9, %v3217_v25, %v3224_v31  ;;  %v531_v57 = vmul.f32 %v530_v13, %v514_v12 }
 0x166   :  { %v490_v14 = vadd.f32 %v488_v39, %v484_v4  ;;  %vm3491_vm15 = vcmp.eq.s32.totalorder %v493_v21, 1  ;;  %vm3495_vm1 = vcmp.eq.s32.totalorder %v494_v40, 1  ;;  %v540_v60 = vperm.slane %v539_v61, 0 }
 0x167   :  { %v491_v19 = vadd.f32 %v489_v7, %v485_v5  ;;  %v526_v51 = vsel %vm512_vm9, %v3226_v32, %v3294_v34  ;;  %v535_v1 = vmul.f32 %v534_v58, %v527_v18  ;;  %v452_v44 = vadd.f32 %v450_v50, %v405_v6  ;;  %vm622_vm9 = vmand %vm3434_vm3, %vm3160_vm0 }
 0x168   :  { %v453_v48 = vadd.f32 %v451_v47, %v406_v16  ;;  %v577_v3 = vstv %s3452_s12  ;;  %v560_v25 = vsel %vm559_vm13, %v3303_v41, %v3301_v37  ;;  %v561_v31 = vsel %vm559_vm13, %v3301_v37, %v3303_v41  ;;  %s2594_s12 = sld [smem:[#allocation2 + $0x12]] }
 0x169   :  { %v581_v32 = vstv %s3463_s13  ;;  %v573_v34 = vsel %vm559_vm13, %v3390_v35, %v3392_v49  ;;  %v574_v62 = vsel %vm559_vm13, %v3392_v49, %v3390_v35  ;;  %v497_v11 = vsel %vm3491_vm15, %v490_v14, 0.0  ;;  %v652_v49 = vpop.permute.xlu2 %651  ;;  %s2595_s13 = sld [smem:[#allocation2 + $0x43]] }
 0x16a   :  { %v498_v33 = vsel %vm3495_vm1, %v491_v19, 0.0  ;;  %v532_v37 = vmul.f32 %v530_v13, %v513_v24  ;;  %v536_v41 = vmul.f32 %v534_v58, %v526_v51  ;;  %v3541_v43 = vpop.permute.xlu0 %663  ;;  %v541_v4 = vperm.slane %v539_v61, 1 }
 0x16b   :  { %v988_v46 = vld [vmem:[#allocation1] sm:$0xff]  ;;  %v989_v55 = vld [vmem:[#allocation1 + $0x9] sm:$0xff]  ;;  %v650_v36 = vpop.permute.xlu1 %649  ;;  %vm3543_vm5 = vcmp.eq.s32.totalorder %v540_v60, 1  ;;  %v537_v5 = vadd.f32 %v535_v1, %v531_v57  ;;  %v586_v35 = vsel %vm575_vm2, 1, %v2868_v9  ;;  %v578_v39 = vmul.f32 %v577_v3, %v561_v31  ;;  %vm669_vm2 = vmand %vm3434_vm3, %vm3213_vm7 }
 0x16c   :  { %992 = vrot.lane.b32.xlu1 %v988_v46, %s2870_s8  ;;  %1018 = vst [vmem:[#allocation1] ss:$9 sm:$0xff] %v2942_v22  ;;  %994 = vrot.lane.b32.xlu2 %v989_v55, %s2870_s8  ;;  %v579_v20 = vmul.f32 %v577_v3, %v560_v25  ;;  %v582_v21 = vmul.f32 %v581_v32, %v574_v62  ;;  %vm606_vm11 = vcmp.lt.s32.totalorder %v3073_v59, 33  ;;  %v587_v12 = vperm.slane %v586_v35, 0  ;;  %s3779_s8 = sld [smem:[#allocation2 + $0x49]] }
 0x16d   :  { %1020 = vst [vmem:[#allocation1 + $0x1] ss:$9 sm:$0xff] %v2944_v23  ;;  %v583_v40 = vmul.f32 %v581_v32, %v573_v34  ;;  %v499_v7 = vadd.f32 %v497_v11, %v452_v44  ;;  %v538_v6 = vadd.f32 %v536_v41, %v532_v37  ;;  %v588_v58 = vperm.slane %v586_v35, 1 }
 0x16e   :  { %v500_v61 = vadd.f32 %v498_v33, %v453_v48  ;;  %vm3562_vm12 = vcmp.eq.s32.totalorder %v541_v4, 1  ;;  %v544_v50 = vsel %vm3543_vm5, %v537_v5, 0.0  ;;  %v633_v47 = vsel %vm622_vm9, 1, %v2868_v9 }
 0x16f   :  { %v584_v14 = vadd.f32 %v582_v21, %v578_v39  ;;  %v608_v55 = vsel %vm606_vm11, %v3469_v10, %v3396_v17  ;;  %v607_v56 = vsel %vm606_vm11, %v3396_v17, %v3469_v10  ;;  %v628_v19 = vstv %s3535_s16  ;;  %s2597_s16 = sld [smem:[#allocation2 + $0x44]] }
 0x170   :  { %v620_v24 = vsel %vm606_vm11, %v3474_v38, %v3471_v15  ;;  %v621_v57 = vsel %vm606_vm11, %v3471_v15, %v3474_v38  ;;  %v545_v60 = vsel %vm3562_vm12, %v538_v6, 0.0  ;;  %vm3595_vm13 = vcmp.eq.s32.totalorder %v587_v12, 1 }
 0x171   :  { %vm3599_vm15 = vcmp.eq.s32.totalorder %v588_v58, 1  ;;  %v634_v10 = vperm.slane %v633_v47, 0  ;;  %v546_v1 = vadd.f32 %v544_v50, %v499_v7  ;;  %vm653_vm1 = vcmp.lt.s32.totalorder %v3073_v59, 32  ;;  %v697_v33 = vpop.permute.xlu2 %696 }
 0x172   :  { %v635_v38 = vperm.slane %v633_v47, 1  ;;  %v629_v48 = vmul.f32 %v628_v19, %v621_v57  ;;  %v630_v3 = vmul.f32 %v628_v19, %v620_v24  ;;  %v699_v31 = vpop.permute.xlu0 %698  ;;  %v547_v32 = vadd.f32 %v545_v60, %v500_v61 }
 0x173   :  { %v666_v25 = vpop.permute.xlu1 %665  ;;  %v591_v34 = vsel %vm3595_vm13, %v584_v14, 0.0  ;;  %v680_v11 = vsel %vm669_vm2, 1, %v2868_v9  ;;  %vm3615_vm5 = vcmp.eq.s32.totalorder %v634_v10, 1  ;;  %v671_v41 = vstv %s3558_s17  ;;  %vm716_vm13 = vmand %vm3434_vm3, %vm3288_vm4  ;;  %s2878_s17 = smov 126  }
 0x174   :  { %v1021_v54 = vld [vmem:[#allocation1] sm:$0xff]  ;;  %v1022_v46 = vld [vmem:[#allocation1 + $0x9] sm:$0xff]  ;;  %v654_v4 = vsel %vm653_vm1, %v650_v36, %v652_v49  ;;  %v655_v0 = vsel %vm653_vm1, %v652_v49, %v650_v36  ;;  %v675_v39 = vstv %s3560_s18  ;;  %v668_v21 = vsel %vm653_vm1, %v666_v25, %v3541_v43  ;;  %s2598_s18 = sld [smem:[#allocation2 + $0x14]] }
 0x175   :  { %1025 = vrot.lane.b32.xlu0 %v1021_v54, %s2871_s14  ;;  %1027 = vrot.lane.b32.xlu1 %v1022_v46, %s2871_s14  ;;  %1032 = vst [vmem:[#allocation1] ss:$9 sm:$0xff] %v2948_v27  ;;  %v585_v54 = vadd.f32 %v583_v40, %v579_v20  ;;  %v624_v46 = vstv %s3520_s15  ;;  %v667_v20 = vsel %vm653_vm1, %v3541_v43, %v666_v25  ;;  %vm700_vm9 = vcmp.lt.s32.totalorder %v3073_v59, 31  ;;  %s2596_s15 = sld [smem:[#allocation2 + $0x13]] }
 0x176   :  { %1034 = vst [vmem:[#allocation1 + $0x1] ss:$9 sm:$0xff] %v2950_v28  ;;  %v625_v44 = vmul.f32 %v624_v46, %v608_v55  ;;  %v626_v15 = vmul.f32 %v624_v46, %v607_v56  ;;  %vm3634_vm11 = vcmp.eq.s32.totalorder %v635_v38, 1  ;;  %v681_v7 = vperm.slane %v680_v11, 0 }
 0x177   :  { %v592_v62 = vsel %vm3599_vm15, %v585_v54, 0.0  ;;  %v672_v43 = vmul.f32 %v671_v41, %v655_v0  ;;  %v673_v6 = vmul.f32 %v671_v41, %v654_v4  ;;  %v676_v12 = vmul.f32 %v675_v39, %v668_v21 }
 0x178   :  { %v631_v49 = vadd.f32 %v629_v48, %v625_v44  ;;  %v632_v40 = vadd.f32 %v630_v3, %v626_v15  ;;  %v677_v58 = vmul.f32 %v675_v39, %v667_v20  ;;  %v701_v61 = vsel %vm700_vm9, %v697_v33, %v699_v31 }
 0x179   :  { %v702_v18 = vsel %vm700_vm9, %v699_v31, %v697_v33  ;;  %v593_v50 = vadd.f32 %v591_v34, %v546_v1  ;;  %v594_v47 = vadd.f32 %v592_v62, %v547_v32  ;;  %vm3649_vm12 = vcmp.eq.s32.totalorder %v681_v7, 1  ;;  %v713_v17 = vpop.permute.xlu2 %712 }
 0x17a   :  { %v638_v14 = vsel %vm3615_vm5, %v631_v49, 0.0  ;;  %v639_v54 = vsel %vm3634_vm11, %v632_v40, 0.0  ;;  %v722_v56 = vstv %s3608_s20  ;;  %v727_v51 = vsel %vm716_vm13, 1, %v2868_v9  ;;  %s2879_s20 = smov 125  }
 0x17b   :  { %v711_v55 = vpop.permute.xlu1 %710  ;;  %v744_v19 = vpop.permute.xlu0 %743  ;;  %v678_v10 = vadd.f32 %v676_v12, %v672_v43  ;;  %v679_v1 = vadd.f32 %v677_v58, %v673_v6  ;;  %v728_v38 = vperm.slane %v727_v51, 0  ;;  %v729_v48 = vperm.slane %v727_v51, 1 }
 0x17c   :  { %v714_v44 = vsel %vm700_vm9, %v711_v55, %v713_v17  ;;  %v715_v15 = vsel %vm700_vm9, %v713_v17, %v711_v55  ;;  %v640_v34 = vadd.f32 %v638_v14, %v593_v50  ;;  %v641_v62 = vadd.f32 %v639_v54, %v594_v47  ;;  %vm763_vm9 = vmand %vm3434_vm3, %vm3339_vm14 }
 0x17d   :  { %v1036_v16 = vld [vmem:[#allocation1 + $0x9] sm:$0xff]  ;;  %v1035_v13 = vld [vmem:[#allocation1] sm:$0xff]  ;;  %v723_v3 = vmul.f32 %v722_v56, %v715_v15  ;;  %v724_v25 = vmul.f32 %v722_v56, %v714_v44  ;;  %v685_v37 = vsel %vm3649_vm12, %v678_v10, 0.0  ;;  %vm3679_vm1 = vcmp.eq.s32.totalorder %v728_v38, 1 }
 0x17e   :  { %1041 = vrot.lane.b32.xlu0 %v1036_v16, %s2871_s14  ;;  %1065 = vst [vmem:[#allocation1] ss:$9 sm:$0xff] %v2942_v22  ;;  %1039 = vrot.lane.b32.xlu2 %v1035_v13, %s2871_s14  ;;  %v682_v16 = vperm.slane %v680_v11, 1  ;;  %v718_v13 = vstv %s3591_s19  ;;  %vm3683_vm2 = vcmp.eq.s32.totalorder %v729_v48, 1  ;;  %vm747_vm5 = vcmp.lt.s32.totalorder %v3073_v59, 30  ;;  %s2877_s14 = smov 127  }
 0x17f   :  { %1067 = vst [vmem:[#allocation1 + $0x1] ss:$9 sm:$0xff] %v2944_v23  ;;  %v719_v57 = vmul.f32 %v718_v13, %v702_v18  ;;  %v720_v60 = vmul.f32 %v718_v13, %v701_v61  ;;  %v765_v21 = vstv %s3667_s22  ;;  %v769_v43 = vstv %s3669_s23  ;;  %s2599_s19 = sld [smem:[#allocation2 + $0x45]]  ;;  %s2880_s23 = smov 115  }
 0x180   :  { %vm3658_vm15 = vcmp.eq.s32.totalorder %v682_v16, 1  ;;  %v774_v6 = vsel %vm763_vm9, 1, %v2868_v9  ;;  %vm794_vm13 = vcmp.lt.s32.totalorder %v3073_v59, 29  ;;  %s2601_s22 = sld [smem:[#allocation2 + $0x46]] }
 0x181   :  { %v725_v11 = vadd.f32 %v723_v3, %v719_v57  ;;  %v726_v33 = vadd.f32 %v724_v25, %v720_v60  ;;  %v686_v41 = vsel %vm3658_vm15, %v679_v1, 0.0  ;;  %v758_v16 = vpop.permute.xlu2 %757  ;;  %v775_v58 = vperm.slane %v774_v6, 0  ;;  %vm810_vm15 = vmand %vm3434_vm3, %vm3386_vm8 }
 0x182   :  { %v776_v61 = vperm.slane %v774_v6, 1  ;;  %v812_v25 = vstv %s2584_s25  ;;  %s2603_s25 = sld [smem:[#allocation2 + $0x47]] }
 0x183   :  { %v732_v39 = vsel %vm3679_vm1, %v725_v11, 0.0  ;;  %v733_v20 = vsel %vm3683_vm2, %v726_v33, 0.0  ;;  %v746_v36 = vpop.permute.xlu1 %745  ;;  %vm777_vm11 = vcmp.eq.s32.totalorder %v775_v58, 1  ;;  %vm841_vm1 = vcmp.lt.s32.totalorder %v3073_v59, 19 }
 0x184   :  { %v760_v49 = vpop.permute.xlu0 %759  ;;  %v748_v40 = vsel %vm747_vm5, %v744_v19, %v746_v36  ;;  %v749_v7 = vsel %vm747_vm5, %v746_v36, %v744_v19  ;;  %vm778_vm12 = vcmp.eq.s32.totalorder %v776_v61, 1  ;;  %v147_v33 = vadd.s32 4294967295, %v3058_v52 }
 0x185   :  { %v766_v13 = vmul.f32 %v765_v21, %v749_v7  ;;  %v767_v12 = vmul.f32 %v765_v21, %v748_v40  ;;  %v761_v47 = vsel %vm747_vm5, %v758_v16, %v760_v49  ;;  %v762_v14 = vsel %vm747_vm5, %v760_v49, %v758_v16 }
 0x186   :  { %v1068_v5 = vld [vmem:[#allocation1] sm:$0xff]  ;;  %v1069_v35 = vld [vmem:[#allocation1 + $0x9] sm:$0xff]  ;;  %v770_v54 = vmul.f32 %v769_v43, %v762_v14  ;;  %v771_v46 = vmul.f32 %v769_v43, %v761_v47  ;;  %vm148_vm3 = vcmp.ge.s32.totalorder %v147_v33, 0  ;;  %vm149_vm2 = vcmp.lt.s32.totalorder %v147_v33, 16 }
 0x187   :  { %1072 = vrot.lane.b32.xlu1 %v1068_v5, %s2872_s21  ;;  %1079 = vst [vmem:[#allocation1] ss:$9 sm:$0xff] %v2948_v27  ;;  %1074 = vrot.lane.b32.xlu2 %v1069_v35, %s2872_s21  ;;  %v687_v5 = vadd.f32 %v685_v37, %v640_v34  ;;  %v688_v35 = vadd.f32 %v686_v41, %v641_v62  ;;  %v816_v34 = vstv %s2585_s26  ;;  %v821_v37 = vsel %vm810_vm15, 1, %v2868_v9  ;;  %s2881_s26 = smov 114  }
 0x188   :  { %1081 = vst [vmem:[#allocation1 + $0x1] ss:$9 sm:$0xff] %v2950_v28  ;;  %v772_v19 = vadd.f32 %v770_v54, %v766_v13  ;;  %v773_v24 = vadd.f32 %v771_v46, %v767_v12  ;;  %v822_v45 = vperm.slane %v821_v37, 0  ;;  %v859_v16 = vstv %s3716_s27  ;;  %s2604_s27 = sld [smem:[#allocation2 + $0x17]] }
 0x189   :  { %v734_v55 = vadd.f32 %v732_v39, %v687_v5  ;;  %v735_v56 = vadd.f32 %v733_v20, %v688_v35  ;;  %v793_v1 = vpop.permute.xlu2 %792  ;;  %v823_v5 = vperm.slane %v821_v37, 1 }
 0x18a   :  { %v779_v57 = vsel %vm777_vm11, %v772_v19, 0.0  ;;  %v780_v60 = vsel %vm778_vm12, %v773_v24, 0.0  ;;  %vm824_vm5 = vcmp.eq.s32.totalorder %v822_v45, 1  ;;  %vm3738_vm11 = vmand %vm148_vm3, %vm149_vm2 }
 0x18b   :  { %v781_v51 = vadd.f32 %v779_v57, %v734_v55  ;;  %v782_v17 = vadd.f32 %v780_v60, %v735_v56  ;;  %vm825_vm9 = vcmp.eq.s32.totalorder %v823_v5, 1  ;;  %vm857_vm12 = vmand %vm3738_vm11, %vm3083_vm6 }
 0x18c   :  { %v868_v13 = vsel %vm857_vm12, 1, %v2868_v9  ;;  %vm904_vm3 = vmand %vm3738_vm11, %vm3104_vm10 }
 0x18d   :  { %v791_v10 = vpop.permute.xlu1 %790  ;;  %v870_v47 = vperm.slane %v868_v13, 1  ;;  %vm951_vm12 = vmand %vm3738_vm11, %vm3160_vm0 }
 0x18e   :  { %v795_v44 = vsel %vm794_vm13, %v791_v10, %v793_v1  ;;  %v796_v15 = vsel %vm794_vm13, %v793_v1, %v791_v10 }
 0x18f   :  { %v1083_v31 = vld [vmem:[#allocation1 + $0x9] sm:$0xff]  ;;  %v1082_v32 = vld [vmem:[#allocation1] sm:$0xff]  ;;  %vm872_vm15 = vcmp.eq.s32.totalorder %v870_v47, 1  ;;  %v962_v47 = vsel %vm951_vm12, 1, %v2868_v9  ;;  %vm1045_vm12 = vmand %vm3738_vm11, %vm3288_vm4 }
 0x190   :  { %1088 = vrot.lane.b32.xlu1 %v1083_v31, %s2872_s21  ;;  %1086 = vrot.lane.b32.xlu0 %v1082_v32, %s2872_s21  ;;  %1112 = vst [vmem:[#allocation1] ss:$9 sm:$0xff] %v2942_v22  ;;  %v813_v31 = vmul.f32 %v812_v25, %v796_v15  ;;  %v814_v32 = vmul.f32 %v812_v25, %v795_v44  ;;  %s2600_s21 = sld [smem:[#allocation2 + $0x15]] }
 0x191   :  { %1114 = vst [vmem:[#allocation1 + $0x1] ss:$9 sm:$0xff] %v2944_v23  ;;  %v838_v0 = vpop.permute.xlu2 %837 }
 0x196   :  { %v805_v38 = vpop.permute.xlu0 %804  ;;  %v807_v62 = vpop.permute.xlu1 %806 }
 0x197   :  { %v808_v41 = vsel %vm794_vm13, %v805_v38, %v807_v62  ;;  %v809_v4 = vsel %vm794_vm13, %v807_v62, %v805_v38 }
 0x198   :  { %v1116_v18 = vld [vmem:[#allocation1 + $0x9] sm:$0xff]  ;;  %v1115_v50 = vld [vmem:[#allocation1] sm:$0xff]  ;;  %v817_v35 = vmul.f32 %v816_v34, %v809_v4  ;;  %v818_v39 = vmul.f32 %v816_v34, %v808_v41  ;;  %v915_v34 = vsel %vm904_vm3, 1, %v2868_v9  ;;  %vm998_vm3 = vmand %vm3738_vm11, %vm3213_vm7 }
 0x199   :  { %1121 = vrot.lane.b32.xlu0 %v1116_v18, %s2873_s24  ;;  %1126 = vst [vmem:[#allocation1] ss:$9 sm:$0xff] %v2948_v27  ;;  %1119 = vrot.lane.b32.xlu2 %v1115_v50, %s2873_s24  ;;  %v863_v18 = vstv %s3724_s2  ;;  %v869_v50 = vperm.slane %v868_v13, 0  ;;  %v854_v46 = vpop.permute.xlu2 %853  ;;  %v916_v41 = vperm.slane %v915_v34, 0  ;;  %v917_v4 = vperm.slane %v915_v34, 1  ;;  %s2605_s2 = sld [smem:[#allocation2 + $0x48]] }
 0x19a   :  { %1128 = vst [vmem:[#allocation1 + $0x1] ss:$9 sm:$0xff] %v2950_v28  ;;  %v819_v49 = vadd.f32 %v817_v35, %v813_v31  ;;  %v820_v40 = vadd.f32 %v818_v39, %v814_v32  ;;  %v910_v32 = vstv %s3756_s30  ;;  %s2608_s30 = sld [smem:[#allocation2 + $0x19]] }
 0x19b   :  { %vm871_vm13 = vcmp.eq.s32.totalorder %v869_v50, 1  ;;  %vm918_vm2 = vcmp.eq.s32.totalorder %v916_v41, 1  ;;  %v957_v50 = vstv %s2591_s1  ;;  %s2610_s1 = sld [smem:[#allocation2 + $0x1a]] }
 0x19c   :  { %v826_v43 = vsel %vm824_vm5, %v819_v49, 0.0  ;;  %v827_v6 = vsel %vm825_vm9, %v820_v40, 0.0  ;;  %vm919_vm5 = vcmp.eq.s32.totalorder %v917_v4, 1  ;;  %vm935_vm9 = vcmp.lt.s32.totalorder %v3073_v59, 17 }
 0x19d   :  { %v828_v12 = vadd.f32 %v826_v43, %v781_v51  ;;  %v829_v58 = vadd.f32 %v827_v6, %v782_v17 }
 0x19f   :  { %v840_v11 = vpop.permute.xlu0 %839 }
 0x1a0   :  { %v842_v52 = vsel %vm841_vm1, %v838_v0, %v840_v11  ;;  %v843_v36 = vsel %vm841_vm1, %v840_v11, %v838_v0 }
 0x1a1   :  { %v1129_v48 = vld [vmem:[#allocation1] sm:$0xff]  ;;  %v1130_v3 = vld [vmem:[#allocation1 + $0x9] sm:$0xff]  ;;  %v860_v14 = vmul.f32 %v859_v16, %v843_v36  ;;  %v861_v54 = vmul.f32 %v859_v16, %v842_v52 }
 0x1a2   :  { %1133 = vrot.lane.b32.xlu1 %v1129_v48, %s2873_s24  ;;  %1159 = vst [vmem:[#allocation1] ss:$9 sm:$0xff] %v2942_v22  ;;  %1135 = vrot.lane.b32.xlu2 %v1130_v3, %s2873_s24  ;;  %v906_v48 = vstv %s3750_s29  ;;  %v899_v62 = vpop.permute.xlu2 %898  ;;  %s2602_s24 = sld [smem:[#allocation2 + $0x16]]  ;;  %s2883_s29 = smov 112  }
 0x1a3   :  { %1161 = vst [vmem:[#allocation1 + $0x1] ss:$9 sm:$0xff] %v2944_v23 }
 0x1a8   :  { %v852_v61 = vpop.permute.xlu1 %851 }
 0x1a9   :  { %v855_v55 = vsel %vm841_vm1, %v852_v61, %v854_v46  ;;  %v856_v56 = vsel %vm841_vm1, %v854_v46, %v852_v61  ;;  %vm888_vm1 = vcmp.lt.s32.totalorder %v3073_v59, 18 }
 0x1aa   :  { %v1162_v20 = vld [vmem:[#allocation1] sm:$0xff]  ;;  %v1163_v21 = vld [vmem:[#allocation1 + $0x9] sm:$0xff]  ;;  %v864_v24 = vmul.f32 %v863_v18, %v856_v56  ;;  %v865_v57 = vmul.f32 %v863_v18, %v855_v55  ;;  %v953_v18 = vstv %s2590_s0  ;;  %v963_v55 = vperm.slane %v962_v47, 0  ;;  %s2884_s0 = smov 111  }
 0x1ab   :  { %1166 = vrot.lane.b32.xlu0 %v1162_v20, %s2874_s28  ;;  %1168 = vrot.lane.b32.xlu1 %v1163_v21, %s2874_s28  ;;  %1173 = vst [vmem:[#allocation1] ss:$9 sm:$0xff] %v2948_v27  ;;  %v934_v16 = vpop.permute.xlu2 %933  ;;  %v964_v56 = vperm.slane %v962_v47, 1 }
 0x1ac   :  { %1175 = vst [vmem:[#allocation1 + $0x1] ss:$9 sm:$0xff] %v2950_v28  ;;  %v866_v17 = vadd.f32 %v864_v24, %v860_v14  ;;  %v867_v10 = vadd.f32 %v865_v57, %v861_v54  ;;  %v1302_v24 = vstv %s3777_s3  ;;  %v1306_v57 = vstv %s3779_s8  ;;  %s2611_s3 = sld [smem:[#allocation2 + $0x4b]]  ;;  %s2885_s8 = smov 110  }
 0x1ae   :  { %v873_v1 = vsel %vm871_vm13, %v866_v17, 0.0  ;;  %v874_v44 = vsel %vm872_vm15, %v867_v10, 0.0  ;;  %vm965_vm13 = vcmp.eq.s32.totalorder %v963_v55, 1  ;;  %vm966_vm15 = vcmp.eq.s32.totalorder %v964_v56, 1 }
 0x1af   :  { %v875_v15 = vadd.f32 %v873_v1, %v828_v12  ;;  %v876_v38 = vadd.f32 %v874_v44, %v829_v58 }
 0x1b1   :  { %v885_v19 = vpop.permute.xlu0 %884  ;;  %v887_v3 = vpop.permute.xlu1 %886 }
 0x1b2   :  { %v889_v25 = vsel %vm888_vm1, %v885_v19, %v887_v3  ;;  %v890_v31 = vsel %vm888_vm1, %v887_v3, %v885_v19 }
 0x1b3   :  { %v1177_v60 = vld [vmem:[#allocation1 + $0x9] sm:$0xff]  ;;  %v1176_v51 = vld [vmem:[#allocation1] sm:$0xff]  ;;  %v907_v11 = vmul.f32 %v906_v48, %v890_v31  ;;  %v908_v33 = vmul.f32 %v906_v48, %v889_v25  ;;  %v1304_v25 = vmul.f32 %v1302_v24, %v2944_v23  ;;  %v1308_v31 = vmul.f32 %v1306_v57, %v2950_v28 }
 0x1b4   :  { %1182 = vrot.lane.b32.xlu0 %v1177_v60, %s2874_s28  ;;  %1206 = vst [vmem:[#allocation1] ss:$9 sm:$0xff] %v2942_v22  ;;  %1180 = vrot.lane.b32.xlu2 %v1176_v51, %s2874_s28  ;;  %s2882_s28 = smov 113  }
 0x1b5   :  { %1208 = vst [vmem:[#allocation1 + $0x1] ss:$9 sm:$0xff] %v2944_v23  ;;  %v1310_v41 = vadd.f32 %v1308_v31, %v1304_v25 }
 0x1ba   :  { %v901_v37 = vpop.permute.xlu0 %900 }
 0x1bb   :  { %v902_v0 = vsel %vm888_vm1, %v899_v62, %v901_v37  ;;  %v903_v45 = vsel %vm888_vm1, %v901_v37, %v899_v62  ;;  %vm982_vm1 = vcmp.lt.s32.totalorder %v3073_v59, 16 }
 0x1bc   :  { %v1209_v5 = vld [vmem:[#allocation1] sm:$0xff]  ;;  %v1210_v35 = vld [vmem:[#allocation1 + $0x9] sm:$0xff]  ;;  %v911_v39 = vmul.f32 %v910_v32, %v903_v45  ;;  %v912_v20 = vmul.f32 %v910_v32, %v902_v0 }
 0x1bd   :  { %1213 = vrot.lane.b32.xlu1 %v1209_v5, %s2875_s5  ;;  %1220 = vst [vmem:[#allocation1] ss:$9 sm:$0xff] %v2948_v27  ;;  %1215 = vrot.lane.b32.xlu2 %v1210_v35, %s2875_s5  ;;  %v979_v37 = vpop.permute.xlu2 %978 }
 0x1be   :  { %1222 = vst [vmem:[#allocation1 + $0x1] ss:$9 sm:$0xff] %v2950_v28  ;;  %v913_v21 = vadd.f32 %v911_v39, %v907_v11  ;;  %v914_v52 = vadd.f32 %v912_v20, %v908_v33  ;;  %v1009_v39 = vsel %vm998_vm3, 1, %v2868_v9  ;;  %v1000_v20 = vstv %s2592_s10  ;;  %vm1092_vm3 = vmand %vm3738_vm11, %vm3339_vm14  ;;  %s2613_s10 = sld [smem:[#allocation2 + $0x4c]] }
 0x1c0   :  { %v920_v36 = vsel %vm918_vm2, %v913_v21, 0.0  ;;  %v921_v49 = vsel %vm919_vm5, %v914_v52, 0.0  ;;  %v1004_v21 = vstv %s2593_s11  ;;  %v1010_v52 = vperm.slane %v1009_v39, 0  ;;  %s2886_s11 = smov 109  }
 0x1c1   :  { %v922_v40 = vadd.f32 %v920_v36, %v875_v15  ;;  %v923_v43 = vadd.f32 %v921_v49, %v876_v38  ;;  %v1303_v15 = vmul.f32 %v1302_v24, %v2942_v22  ;;  %v1307_v38 = vmul.f32 %v1306_v57, %v2948_v27 }
 0x1c2   :  { %v1011_v36 = vperm.slane %v1009_v39, 1  ;;  %vm1012_vm2 = vcmp.eq.s32.totalorder %v1010_v52, 1 }
 0x1c3   :  { %v932_v6 = vpop.permute.xlu1 %931  ;;  %v1309_v33 = vadd.f32 %v1307_v38, %v1303_v15 }
 0x1c4   :  { %v936_v13 = vsel %vm935_vm9, %v932_v6, %v934_v16  ;;  %v937_v12 = vsel %vm935_vm9, %v934_v16, %v932_v6  ;;  %vm1013_vm5 = vcmp.eq.s32.totalorder %v1011_v36, 1 }
 0x1c5   :  { %v1224_v58 = vld [vmem:[#allocation1 + $0x9] sm:$0xff]  ;;  %v1223_v61 = vld [vmem:[#allocation1] sm:$0xff]  ;;  %v954_v14 = vmul.f32 %v953_v18, %v937_v12  ;;  %v955_v54 = vmul.f32 %v953_v18, %v936_v13 }
 0x1c6   :  { %1229 = vrot.lane.b32.xlu1 %v1224_v58, %s2875_s5  ;;  %1227 = vrot.lane.b32.xlu0 %v1223_v61, %s2875_s5  ;;  %1253 = vst [vmem:[#allocation1] ss:$9 sm:$0xff] %v2942_v22  ;;  %v995_v6 = vpop.permute.xlu2 %994  ;;  %s2609_s5 = sld [smem:[#allocation2 + $0x4a]] }
 0x1c7   :  { %1255 = vst [vmem:[#allocation1 + $0x1] ss:$9 sm:$0xff] %v2944_v23 }
 0x1cc   :  { %v946_v46 = vpop.permute.xlu0 %945  ;;  %v948_v19 = vpop.permute.xlu1 %947 }
 0x1cd   :  { %v949_v60 = vsel %vm935_vm9, %v946_v46, %v948_v19  ;;  %v950_v51 = vsel %vm935_vm9, %v948_v19, %v946_v46  ;;  %vm1029_vm9 = vcmp.lt.s32.totalorder %v3073_v59, 15 }
 0x1ce   :  { %v1257_v17 = vld [vmem:[#allocation1 + $0x9] sm:$0xff]  ;;  %v1256_v10 = vld [vmem:[#allocation1] sm:$0xff]  ;;  %v958_v1 = vmul.f32 %v957_v50, %v950_v51  ;;  %v959_v44 = vmul.f32 %v957_v50, %v949_v60 }
 0x1cf   :  { %1262 = vrot.lane.b32.xlu0 %v1257_v17, %s2876_s9  ;;  %1267 = vst [vmem:[#allocation1] ss:$9 sm:$0xff] %v2948_v27  ;;  %1260 = vrot.lane.b32.xlu2 %v1256_v10, %s2876_s9  ;;  %v1056_v17 = vsel %vm1045_vm12, 1, %v2868_v9  ;;  %v1047_v10 = vstv %s2594_s12  ;;  %vm1139_vm12 = vmand %vm3738_vm11, %vm3386_vm8  ;;  %s2614_s12 = sld [smem:[#allocation2 + $0x1c]] }
 0x1d0   :  { %1269 = vst [vmem:[#allocation1 + $0x1] ss:$9 sm:$0xff] %v2950_v28  ;;  %v960_v48 = vadd.f32 %v958_v1, %v954_v14  ;;  %v961_v3 = vadd.f32 %v959_v44, %v955_v54  ;;  %v1051_v44 = vstv %s2595_s13  ;;  %v1057_v15 = vperm.slane %v1056_v17, 0  ;;  %s2615_s13 = sld [smem:[#allocation2 + $0x4d]] }
 0x1d1   :  { %v1058_v38 = vperm.slane %v1056_v17, 1 }
 0x1d2   :  { %v967_v32 = vsel %vm965_vm13, %v960_v48, 0.0  ;;  %v968_v34 = vsel %vm966_vm15, %v961_v3, 0.0  ;;  %vm1059_vm13 = vcmp.eq.s32.totalorder %v1057_v15, 1 }
 0x1d3   :  { %v969_v62 = vadd.f32 %v967_v32, %v922_v40  ;;  %v970_v11 = vadd.f32 %v968_v34, %v923_v43  ;;  %vm1060_vm15 = vcmp.eq.s32.totalorder %v1058_v38, 1 }
 0x1d5   :  { %v981_v4 = vpop.permute.xlu0 %980 }
 0x1d6   :  { %v983_v0 = vsel %vm982_vm1, %v979_v37, %v981_v4  ;;  %v984_v45 = vsel %vm982_vm1, %v981_v4, %v979_v37 }
 0x1d7   :  { %v1270_v5 = vld [vmem:[#allocation1] sm:$0xff]  ;;  %v1271_v35 = vld [vmem:[#allocation1 + $0x9] sm:$0xff]  ;;  %v1001_v49 = vmul.f32 %v1000_v20, %v984_v45  ;;  %v1002_v40 = vmul.f32 %v1000_v20, %v983_v0 }
 0x1d8   :  { %1274 = vrot.lane.b32.xlu1 %v1270_v5, %s2876_s9  ;;  %1318 = vst [vmem:[#allocation1] ss:$9 sm:$0xff] %v1309_v33  ;;  %1276 = vrot.lane.b32.xlu2 %v1271_v35, %s2876_s9  ;;  %v1040_v1 = vpop.permute.xlu2 %1039  ;;  %s2612_s9 = sld [smem:[#allocation2 + $0x1b]] }
 0x1d9   :  { %1320 = vst [vmem:[#allocation1 + $0x1] ss:$9 sm:$0xff] %v1310_v41 }
 0x1de   :  { %v993_v43 = vpop.permute.xlu1 %992 }
 0x1df   :  { %v996_v16 = vsel %vm982_vm1, %v993_v43, %v995_v6  ;;  %v997_v13 = vsel %vm982_vm1, %v995_v6, %v993_v43  ;;  %vm1076_vm1 = vcmp.lt.s32.totalorder %v3073_v59, 14  ;;  %v1098_v43 = vstv %s2597_s16  ;;  %s2617_s16 = sld [smem:[#allocation2 + $0x4e]] }
 0x1e0   :  { %v3818_v12 = vld [vmem:[#allocation1] sm:$0xff]  ;;  %v3820_v58 = vld [vmem:[#allocation1 + $0x9] sm:$0xff]  ;;  %v1005_v61 = vmul.f32 %v1004_v21, %v997_v13  ;;  %v1006_v18 = vmul.f32 %v1004_v21, %v996_v16 }
 0x1e1   :  { %1329 = vst [vmem:[#allocation1] ss:$9 sm:$0xff] %v2942_v22  ;;  %v1075_v35 = vpop.permute.xlu2 %1074 }
 0x1e2   :  { %1331 = vst [vmem:[#allocation1 + $0x1] ss:$9 sm:$0xff] %v2944_v23  ;;  %v1007_v50 = vadd.f32 %v1005_v61, %v1001_v49  ;;  %v1008_v47 = vadd.f32 %v1006_v18, %v1002_v40  ;;  %v1103_v49 = vsel %vm1092_vm3, 1, %v2868_v9  ;;  %v1094_v40 = vstv %s2596_s15  ;;  %s2616_s15 = sld [smem:[#allocation2 + $0x1d]] }
 0x1e3   :  { %v1104_v6 = vperm.slane %v1103_v49, 0  ;;  %v1105_v16 = vperm.slane %v1103_v49, 1  ;;  %vm1170_vm3 = vcmp.lt.s32.totalorder %v3073_v59, 3 }
 0x1e4   :  { %v1014_v14 = vsel %vm1012_vm2, %v1007_v50, 0.0  ;;  %v1015_v54 = vsel %vm1013_vm5, %v1008_v47, 0.0 }
 0x1e5   :  { %v1016_v46 = vadd.f32 %v1014_v14, %v969_v62  ;;  %v1017_v55 = vadd.f32 %v1015_v54, %v970_v11  ;;  %vm1106_vm2 = vcmp.eq.s32.totalorder %v1104_v6, 1  ;;  %vm1107_vm5 = vcmp.eq.s32.totalorder %v1105_v16, 1 }
 0x1e7   :  { %v1026_v56 = vpop.permute.xlu0 %1025  ;;  %v1028_v19 = vpop.permute.xlu1 %1027 }
 0x1e8   :  { %v1030_v24 = vsel %vm1029_vm9, %v1026_v56, %v1028_v19  ;;  %v1031_v57 = vsel %vm1029_vm9, %v1028_v19, %v1026_v56 }
 0x1e9   :  { %v1332_v60 = vld [vmem:[#allocation1] sm:$0xff]  ;;  %v1333_v51 = vld [vmem:[#allocation1 + $0x9] sm:$0xff]  ;;  %v1048_v48 = vmul.f32 %v1047_v10, %v1031_v57  ;;  %v1049_v3 = vmul.f32 %v1047_v10, %v1030_v24 }
 0x1ea   :  { %1336 = vrot.lane.b32.xlu0 %v1332_v60, %s2877_s14  ;;  %1338 = vrot.lane.b32.xlu1 %v1333_v51, %s2877_s14  ;;  %1343 = vst [vmem:[#allocation1] ss:$9 sm:$0xff] %v2948_v27 }
 0x1eb   :  { %1345 = vst [vmem:[#allocation1 + $0x1] ss:$9 sm:$0xff] %v2950_v28 }
 0x1f0   :  { %v1042_v25 = vpop.permute.xlu0 %1041 }
 0x1f1   :  { %v1043_v31 = vsel %vm1029_vm9, %v1040_v1, %v1042_v25  ;;  %v1044_v32 = vsel %vm1029_vm9, %v1042_v25, %v1040_v1  ;;  %vm1123_vm9 = vcmp.lt.s32.totalorder %v3073_v59, 13  ;;  %v1141_v25 = vstv %s2598_s18  ;;  %s2618_s18 = sld [smem:[#allocation2 + $0x1e]] }
 0x1f2   :  { %v1347_v34 = vld [vmem:[#allocation1 + $0x9] sm:$0xff]  ;;  %v1346_v62 = vld [vmem:[#allocation1] sm:$0xff]  ;;  %v1052_v11 = vmul.f32 %v1051_v44, %v1044_v32  ;;  %v1053_v33 = vmul.f32 %v1051_v44, %v1043_v31  ;;  %v1145_v32 = vstv %s2599_s19  ;;  %s2619_s19 = sld [smem:[#allocation2 + $0x4f]] }
 0x1f3   :  { %1352 = vrot.lane.b32.xlu0 %v1347_v34, %s2877_s14  ;;  %1376 = vst [vmem:[#allocation1] ss:$9 sm:$0xff] %v2942_v22  ;;  %1350 = vrot.lane.b32.xlu2 %v1346_v62, %s2877_s14  ;;  %v1120_v51 = vpop.permute.xlu2 %1119  ;;  %s2887_s14 = smov 99  }
 0x1f4   :  { %1378 = vst [vmem:[#allocation1 + $0x1] ss:$9 sm:$0xff] %v2944_v23  ;;  %v1054_v37 = vadd.f32 %v1052_v11, %v1048_v48  ;;  %v1055_v41 = vadd.f32 %v1053_v33, %v1049_v3  ;;  %v1150_v3 = vsel %vm1139_vm12, 1, %v2868_v9 }
 0x1f5   :  { %v1151_v34 = vperm.slane %v1150_v3, 0  ;;  %v1152_v62 = vperm.slane %v1150_v3, 1 }
 0x1f6   :  { %v1061_v4 = vsel %vm1059_vm13, %v1054_v37, 0.0  ;;  %v1062_v0 = vsel %vm1060_vm15, %v1055_v41, 0.0 }
 0x1f7   :  { %v1063_v45 = vadd.f32 %v1061_v4, %v1016_v46  ;;  %v1064_v5 = vadd.f32 %v1062_v0, %v1017_v55  ;;  %vm1153_vm11 = vcmp.eq.s32.totalorder %v1151_v34, 1  ;;  %vm1154_vm13 = vcmp.eq.s32.totalorder %v1152_v62, 1 }
 0x1f9   :  { %v1073_v39 = vpop.permute.xlu1 %1072 }
 0x1fa   :  { %v1077_v20 = vsel %vm1076_vm1, %v1073_v39, %v1075_v35  ;;  %v1078_v21 = vsel %vm1076_vm1, %v1075_v35, %v1073_v39 }
 0x1fb   :  { %v1379_v52 = vld [vmem:[#allocation1] sm:$0xff]  ;;  %v1380_v36 = vld [vmem:[#allocation1 + $0x9] sm:$0xff]  ;;  %v1095_v13 = vmul.f32 %v1094_v40, %v1078_v21  ;;  %v1096_v61 = vmul.f32 %v1094_v40, %v1077_v20 }
 0x1fc   :  { %1383 = vrot.lane.b32.xlu1 %v1379_v52, %s2878_s17  ;;  %1390 = vst [vmem:[#allocation1] ss:$9 sm:$0xff] %v2948_v27  ;;  %1385 = vrot.lane.b32.xlu2 %v1380_v36, %s2878_s17  ;;  %v1136_v31 = vpop.permute.xlu2 %1135  ;;  %v3878_v20 = vld [vmem:[#allocation6] sm:$0x3] }
 0x1fd   :  { %1392 = vst [vmem:[#allocation1 + $0x1] ss:$9 sm:$0xff] %v2950_v28  ;;  %vm151_vm15 = vcmp.ge.s32.totalorder %v3878_v20, 0 }
 0x202   :  { %v1089_v18 = vpop.permute.xlu1 %1088  ;;  %v1087_v50 = vpop.permute.xlu0 %1086 }
 0x203   :  { %v1090_v47 = vsel %vm1076_vm1, %v1087_v50, %v1089_v18  ;;  %v1091_v14 = vsel %vm1076_vm1, %v1089_v18, %v1087_v50  ;;  %vm152_vm1 = vcmp.lt.s32.totalorder %v3878_v20, 16 }
 0x204   :  { %v1394_v54 = vld [vmem:[#allocation1 + $0x9] sm:$0xff]  ;;  %v1393_v46 = vld [vmem:[#allocation1] sm:$0xff]  ;;  %v1099_v55 = vmul.f32 %v1098_v43, %v1091_v14  ;;  %v1100_v56 = vmul.f32 %v1098_v43, %v1090_v47  ;;  %v1188_v47 = vstv %s2600_s21  ;;  %s2620_s21 = sld [smem:[#allocation2 + $0x1f]] }
 0x205   :  { %1399 = vrot.lane.b32.xlu1 %v1394_v54, %s2878_s17  ;;  %1397 = vrot.lane.b32.xlu0 %v1393_v46, %s2878_s17  ;;  %1423 = vst [vmem:[#allocation1] ss:$9 sm:$0xff] %v2942_v22  ;;  %v1192_v54 = vstv %s2601_s22  ;;  %s2888_s17 = smov 98   ;;  %s2621_s22 = sld [smem:[#allocation2 + $0x50]] }
 0x206   :  { %1425 = vst [vmem:[#allocation1 + $0x1] ss:$9 sm:$0xff] %v2944_v23  ;;  %v1101_v19 = vadd.f32 %v1099_v55, %v1095_v13  ;;  %v1102_v24 = vadd.f32 %v1100_v56, %v1096_v61 }
 0x208   :  { %v1108_v57 = vsel %vm1106_vm2, %v1101_v19, 0.0  ;;  %v1109_v60 = vsel %vm1107_vm5, %v1102_v24, 0.0  ;;  %vm3883_vm2 = vmand %vm151_vm15, %vm152_vm1 }
 0x209   :  { %v1110_v17 = vadd.f32 %v1108_v57, %v1063_v45  ;;  %v1111_v10 = vadd.f32 %v1109_v60, %v1064_v5  ;;  %vm1186_vm5 = vmand %vm3883_vm2, %vm3083_vm6 }
 0x20a   :  { %v1197_v50 = vsel %vm1186_vm5, 1, %v2868_v9  ;;  %vm1280_vm5 = vmand %vm3883_vm2, %vm3160_vm0 }
 0x20b   :  { %v1122_v1 = vpop.permute.xlu0 %1121  ;;  %v1198_v46 = vperm.slane %v1197_v50, 0  ;;  %v1199_v55 = vperm.slane %v1197_v50, 1 }
 0x20c   :  { %v1124_v44 = vsel %vm1123_vm9, %v1120_v51, %v1122_v1  ;;  %v1125_v15 = vsel %vm1123_vm9, %v1122_v1, %v1120_v51 }
 0x20d   :  { %v1427_v38 = vld [vmem:[#allocation1 + $0x9] sm:$0xff]  ;;  %v1426_v48 = vld [vmem:[#allocation1] sm:$0xff]  ;;  %v1142_v11 = vmul.f32 %v1141_v25, %v1125_v15  ;;  %v1143_v33 = vmul.f32 %v1141_v25, %v1124_v44  ;;  %vm1201_vm12 = vcmp.eq.s32.totalorder %v1199_v55, 1 }
 0x20e   :  { %1432 = vrot.lane.b32.xlu0 %v1427_v38, %s2879_s20  ;;  %1437 = vst [vmem:[#allocation1] ss:$9 sm:$0xff] %v2948_v27  ;;  %1430 = vrot.lane.b32.xlu2 %v1426_v48, %s2879_s20  ;;  %v1181_v14 = vpop.permute.xlu2 %1180 }
 0x20f   :  { %1439 = vst [vmem:[#allocation1 + $0x1] ss:$9 sm:$0xff] %v2950_v28 }
 0x214   :  { %v1134_v37 = vpop.permute.xlu1 %1133 }
 0x215   :  { %v1137_v7 = vsel %vm1123_vm9, %v1134_v37, %v1136_v31  ;;  %v1138_v41 = vsel %vm1123_vm9, %v1136_v31, %v1134_v37  ;;  %vm1200_vm9 = vcmp.eq.s32.totalorder %v1198_v46, 1 }
 0x216   :  { %v1440_v4 = vld [vmem:[#allocation1] sm:$0xff]  ;;  %v1441_v0 = vld [vmem:[#allocation1 + $0x9] sm:$0xff]  ;;  %v1146_v45 = vmul.f32 %v1145_v32, %v1138_v41  ;;  %v1147_v5 = vmul.f32 %v1145_v32, %v1137_v7  ;;  %v1235_v7 = vstv %s2602_s24  ;;  %v1239_v41 = vstv %s2603_s25  ;;  %s2622_s24 = sld [smem:[#allocation2 + $0x20]] }
 0x217   :  { %1444 = vrot.lane.b32.xlu1 %v1440_v4, %s2879_s20  ;;  %1470 = vst [vmem:[#allocation1] ss:$9 sm:$0xff] %v2942_v22  ;;  %1446 = vrot.lane.b32.xlu2 %v1441_v0, %s2879_s20  ;;  %v1216_v31 = vpop.permute.xlu2 %1215  ;;  %s2889_s20 = smov 97   ;;  %s2623_s25 = sld [smem:[#allocation2 + $0x51]] }
 0x218   :  { %1472 = vst [vmem:[#allocation1 + $0x1] ss:$9 sm:$0xff] %v2944_v23  ;;  %v1148_v35 = vadd.f32 %v1146_v45, %v1142_v11  ;;  %v1149_v39 = vadd.f32 %v1147_v5, %v1143_v33 }
 0x21a   :  { %v1155_v21 = vsel %vm1153_vm11, %v1148_v35, 0.0  ;;  %v1156_v52 = vsel %vm1154_vm13, %v1149_v39, 0.0  ;;  %vm1217_vm11 = vcmp.lt.s32.totalorder %v3073_v59, 2  ;;  %vm1233_vm13 = vmand %vm3883_vm2, %vm3104_vm10 }
 0x21b   :  { %v1157_v36 = vadd.f32 %v1155_v21, %v1110_v17  ;;  %v1158_v49 = vadd.f32 %v1156_v52, %v1111_v10  ;;  %v1244_v37 = vsel %vm1233_vm13, 1, %v2868_v9  ;;  %vm1340_vm13 = vcmp.lt.s32.totalorder %v3073_v59, 127 }
 0x21c   :  { %v1245_v4 = vperm.slane %v1244_v37, 0  ;;  %v1246_v0 = vperm.slane %v1244_v37, 1 }
 0x21d   :  { %v1167_v43 = vpop.permute.xlu0 %1166  ;;  %v1169_v6 = vpop.permute.xlu1 %1168 }
 0x21e   :  { %v1171_v16 = vsel %vm1170_vm3, %v1167_v43, %v1169_v6  ;;  %v1172_v13 = vsel %vm1170_vm3, %v1169_v6, %v1167_v43  ;;  %vm1247_vm15 = vcmp.eq.s32.totalorder %v1245_v4, 1  ;;  %vm1248_vm1 = vcmp.eq.s32.totalorder %v1246_v0, 1 }
 0x21f   :  { %v1473_v61 = vld [vmem:[#allocation1] sm:$0xff]  ;;  %v1474_v18 = vld [vmem:[#allocation1 + $0x9] sm:$0xff]  ;;  %v1189_v56 = vmul.f32 %v1188_v47, %v1172_v13  ;;  %v1190_v19 = vmul.f32 %v1188_v47, %v1171_v16 }
 0x220   :  { %1477 = vrot.lane.b32.xlu0 %v1473_v61, %s2880_s23  ;;  %1479 = vrot.lane.b32.xlu1 %v1474_v18, %s2880_s23  ;;  %1484 = vst [vmem:[#allocation1] ss:$9 sm:$0xff] %v2948_v27 }
 0x221   :  { %1486 = vst [vmem:[#allocation1 + $0x1] ss:$9 sm:$0xff] %v2950_v28 }
 0x226   :  { %v1183_v24 = vpop.permute.xlu0 %1182 }
 0x227   :  { %v1184_v57 = vsel %vm1170_vm3, %v1181_v14, %v1183_v24  ;;  %v1185_v60 = vsel %vm1170_vm3, %v1183_v24, %v1181_v14  ;;  %vm1264_vm3 = vcmp.lt.s32.totalorder %v3073_v59, 1  ;;  %v1291_v24 = vsel %vm1280_vm5, 1, %v2868_v9 }
 0x228   :  { %v1488_v51 = vld [vmem:[#allocation1 + $0x9] sm:$0xff]  ;;  %v1487_v17 = vld [vmem:[#allocation1] sm:$0xff]  ;;  %v1193_v10 = vmul.f32 %v1192_v54, %v1185_v60  ;;  %v1194_v1 = vmul.f32 %v1192_v54, %v1184_v57  ;;  %v1282_v57 = vstv %s2604_s27  ;;  %s2624_s27 = sld [smem:[#allocation2 + $0x21]] }
 0x229   :  { %1493 = vrot.lane.b32.xlu0 %v1488_v51, %s2880_s23  ;;  %1517 = vst [vmem:[#allocation1] ss:$9 sm:$0xff] %v2942_v22  ;;  %1491 = vrot.lane.b32.xlu2 %v1487_v17, %s2880_s23  ;;  %v1261_v50 = vpop.permute.xlu2 %1260  ;;  %v1286_v51 = vstv %s2605_s2  ;;  %v1292_v17 = vperm.slane %v1291_v24, 0  ;;  %s2890_s23 = smov 96   ;;  %s2625_s2 = sld [smem:[#allocation2 + $0x52]] }
 0x22a   :  { %1519 = vst [vmem:[#allocation1 + $0x1] ss:$9 sm:$0xff] %v2944_v23  ;;  %v1195_v44 = vadd.f32 %v1193_v10, %v1189_v56  ;;  %v1196_v15 = vadd.f32 %v1194_v1, %v1190_v19  ;;  %v1293_v10 = vperm.slane %v1291_v24, 1 }
 0x22c   :  { %v1202_v38 = vsel %vm1200_vm9, %v1195_v44, 0.0  ;;  %v1203_v48 = vsel %vm1201_vm12, %v1196_v15, 0.0  ;;  %vm1294_vm9 = vcmp.eq.s32.totalorder %v1292_v17, 1  ;;  %vm1295_vm12 = vcmp.eq.s32.totalorder %v1293_v10, 1 }
 0x22d   :  { %v1204_v3 = vadd.f32 %v1202_v38, %v1157_v36  ;;  %v1205_v25 = vadd.f32 %v1203_v48, %v1158_v49 }
 0x22f   :  { %v1214_v32 = vpop.permute.xlu1 %1213 }
 0x230   :  { %v1218_v34 = vsel %vm1217_vm11, %v1214_v32, %v1216_v31  ;;  %v1219_v62 = vsel %vm1217_vm11, %v1216_v31, %v1214_v32 }
 0x231   :  { %v1520_v11 = vld [vmem:[#allocation1] sm:$0xff]  ;;  %v1521_v33 = vld [vmem:[#allocation1 + $0x9] sm:$0xff]  ;;  %v1236_v45 = vmul.f32 %v1235_v7, %v1219_v62  ;;  %v1237_v5 = vmul.f32 %v1235_v7, %v1218_v34 }
 0x232   :  { %1524 = vrot.lane.b32.xlu1 %v1520_v11, %s2881_s26  ;;  %1531 = vst [vmem:[#allocation1] ss:$9 sm:$0xff] %v2948_v27  ;;  %1526 = vrot.lane.b32.xlu2 %v1521_v33, %s2881_s26  ;;  %v1277_v60 = vpop.permute.xlu2 %1276 }
 0x233   :  { %1533 = vst [vmem:[#allocation1 + $0x1] ss:$9 sm:$0xff] %v2950_v28 }
 0x238   :  { %v1230_v35 = vpop.permute.xlu1 %1229  ;;  %v1228_v39 = vpop.permute.xlu0 %1227 }
 0x239   :  { %v1231_v21 = vsel %vm1217_vm11, %v1228_v39, %v1230_v35  ;;  %v1232_v52 = vsel %vm1217_vm11, %v1230_v35, %v1228_v39  ;;  %vm1300_vm11 = vmand %vm3883_vm2, %vm3213_vm7 }
 0x23a   :  { %v1535_v36 = vld [vmem:[#allocation1 + $0x9] sm:$0xff]  ;;  %v1534_v49 = vld [vmem:[#allocation1] sm:$0xff]  ;;  %v1240_v43 = vmul.f32 %v1239_v41, %v1232_v52  ;;  %v1241_v6 = vmul.f32 %v1239_v41, %v1231_v21 }
 0x23b   :  { %1540 = vrot.lane.b32.xlu1 %v1535_v36, %s2881_s26  ;;  %1538 = vrot.lane.b32.xlu0 %v1534_v49, %s2881_s26  ;;  %1564 = vst [vmem:[#allocation1] ss:$9 sm:$0xff] %v2942_v22  ;;  %s2891_s26 = smov 95  }
 0x23c   :  { %1566 = vst [vmem:[#allocation1 + $0x1] ss:$9 sm:$0xff] %v2944_v23  ;;  %v1242_v16 = vadd.f32 %v1240_v43, %v1236_v45  ;;  %v1243_v13 = vadd.f32 %v1241_v6, %v1237_v5  ;;  %v1311_v5 = vsel %vm1300_vm11, 1, %v2868_v9  ;;  %v1358_v6 = vstv %s2608_s30  ;;  %vm1403_vm11 = vmand %vm3883_vm2, %vm3339_vm14  ;;  %s2627_s30 = sld [smem:[#allocation2 + $0x53]] }
 0x23d   :  { %v1312_v36 = vperm.slane %v1311_v5, 0  ;;  %v1313_v49 = vperm.slane %v1311_v5, 1 }
 0x23e   :  { %v1249_v61 = vsel %vm1247_vm15, %v1242_v16, 0.0  ;;  %v1250_v18 = vsel %vm1248_vm1, %v1243_v13, 0.0  ;;  %vm1356_vm15 = vmand %vm3883_vm2, %vm3288_vm4 }
 0x23f   :  { %v1251_v47 = vadd.f32 %v1249_v61, %v1204_v3  ;;  %v1252_v14 = vadd.f32 %v1250_v18, %v1205_v25  ;;  %v1367_v43 = vsel %vm1356_vm15, 1, %v2868_v9  ;;  %vm3959_vm1 = vcmp.eq.s32.totalorder %v1312_v36, 1 }
 0x240   :  { %v1362_v18 = vstv %s2609_s5  ;;  %s2893_s5 = smov 93  }
 0x241   :  { %v1263_v54 = vpop.permute.xlu0 %1262 }
 0x242   :  { %v1265_v46 = vsel %vm1264_vm3, %v1261_v50, %v1263_v54  ;;  %v1266_v55 = vsel %vm1264_vm3, %v1263_v54, %v1261_v50  ;;  %v1368_v50 = vperm.slane %v1367_v43, 0 }
 0x243   :  { %v1568_v56 = vld [vmem:[#allocation1 + $0x9] sm:$0xff]  ;;  %v1567_v19 = vld [vmem:[#allocation1] sm:$0xff]  ;;  %v1283_v1 = vmul.f32 %v1282_v57, %v1266_v55  ;;  %v1284_v44 = vmul.f32 %v1282_v57, %v1265_v46 }
 0x244   :  { %1573 = vrot.lane.b32.xlu0 %v1568_v56, %s2882_s28  ;;  %1578 = vst [vmem:[#allocation1] ss:$9 sm:$0xff] %v2948_v27  ;;  %1571 = vrot.lane.b32.xlu2 %v1567_v19, %s2882_s28  ;;  %vm1370_vm5 = vcmp.eq.s32.totalorder %v1368_v50, 1 }
 0x245   :  { %1580 = vst [vmem:[#allocation1 + $0x1] ss:$9 sm:$0xff] %v2950_v28 }
 0x24a   :  { %v1275_v15 = vpop.permute.xlu1 %1274 }
 0x24b   :  { %v1278_v38 = vsel %vm1264_vm3, %v1275_v15, %v1277_v60  ;;  %v1279_v48 = vsel %vm1264_vm3, %v1277_v60, %v1275_v15  ;;  %vm3963_vm3 = vcmp.eq.s32.totalorder %v1313_v49, 1  ;;  %v1325_v60 = vsel %vm3959_vm1, %v3818_v12, 0.0 }
 0x24c   :  { %v1581_v3 = vld [vmem:[#allocation1] sm:$0xff]  ;;  %v1582_v25 = vld [vmem:[#allocation1 + $0x9] sm:$0xff]  ;;  %v1287_v31 = vmul.f32 %v1286_v51, %v1279_v48  ;;  %v1288_v32 = vmul.f32 %v1286_v51, %v1278_v38  ;;  %v1326_v57 = vsel %vm3963_vm3, %v3820_v58, 0.0  ;;  %vm1434_vm1 = vcmp.lt.s32.totalorder %v3073_v59, 125  ;;  %vm1450_vm3 = vmand %vm3883_vm2, %vm3386_vm8 }
 0x24d   :  { %1585 = vrot.lane.b32.xlu1 %v1581_v3, %s2882_s28  ;;  %1611 = vst [vmem:[#allocation1] ss:$9 sm:$0xff] %v2942_v22  ;;  %1587 = vrot.lane.b32.xlu2 %v1582_v25, %s2882_s28  ;;  %v1351_v13 = vpop.permute.xlu2 %1350  ;;  %s2892_s28 = smov 94  }
 0x24e   :  { %1613 = vst [vmem:[#allocation1 + $0x1] ss:$9 sm:$0xff] %v2944_v23  ;;  %v1289_v34 = vadd.f32 %v1287_v31, %v1283_v1  ;;  %v1290_v62 = vadd.f32 %v1288_v32, %v1284_v44 }
 0x250   :  { %v1296_v11 = vsel %vm1294_vm9, %v1289_v34, 0.0  ;;  %v1297_v33 = vsel %vm1295_vm12, %v1290_v62, 0.0  ;;  %vm1387_vm12 = vcmp.lt.s32.totalorder %v3073_v59, 126 }
 0x251   :  { %v1298_v37 = vadd.f32 %v1296_v11, %v1251_v47  ;;  %v1299_v7 = vadd.f32 %v1297_v33, %v1252_v14  ;;  %v1369_v47 = vperm.slane %v1367_v43, 1  ;;  %v1414_v11 = vsel %vm1403_vm11, 1, %v2868_v9 }
 0x252   :  { %v1405_v33 = vstv %s2610_s1  ;;  %vm1481_vm11 = vcmp.lt.s32.totalorder %v3073_v59, 115  ;;  %s2629_s1 = sld [smem:[#allocation2 + $0x54]] }
 0x253   :  { %vm1371_vm9 = vcmp.eq.s32.totalorder %v1369_v47, 1  ;;  %v1328_v44 = vadd.f32 %v1326_v57, %v1299_v7  ;;  %v1327_v15 = vadd.f32 %v1325_v60, %v1298_v37  ;;  %v1409_v37 = vstv %s2611_s3  ;;  %s2894_s3 = smov 83  }
 0x254   :  { %v1415_v7 = vperm.slane %v1414_v11, 0  ;;  %v1456_v57 = vstv %s2613_s10  ;;  %s2895_s10 = smov 82  }
 0x255   :  { %v1614_v41 = vld [vmem:[#allocation1] sm:$0xff]  ;;  %v1615_v4 = vld [vmem:[#allocation1 + $0x9] sm:$0xff] }
 0x256   :  { %1618 = vrot.lane.b32.xlu0 %v1614_v41, %s2883_s29  ;;  %1620 = vrot.lane.b32.xlu1 %v1615_v4, %s2883_s29  ;;  %1625 = vst [vmem:[#allocation1] ss:$9 sm:$0xff] %v2948_v27  ;;  %v1386_v12 = vpop.permute.xlu2 %1385  ;;  %v1416_v41 = vperm.slane %v1414_v11, 1 }
 0x257   :  { %1627 = vst [vmem:[#allocation1 + $0x1] ss:$9 sm:$0xff] %v2950_v28 }
 0x258   :  { %vm1418_vm15 = vcmp.eq.s32.totalorder %v1416_v41, 1 }
 0x25c   :  { %v1337_v0 = vpop.permute.xlu0 %1336  ;;  %v1339_v45 = vpop.permute.xlu1 %1338 }
 0x25d   :  { %v1341_v35 = vsel %vm1340_vm13, %v1337_v0, %v1339_v45  ;;  %v1342_v39 = vsel %vm1340_vm13, %v1339_v45, %v1337_v0 }
 0x25e   :  { %v1629_v21 = vld [vmem:[#allocation1 + $0x9] sm:$0xff]  ;;  %v1628_v52 = vld [vmem:[#allocation1] sm:$0xff]  ;;  %v1359_v14 = vmul.f32 %v1358_v6, %v1341_v35  ;;  %v1360_v54 = vmul.f32 %v1358_v6, %v1342_v39 }
 0x25f   :  { %1634 = vrot.lane.b32.xlu0 %v1629_v21, %s2883_s29  ;;  %1658 = vst [vmem:[#allocation1] ss:$9 sm:$0xff] %v2942_v22  ;;  %1632 = vrot.lane.b32.xlu2 %v1628_v52, %s2883_s29  ;;  %s2626_s29 = sld [smem:[#allocation2 + $0x22]] }
 0x260   :  { %1660 = vst [vmem:[#allocation1 + $0x1] ss:$9 sm:$0xff] %v2944_v23 }
 0x265   :  { %v1353_v46 = vpop.permute.xlu0 %1352 }
 0x266   :  { %v1354_v55 = vsel %vm1340_vm13, %v1351_v13, %v1353_v46  ;;  %v1355_v56 = vsel %vm1340_vm13, %v1353_v46, %v1351_v13  ;;  %vm1417_vm13 = vcmp.eq.s32.totalorder %v1415_v7, 1 }
 0x267   :  { %v1661_v19 = vld [vmem:[#allocation1] sm:$0xff]  ;;  %v1662_v24 = vld [vmem:[#allocation1 + $0x9] sm:$0xff]  ;;  %v1363_v51 = vmul.f32 %v1362_v18, %v1354_v55  ;;  %v1364_v17 = vmul.f32 %v1362_v18, %v1355_v56  ;;  %v1461_v56 = vsel %vm1450_vm3, 1, %v2868_v9 }
 0x268   :  { %1665 = vrot.lane.b32.xlu1 %v1661_v19, %s2884_s0  ;;  %1672 = vst [vmem:[#allocation1] ss:$9 sm:$0xff] %v2948_v27  ;;  %1667 = vrot.lane.b32.xlu2 %v1662_v24, %s2884_s0  ;;  %v1431_v61 = vpop.permute.xlu2 %1430  ;;  %v1452_v19 = vstv %s2612_s9  ;;  %v1462_v60 = vperm.slane %v1461_v56, 0  ;;  %s2631_s9 = sld [smem:[#allocation2 + $0x55]] }
 0x269   :  { %1674 = vst [vmem:[#allocation1 + $0x1] ss:$9 sm:$0xff] %v2950_v28  ;;  %v1365_v10 = vadd.f32 %v1363_v51, %v1359_v14  ;;  %v1366_v1 = vadd.f32 %v1364_v17, %v1360_v54  ;;  %v1463_v51 = vperm.slane %v1461_v56, 1 }
 0x26a   :  { %vm1464_vm2 = vcmp.eq.s32.totalorder %v1462_v60, 1 }
 0x26b   :  { %v1372_v58 = vsel %vm1370_vm5, %v1365_v10, 0.0  ;;  %v1373_v38 = vsel %vm1371_vm9, %v1366_v1, 0.0  ;;  %vm1465_vm5 = vcmp.eq.s32.totalorder %v1463_v51, 1 }
 0x26c   :  { %v1374_v48 = vadd.f32 %v1372_v58, %v1327_v15  ;;  %v1375_v3 = vadd.f32 %v1373_v38, %v1328_v44  ;;  %v154_v15 = vadd.s32 1, %v3878_v20 }
 0x26e   :  { %v1384_v25 = vpop.permute.xlu1 %1383  ;;  %vm155_vm9 = vcmp.ge.s32.totalorder %v154_v15, 0 }
 0x26f   :  { %v1388_v31 = vsel %vm1387_vm12, %v1384_v25, %v1386_v12  ;;  %v1389_v32 = vsel %vm1387_vm12, %v1386_v12, %v1384_v25 }
 0x270   :  { %v1676_v34 = vld [vmem:[#allocation1 + $0x9] sm:$0xff]  ;;  %v1675_v62 = vld [vmem:[#allocation1] sm:$0xff]  ;;  %v1406_v4 = vmul.f32 %v1405_v33, %v1388_v31  ;;  %v1407_v0 = vmul.f32 %v1405_v33, %v1389_v32 }
 0x271   :  { %1681 = vrot.lane.b32.xlu1 %v1676_v34, %s2884_s0  ;;  %1679 = vrot.lane.b32.xlu0 %v1675_v62, %s2884_s0  ;;  %1705 = vst [vmem:[#allocation1] ss:$9 sm:$0xff] %v2942_v22  ;;  %v1447_v24 = vpop.permute.xlu2 %1446  ;;  %s2628_s0 = sld [smem:[#allocation2 + $0x23]] }
 0x272   :  { %1707 = vst [vmem:[#allocation1 + $0x1] ss:$9 sm:$0xff] %v2944_v23 }
 0x277   :  { %v1400_v45 = vpop.permute.xlu1 %1399  ;;  %v1398_v5 = vpop.permute.xlu0 %1397 }
 0x278   :  { %v1401_v35 = vsel %vm1387_vm12, %v1398_v5, %v1400_v45  ;;  %v1402_v39 = vsel %vm1387_vm12, %v1400_v45, %v1398_v5  ;;  %vm156_vm12 = vcmp.lt.s32.totalorder %v154_v15, 16  ;;  %v1499_v45 = vstv %s2614_s12  ;;  %s2633_s12 = sld [smem:[#allocation2 + $0x56]] }
 0x279   :  { %v1709_v21 = vld [vmem:[#allocation1 + $0x9] sm:$0xff]  ;;  %v1708_v52 = vld [vmem:[#allocation1] sm:$0xff]  ;;  %v1410_v36 = vmul.f32 %v1409_v37, %v1401_v35  ;;  %v1411_v49 = vmul.f32 %v1409_v37, %v1402_v39  ;;  %v1503_v35 = vstv %s2615_s13  ;;  %s2896_s13 = smov 81  }
 0x27a   :  { %1714 = vrot.lane.b32.xlu0 %v1709_v21, %s2885_s8  ;;  %1719 = vst [vmem:[#allocation1] ss:$9 sm:$0xff] %v2948_v27  ;;  %1712 = vrot.lane.b32.xlu2 %v1708_v52, %s2885_s8 }
 0x27b   :  { %1721 = vst [vmem:[#allocation1 + $0x1] ss:$9 sm:$0xff] %v2950_v28  ;;  %v1412_v43 = vadd.f32 %v1410_v36, %v1406_v4  ;;  %v1413_v6 = vadd.f32 %v1411_v49, %v1407_v0 }
 0x27d   :  { %v1419_v16 = vsel %vm1417_vm13, %v1412_v43, 0.0  ;;  %v1420_v13 = vsel %vm1418_vm15, %v1413_v6, 0.0  ;;  %vm4017_vm13 = vmand %vm155_vm9, %vm156_vm12 }
 0x27e   :  { %v1421_v18 = vadd.f32 %v1419_v16, %v1374_v48  ;;  %v1422_v50 = vadd.f32 %v1420_v13, %v1375_v3  ;;  %vm1497_vm15 = vmand %vm4017_vm13, %vm3083_vm6 }
 0x27f   :  { %v1508_v0 = vsel %vm1497_vm15, 1, %v2868_v9  ;;  %vm1591_vm15 = vmand %vm4017_vm13, %vm3160_vm0 }
 0x280   :  { %v1433_v47 = vpop.permute.xlu0 %1432  ;;  %v1509_v39 = vperm.slane %v1508_v0, 0  ;;  %v1510_v21 = vperm.slane %v1508_v0, 1 }
 0x281   :  { %v1435_v14 = vsel %vm1434_vm1, %v1431_v61, %v1433_v47  ;;  %v1436_v54 = vsel %vm1434_vm1, %v1433_v47, %v1431_v61 }
 0x282   :  { %v1722_v46 = vld [vmem:[#allocation1] sm:$0xff]  ;;  %v1723_v55 = vld [vmem:[#allocation1 + $0x9] sm:$0xff]  ;;  %v1453_v17 = vmul.f32 %v1452_v19, %v1435_v14  ;;  %v1454_v10 = vmul.f32 %v1452_v19, %v1436_v54  ;;  %vm1512_vm3 = vcmp.eq.s32.totalorder %v1510_v21, 1  ;;  %v1602_v21 = vsel %vm1591_vm15, 1, %v2868_v9  ;;  %vm1685_vm15 = vmand %vm4017_vm13, %vm3288_vm4 }
 0x283   :  { %1726 = vrot.lane.b32.xlu1 %v1722_v46, %s2885_s8  ;;  %1752 = vst [vmem:[#allocation1] ss:$9 sm:$0xff] %v2942_v22  ;;  %1728 = vrot.lane.b32.xlu2 %v1723_v55, %s2885_s8  ;;  %v1492_v5 = vpop.permute.xlu2 %1491  ;;  %s2630_s8 = sld [smem:[#allocation2 + $0x24]] }
 0x284   :  { %1754 = vst [vmem:[#allocation1 + $0x1] ss:$9 sm:$0xff] %v2944_v23 }
 0x289   :  { %v1445_v1 = vpop.permute.xlu1 %1444 }
 0x28a   :  { %v1448_v40 = vsel %vm1434_vm1, %v1445_v1, %v1447_v24  ;;  %v1449_v44 = vsel %vm1434_vm1, %v1447_v24, %v1445_v1  ;;  %vm1511_vm1 = vcmp.eq.s32.totalorder %v1509_v39, 1  ;;  %v1550_v1 = vstv %s2617_s16  ;;  %s2897_s16 = smov 80  }
 0x28b   :  { %v1755_v58 = vld [vmem:[#allocation1] sm:$0xff]  ;;  %v1756_v38 = vld [vmem:[#allocation1 + $0x9] sm:$0xff]  ;;  %v1457_v48 = vmul.f32 %v1456_v57, %v1448_v40  ;;  %v1458_v3 = vmul.f32 %v1456_v57, %v1449_v44 }
 0x28c   :  { %1759 = vrot.lane.b32.xlu0 %v1755_v58, %s2886_s11  ;;  %1761 = vrot.lane.b32.xlu1 %v1756_v38, %s2886_s11  ;;  %1766 = vst [vmem:[#allocation1] ss:$9 sm:$0xff] %v2948_v27  ;;  %v1527_v56 = vpop.permute.xlu2 %1526 }
 0x28d   :  { %1768 = vst [vmem:[#allocation1 + $0x1] ss:$9 sm:$0xff] %v2950_v28  ;;  %v1459_v12 = vadd.f32 %v1457_v48, %v1453_v17  ;;  %v1460_v25 = vadd.f32 %v1458_v3, %v1454_v10  ;;  %v1546_v10 = vstv %s2616_s15  ;;  %s2635_s15 = sld [smem:[#allocation2 + $0x57]] }
 0x28f   :  { %v1466_v31 = vsel %vm1464_vm2, %v1459_v12, 0.0  ;;  %v1467_v32 = vsel %vm1465_vm5, %v1460_v25, 0.0  ;;  %vm1528_vm2 = vcmp.lt.s32.totalorder %v3073_v59, 114  ;;  %vm1544_vm5 = vmand %vm4017_vm13, %vm3104_vm10 }
 0x290   :  { %v1468_v20 = vadd.f32 %v1466_v31, %v1421_v18  ;;  %v1469_v34 = vadd.f32 %v1467_v32, %v1422_v50  ;;  %v1555_v17 = vsel %vm1544_vm5, 1, %v2868_v9  ;;  %vm1638_vm5 = vmand %vm4017_vm13, %vm3213_vm7 }
 0x291   :  { %v1556_v40 = vperm.slane %v1555_v17, 0  ;;  %v1557_v44 = vperm.slane %v1555_v17, 1 }
 0x292   :  { %v1478_v11 = vpop.permute.xlu0 %1477  ;;  %v1480_v33 = vpop.permute.xlu1 %1479 }
 0x293   :  { %v1482_v37 = vsel %vm1481_vm11, %v1478_v11, %v1480_v33  ;;  %v1483_v7 = vsel %vm1481_vm11, %v1480_v33, %v1478_v11  ;;  %vm1558_vm9 = vcmp.eq.s32.totalorder %v1556_v40, 1  ;;  %vm1559_vm12 = vcmp.eq.s32.totalorder %v1557_v44, 1 }
 0x294   :  { %v1770_v41 = vld [vmem:[#allocation1 + $0x9] sm:$0xff]  ;;  %v1769_v4 = vld [vmem:[#allocation1] sm:$0xff]  ;;  %v1500_v52 = vmul.f32 %v1499_v45, %v1482_v37  ;;  %v1501_v36 = vmul.f32 %v1499_v45, %v1483_v7 }
 0x295   :  { %1775 = vrot.lane.b32.xlu0 %v1770_v41, %s2886_s11  ;;  %1799 = vst [vmem:[#allocation1] ss:$9 sm:$0xff] %v2942_v22  ;;  %1773 = vrot.lane.b32.xlu2 %v1769_v4, %s2886_s11  ;;  %s2632_s11 = sld [smem:[#allocation2 + $0x25]] }
 0x296   :  { %1801 = vst [vmem:[#allocation1 + $0x1] ss:$9 sm:$0xff] %v2944_v23 }
 0x29b   :  { %v1494_v49 = vpop.permute.xlu0 %1493 }
 0x29c   :  { %v1495_v43 = vsel %vm1481_vm11, %v1492_v5, %v1494_v49  ;;  %v1496_v6 = vsel %vm1481_vm11, %v1494_v49, %v1492_v5  ;;  %vm1575_vm11 = vcmp.lt.s32.totalorder %v3073_v59, 113  ;;  %v1597_v49 = vstv %s2619_s19  ;;  %s2898_s19 = smov 79  }
 0x29d   :  { %v1802_v16 = vld [vmem:[#allocation1] sm:$0xff]  ;;  %v1803_v13 = vld [vmem:[#allocation1 + $0x9] sm:$0xff]  ;;  %v1504_v61 = vmul.f32 %v1503_v35, %v1495_v43  ;;  %v1505_v18 = vmul.f32 %v1503_v35, %v1496_v6  ;;  %v1603_v43 = vperm.slane %v1602_v21, 0  ;;  %v1604_v6 = vperm.slane %v1602_v21, 1 }
 0x29e   :  { %1806 = vrot.lane.b32.xlu1 %v1802_v16, %s2887_s14  ;;  %1813 = vst [vmem:[#allocation1] ss:$9 sm:$0xff] %v2948_v27  ;;  %1808 = vrot.lane.b32.xlu2 %v1803_v13, %s2887_s14  ;;  %v1572_v7 = vpop.permute.xlu2 %1571 }
 0x29f   :  { %1815 = vst [vmem:[#allocation1 + $0x1] ss:$9 sm:$0xff] %v2950_v28  ;;  %v1506_v50 = vadd.f32 %v1504_v61, %v1500_v52  ;;  %v1507_v47 = vadd.f32 %v1505_v18, %v1501_v36  ;;  %v1593_v52 = vstv %s2618_s18  ;;  %s2637_s18 = sld [smem:[#allocation2 + $0x58]] }
 0x2a1   :  { %v1513_v14 = vsel %vm1511_vm1, %v1506_v50, 0.0  ;;  %v1514_v54 = vsel %vm1512_vm3, %v1507_v47, 0.0  ;;  %vm1605_vm1 = vcmp.eq.s32.totalorder %v1603_v43, 1  ;;  %vm1606_vm3 = vcmp.eq.s32.totalorder %v1604_v6, 1 }
 0x2a2   :  { %v1515_v46 = vadd.f32 %v1513_v14, %v1468_v20  ;;  %v1516_v55 = vadd.f32 %v1514_v54, %v1469_v34  ;;  %v1696_v6 = vsel %vm1685_vm15, 1, %v2868_v9  ;;  %vm1779_vm15 = vmand %vm4017_vm13, %vm3386_vm8 }
 0x2a4   :  { %v1525_v19 = vpop.permute.xlu1 %1524 }
 0x2a5   :  { %v1529_v24 = vsel %vm1528_vm2, %v1525_v19, %v1527_v56  ;;  %v1530_v57 = vsel %vm1528_vm2, %v1527_v56, %v1525_v19 }
 0x2a6   :  { %v1817_v60 = vld [vmem:[#allocation1 + $0x9] sm:$0xff]  ;;  %v1816_v51 = vld [vmem:[#allocation1] sm:$0xff]  ;;  %v1547_v15 = vmul.f32 %v1546_v10, %v1529_v24  ;;  %v1548_v58 = vmul.f32 %v1546_v10, %v1530_v57 }
 0x2a7   :  { %1822 = vrot.lane.b32.xlu1 %v1817_v60, %s2887_s14  ;;  %1820 = vrot.lane.b32.xlu0 %v1816_v51, %s2887_s14  ;;  %1846 = vst [vmem:[#allocation1] ss:$9 sm:$0xff] %v2942_v22  ;;  %v1588_v36 = vpop.permute.xlu2 %1587  ;;  %s2634_s14 = sld [smem:[#allocation2 + $0x26]] }
 0x2a8   :  { %1848 = vst [vmem:[#allocation1 + $0x1] ss:$9 sm:$0xff] %v2944_v23 }
 0x2ad   :  { %v1541_v38 = vpop.permute.xlu1 %1540  ;;  %v1539_v48 = vpop.permute.xlu0 %1538 }
 0x2ae   :  { %v1542_v3 = vsel %vm1528_vm2, %v1539_v48, %v1541_v38  ;;  %v1543_v12 = vsel %vm1528_vm2, %v1541_v38, %v1539_v48  ;;  %vm1622_vm2 = vcmp.lt.s32.totalorder %v3073_v59, 112  ;;  %v1644_v48 = vstv %s2621_s22  ;;  %s2899_s22 = smov 78  }
 0x2af   :  { %v1850_v25 = vld [vmem:[#allocation1 + $0x9] sm:$0xff]  ;;  %v1849_v31 = vld [vmem:[#allocation1] sm:$0xff]  ;;  %v1551_v32 = vmul.f32 %v1550_v1, %v1542_v3  ;;  %v1552_v20 = vmul.f32 %v1550_v1, %v1543_v12 }
 0x2b0   :  { %1855 = vrot.lane.b32.xlu0 %v1850_v25, %s2888_s17  ;;  %1860 = vst [vmem:[#allocation1] ss:$9 sm:$0xff] %v2948_v27  ;;  %1853 = vrot.lane.b32.xlu2 %v1849_v31, %s2888_s17 }
 0x2b1   :  { %1862 = vst [vmem:[#allocation1 + $0x1] ss:$9 sm:$0xff] %v2950_v28  ;;  %v1553_v34 = vadd.f32 %v1551_v32, %v1547_v15  ;;  %v1554_v11 = vadd.f32 %v1552_v20, %v1548_v58  ;;  %v1649_v15 = vsel %vm1638_vm5, 1, %v2868_v9  ;;  %v1640_v58 = vstv %s2620_s21  ;;  %vm1732_vm5 = vmand %vm4017_vm13, %vm3339_vm14  ;;  %s2639_s21 = sld [smem:[#allocation2 + $0x59]] }
 0x2b2   :  { %v1650_v3 = vperm.slane %v1649_v15, 0  ;;  %v1651_v12 = vperm.slane %v1649_v15, 1 }
 0x2b3   :  { %v1560_v33 = vsel %vm1558_vm9, %v1553_v34, 0.0  ;;  %v1561_v37 = vsel %vm1559_vm12, %v1554_v11, 0.0 }
 0x2b4   :  { %v1562_v41 = vadd.f32 %v1560_v33, %v1515_v46  ;;  %v1563_v4 = vadd.f32 %v1561_v37, %v1516_v55  ;;  %vm1652_vm9 = vcmp.eq.s32.totalorder %v1650_v3, 1  ;;  %vm1653_vm12 = vcmp.eq.s32.totalorder %v1651_v12, 1 }
 0x2b5   :  { %v1743_v12 = vsel %vm1732_vm5, 1, %v2868_v9  ;;  %vm1810_vm5 = vcmp.lt.s32.totalorder %v3073_v59, 99 }
 0x2b6   :  { %v1574_v0 = vpop.permute.xlu0 %1573 }
 0x2b7   :  { %v1576_v45 = vsel %vm1575_vm11, %v1572_v7, %v1574_v0  ;;  %v1577_v5 = vsel %vm1575_vm11, %v1574_v0, %v1572_v7 }
 0x2b8   :  { %v1863_v35 = vld [vmem:[#allocation1] sm:$0xff]  ;;  %v1864_v39 = vld [vmem:[#allocation1 + $0x9] sm:$0xff]  ;;  %v1594_v16 = vmul.f32 %v1593_v52, %v1576_v45  ;;  %v1595_v13 = vmul.f32 %v1593_v52, %v1577_v5 }
 0x2b9   :  { %1867 = vrot.lane.b32.xlu1 %v1863_v35, %s2888_s17  ;;  %1893 = vst [vmem:[#allocation1] ss:$9 sm:$0xff] %v2942_v22  ;;  %1869 = vrot.lane.b32.xlu2 %v1864_v39, %s2888_s17  ;;  %v1633_v38 = vpop.permute.xlu2 %1632  ;;  %s2636_s17 = sld [smem:[#allocation2 + $0x27]] }
 0x2ba   :  { %1895 = vst [vmem:[#allocation1 + $0x1] ss:$9 sm:$0xff] %v2944_v23 }
 0x2bf   :  { %v1586_v61 = vpop.permute.xlu1 %1585 }
 0x2c0   :  { %v1589_v18 = vsel %vm1575_vm11, %v1586_v61, %v1588_v36  ;;  %v1590_v50 = vsel %vm1575_vm11, %v1588_v36, %v1586_v61  ;;  %vm1669_vm11 = vcmp.lt.s32.totalorder %v3073_v59, 111  ;;  %v1697_v61 = vperm.slane %v1696_v6, 0 }
 0x2c1   :  { %v1896_v47 = vld [vmem:[#allocation1] sm:$0xff]  ;;  %v1897_v14 = vld [vmem:[#allocation1 + $0x9] sm:$0xff]  ;;  %v1598_v54 = vmul.f32 %v1597_v49, %v1589_v18  ;;  %v1599_v46 = vmul.f32 %v1597_v49, %v1590_v50  ;;  %v1698_v18 = vperm.slane %v1696_v6, 1 }
 0x2c2   :  { %1900 = vrot.lane.b32.xlu0 %v1896_v47, %s2889_s20  ;;  %1902 = vrot.lane.b32.xlu1 %v1897_v14, %s2889_s20  ;;  %1907 = vst [vmem:[#allocation1] ss:$9 sm:$0xff] %v2948_v27  ;;  %v1668_v39 = vpop.permute.xlu2 %1667 }
 0x2c3   :  { %1909 = vst [vmem:[#allocation1 + $0x1] ss:$9 sm:$0xff] %v2950_v28  ;;  %v1600_v55 = vadd.f32 %v1598_v54, %v1594_v16  ;;  %v1601_v56 = vadd.f32 %v1599_v46, %v1595_v13  ;;  %v1687_v16 = vstv %s2622_s24  ;;  %v1691_v13 = vstv %s2623_s25  ;;  %s2641_s24 = sld [smem:[#allocation2 + $0x5a]]  ;;  %s2900_s25 = smov 77  }
 0x2c5   :  { %v1607_v19 = vsel %vm1605_vm1, %v1600_v55, 0.0  ;;  %v1608_v24 = vsel %vm1606_vm3, %v1601_v56, 0.0  ;;  %vm1699_vm1 = vcmp.eq.s32.totalorder %v1697_v61, 1  ;;  %vm1700_vm3 = vcmp.eq.s32.totalorder %v1698_v18, 1 }
 0x2c6   :  { %v1609_v57 = vadd.f32 %v1607_v19, %v1562_v41  ;;  %v1610_v60 = vadd.f32 %v1608_v24, %v1563_v4 }
 0x2c8   :  { %v1619_v51 = vpop.permute.xlu0 %1618  ;;  %v1621_v17 = vpop.permute.xlu1 %1620 }
 0x2c9   :  { %v1623_v10 = vsel %vm1622_vm2, %v1619_v51, %v1621_v17  ;;  %v1624_v1 = vsel %vm1622_vm2, %v1621_v17, %v1619_v51 }
 0x2ca   :  { %v1911_v40 = vld [vmem:[#allocation1 + $0x9] sm:$0xff]  ;;  %v1910_v44 = vld [vmem:[#allocation1] sm:$0xff]  ;;  %v1641_v25 = vmul.f32 %v1640_v58, %v1623_v10  ;;  %v1642_v31 = vmul.f32 %v1640_v58, %v1624_v1 }
 0x2cb   :  { %1916 = vrot.lane.b32.xlu0 %v1911_v40, %s2889_s20  ;;  %1940 = vst [vmem:[#allocation1] ss:$9 sm:$0xff] %v2942_v22  ;;  %1914 = vrot.lane.b32.xlu2 %v1910_v44, %s2889_s20  ;;  %s2638_s20 = sld [smem:[#allocation2 + $0x28]] }
 0x2cc   :  { %1942 = vst [vmem:[#allocation1 + $0x1] ss:$9 sm:$0xff] %v2944_v23 }
 0x2d1   :  { %v1635_v32 = vpop.permute.xlu0 %1634 }
 0x2d2   :  { %v1636_v20 = vsel %vm1622_vm2, %v1633_v38, %v1635_v32  ;;  %v1637_v34 = vsel %vm1622_vm2, %v1635_v32, %v1633_v38  ;;  %vm1716_vm2 = vcmp.lt.s32.totalorder %v3073_v59, 110  ;;  %v1738_v32 = vstv %s2625_s2  ;;  %s4306_s2 = sld [smem:[#allocation2 + $0x2b]] }
 0x2d3   :  { %v1943_v11 = vld [vmem:[#allocation1] sm:$0xff]  ;;  %v1944_v33 = vld [vmem:[#allocation1 + $0x9] sm:$0xff]  ;;  %v1645_v37 = vmul.f32 %v1644_v48, %v1636_v20  ;;  %v1646_v7 = vmul.f32 %v1644_v48, %v1637_v34  ;;  %v1744_v20 = vperm.slane %v1743_v12, 0  ;;  %v1745_v34 = vperm.slane %v1743_v12, 1 }
 0x2d4   :  { %1947 = vrot.lane.b32.xlu1 %v1943_v11, %s2890_s23  ;;  %1954 = vst [vmem:[#allocation1] ss:$9 sm:$0xff] %v2948_v27  ;;  %1949 = vrot.lane.b32.xlu2 %v1944_v33, %s2890_s23  ;;  %v1713_v1 = vpop.permute.xlu2 %1712 }
 0x2d5   :  { %1956 = vst [vmem:[#allocation1 + $0x1] ss:$9 sm:$0xff] %v2950_v28  ;;  %v1647_v41 = vadd.f32 %v1645_v37, %v1641_v25  ;;  %v1648_v4 = vadd.f32 %v1646_v7, %v1642_v31  ;;  %v1734_v25 = vstv %s2624_s27  ;;  %s2643_s27 = sld [smem:[#allocation2 + $0x5b]] }
 0x2d7   :  { %v1654_v0 = vsel %vm1652_vm9, %v1647_v41, 0.0  ;;  %v1655_v45 = vsel %vm1653_vm12, %v1648_v4, 0.0  ;;  %vm1746_vm9 = vcmp.eq.s32.totalorder %v1744_v20, 1  ;;  %vm1747_vm12 = vcmp.eq.s32.totalorder %v1745_v34, 1 }
 0x2d8   :  { %v1656_v5 = vadd.f32 %v1654_v0, %v1609_v57  ;;  %v1657_v35 = vadd.f32 %v1655_v45, %v1610_v60 }
 0x2da   :  { %v1666_v21 = vpop.permute.xlu1 %1665 }
 0x2db   :  { %v1670_v52 = vsel %vm1669_vm11, %v1666_v21, %v1668_v39  ;;  %v1671_v36 = vsel %vm1669_vm11, %v1668_v39, %v1666_v21 }
 0x2dc   :  { %v1958_v49 = vld [vmem:[#allocation1 + $0x9] sm:$0xff]  ;;  %v1957_v43 = vld [vmem:[#allocation1] sm:$0xff]  ;;  %v1688_v50 = vmul.f32 %v1687_v16, %v1670_v52  ;;  %v1689_v47 = vmul.f32 %v1687_v16, %v1671_v36 }
 0x2dd   :  { %1963 = vrot.lane.b32.xlu1 %v1958_v49, %s2890_s23  ;;  %1961 = vrot.lane.b32.xlu0 %v1957_v43, %s2890_s23  ;;  %1987 = vst [vmem:[#allocation1] ss:$9 sm:$0xff] %v2942_v22  ;;  %v1729_v31 = vpop.permute.xlu2 %1728  ;;  %s2640_s23 = sld [smem:[#allocation2 + $0x29]] }
 0x2de   :  { %1989 = vst [vmem:[#allocation1 + $0x1] ss:$9 sm:$0xff] %v2944_v23 }
 0x2e3   :  { %v1682_v14 = vpop.permute.xlu1 %1681  ;;  %v1680_v54 = vpop.permute.xlu0 %1679 }
 0x2e4   :  { %v1683_v46 = vsel %vm1669_vm11, %v1680_v54, %v1682_v14  ;;  %v1684_v55 = vsel %vm1669_vm11, %v1682_v14, %v1680_v54  ;;  %vm1763_vm11 = vcmp.lt.s32.totalorder %v3073_v59, 109  ;;  %v1785_v54 = vstv %s2627_s30  ;;  %s4321_s30 = sld [smem:[#allocation2 + $0x5d]] }
 0x2e5   :  { %v1991_v56 = vld [vmem:[#allocation1 + $0x9] sm:$0xff]  ;;  %v1990_v19 = vld [vmem:[#allocation1] sm:$0xff]  ;;  %v1692_v24 = vmul.f32 %v1691_v13, %v1683_v46  ;;  %v1693_v57 = vmul.f32 %v1691_v13, %v1684_v55 }
 0x2e6   :  { %1996 = vrot.lane.b32.xlu0 %v1991_v56, %s2891_s26  ;;  %2001 = vst [vmem:[#allocation1] ss:$9 sm:$0xff] %v2948_v27  ;;  %1994 = vrot.lane.b32.xlu2 %v1990_v19, %s2891_s26 }
 0x2e7   :  { %2003 = vst [vmem:[#allocation1 + $0x1] ss:$9 sm:$0xff] %v2950_v28  ;;  %v1694_v60 = vadd.f32 %v1692_v24, %v1688_v50  ;;  %v1695_v51 = vadd.f32 %v1693_v57, %v1689_v47  ;;  %v1790_v50 = vsel %vm1779_vm15, 1, %v2868_v9  ;;  %v1781_v47 = vstv %s2626_s29  ;;  %s4314_s29 = sld [smem:[#allocation2 + $0x2c]] }
 0x2e8   :  { %v1791_v46 = vperm.slane %v1790_v50, 0  ;;  %v1792_v55 = vperm.slane %v1790_v50, 1 }
 0x2e9   :  { %v1701_v17 = vsel %vm1699_vm1, %v1694_v60, 0.0  ;;  %v1702_v10 = vsel %vm1700_vm3, %v1695_v51, 0.0  ;;  %v4144_v60 = vld [vmem:[#allocation6] sm:$0x3] }
 0x2ea   :  { %v1703_v40 = vadd.f32 %v1701_v17, %v1656_v5  ;;  %v1704_v44 = vadd.f32 %v1702_v10, %v1657_v35  ;;  %v158_v51 = vadd.s32 2, %v4144_v60  ;;  %vm1793_vm13 = vcmp.eq.s32.totalorder %v1791_v46, 1 }
 0x2eb   :  { %vm1794_vm1 = vcmp.eq.s32.totalorder %v1792_v55, 1 }
 0x2ec   :  { %v1715_v15 = vpop.permute.xlu0 %1714  ;;  %vm159_vm3 = vcmp.ge.s32.totalorder %v158_v51, 0 }
 0x2ed   :  { %v1717_v58 = vsel %vm1716_vm2, %v1713_v1, %v1715_v15  ;;  %v1718_v38 = vsel %vm1716_vm2, %v1715_v15, %v1713_v1 }
 0x2ee   :  { %v2004_v48 = vld [vmem:[#allocation1] sm:$0xff]  ;;  %v2005_v3 = vld [vmem:[#allocation1 + $0x9] sm:$0xff]  ;;  %v1735_v11 = vmul.f32 %v1734_v25, %v1717_v58  ;;  %v1736_v33 = vmul.f32 %v1734_v25, %v1718_v38 }
 0x2ef   :  { %2008 = vrot.lane.b32.xlu1 %v2004_v48, %s2891_s26  ;;  %2034 = vst [vmem:[#allocation1] ss:$9 sm:$0xff] %v2942_v22  ;;  %2010 = vrot.lane.b32.xlu2 %v2005_v3, %s2891_s26  ;;  %v1774_v14 = vpop.permute.xlu2 %1773  ;;  %s2642_s26 = sld [smem:[#allocation2 + $0x2a]] }
 0x2f0   :  { %2036 = vst [vmem:[#allocation1 + $0x1] ss:$9 sm:$0xff] %v2944_v23 }
 0x2f5   :  { %v1727_v37 = vpop.permute.xlu1 %1726 }
 0x2f6   :  { %v1730_v7 = vsel %vm1716_vm2, %v1727_v37, %v1729_v31  ;;  %v1731_v41 = vsel %vm1716_vm2, %v1729_v31, %v1727_v37  ;;  %vm160_vm2 = vcmp.lt.s32.totalorder %v158_v51, 16  ;;  %v1828_v37 = vstv %s2628_s0  ;;  %s4366_s0 = sld [smem:[#allocation2 + $0x5e]] }
 0x2f7   :  { %v2037_v4 = vld [vmem:[#allocation1] sm:$0xff]  ;;  %v2038_v0 = vld [vmem:[#allocation1 + $0x9] sm:$0xff]  ;;  %v1739_v45 = vmul.f32 %v1738_v32, %v1730_v7  ;;  %v1740_v5 = vmul.f32 %v1738_v32, %v1731_v41  ;;  %v1832_v7 = vstv %s2629_s1  ;;  %s4384_s1 = sld [smem:[#allocation2 + $0x2e]] }
 0x2f8   :  { %2041 = vrot.lane.b32.xlu0 %v2037_v4, %s2892_s28  ;;  %2043 = vrot.lane.b32.xlu1 %v2038_v0, %s2892_s28  ;;  %2048 = vst [vmem:[#allocation1] ss:$9 sm:$0xff] %v2948_v27  ;;  %v1809_v12 = vpop.permute.xlu2 %1808 }
 0x2f9   :  { %2050 = vst [vmem:[#allocation1 + $0x1] ss:$9 sm:$0xff] %v2950_v28  ;;  %v1741_v35 = vadd.f32 %v1739_v45, %v1735_v11  ;;  %v1742_v39 = vadd.f32 %v1740_v5, %v1736_v33 }
 0x2fb   :  { %v1748_v21 = vsel %vm1746_vm9, %v1741_v35, 0.0  ;;  %v1749_v52 = vsel %vm1747_vm12, %v1742_v39, 0.0  ;;  %vm4150_vm9 = vmand %vm159_vm3, %vm160_vm2 }
 0x2fc   :  { %v1750_v36 = vadd.f32 %v1748_v21, %v1703_v40  ;;  %v1751_v49 = vadd.f32 %v1749_v52, %v1704_v44  ;;  %vm1826_vm12 = vmand %vm4150_vm9, %vm3083_vm6 }
 0x2fd   :  { %v1837_v33 = vsel %vm1826_vm12, 1, %v2868_v9  ;;  %vm1920_vm12 = vmand %vm4150_vm9, %vm3160_vm0 }
 0x2fe   :  { %v1760_v43 = vpop.permute.xlu0 %1759  ;;  %v1762_v6 = vpop.permute.xlu1 %1761  ;;  %v1838_v41 = vperm.slane %v1837_v33, 0  ;;  %v1839_v4 = vperm.slane %v1837_v33, 1 }
 0x2ff   :  { %v1764_v16 = vsel %vm1763_vm11, %v1760_v43, %v1762_v6  ;;  %v1765_v13 = vsel %vm1763_vm11, %v1762_v6, %v1760_v43 }
 0x300   :  { %v2052_v61 = vld [vmem:[#allocation1 + $0x9] sm:$0xff]  ;;  %v2051_v18 = vld [vmem:[#allocation1] sm:$0xff]  ;;  %v1782_v56 = vmul.f32 %v1781_v47, %v1764_v16  ;;  %v1783_v19 = vmul.f32 %v1781_v47, %v1765_v13  ;;  %vm1841_vm15 = vcmp.eq.s32.totalorder %v1839_v4, 1 }
 0x301   :  { %2057 = vrot.lane.b32.xlu0 %v2052_v61, %s2892_s28  ;;  %2081 = vst [vmem:[#allocation1] ss:$9 sm:$0xff] %v2942_v22  ;;  %2055 = vrot.lane.b32.xlu2 %v2051_v18, %s2892_s28  ;;  %s4309_s28 = sld [smem:[#allocation2 + $0x5c]] }
 0x302   :  { %2083 = vst [vmem:[#allocation1 + $0x1] ss:$9 sm:$0xff] %v2944_v23 }
 0x307   :  { %v1776_v24 = vpop.permute.xlu0 %1775 }
 0x308   :  { %v1777_v62 = vsel %vm1763_vm11, %v1774_v14, %v1776_v24  ;;  %v1778_v57 = vsel %vm1763_vm11, %v1776_v24, %v1774_v14  ;;  %vm1840_vm11 = vcmp.eq.s32.totalorder %v1838_v41, 1  ;;  %v1875_v24 = vstv %s2630_s8  ;;  %s4396_s8 = sld [smem:[#allocation2 + $0x2f]] }
 0x309   :  { %v2084_v17 = vld [vmem:[#allocation1] sm:$0xff]  ;;  %v2085_v10 = vld [vmem:[#allocation1 + $0x9] sm:$0xff]  ;;  %v1786_v1 = vmul.f32 %v1785_v54, %v1777_v62  ;;  %v1787_v40 = vmul.f32 %v1785_v54, %v1778_v57  ;;  %v1879_v57 = vstv %s2631_s9  ;;  %s4407_s9 = sld [smem:[#allocation2 + $0x60]] }
 0x30a   :  { %2088 = vrot.lane.b32.xlu1 %v2084_v17, %s2893_s5  ;;  %2095 = vst [vmem:[#allocation1] ss:$9 sm:$0xff] %v2948_v27  ;;  %2090 = vrot.lane.b32.xlu2 %v2085_v10, %s2893_s5  ;;  %v1854_v18 = vpop.permute.xlu2 %1853 }
 0x30b   :  { %2097 = vst [vmem:[#allocation1 + $0x1] ss:$9 sm:$0xff] %v2950_v28  ;;  %v1788_v44 = vadd.f32 %v1786_v1, %v1782_v56  ;;  %v1789_v15 = vadd.f32 %v1787_v40, %v1783_v19 }
 0x30d   :  { %v1795_v58 = vsel %vm1793_vm13, %v1788_v44, 0.0  ;;  %v1796_v38 = vsel %vm1794_vm1, %v1789_v15, 0.0  ;;  %vm1857_vm13 = vcmp.lt.s32.totalorder %v3073_v59, 98  ;;  %vm1873_vm1 = vmand %vm4150_vm9, %vm3104_vm10 }
 0x30e   :  { %v1797_v48 = vadd.f32 %v1795_v58, %v1750_v36  ;;  %v1798_v3 = vadd.f32 %v1796_v38, %v1751_v49  ;;  %v1884_v19 = vsel %vm1873_vm1, 1, %v2868_v9  ;;  %vm1967_vm1 = vmand %vm4150_vm9, %vm3213_vm7 }
 0x30f   :  { %v1885_v51 = vperm.slane %v1884_v19, 0  ;;  %v1886_v17 = vperm.slane %v1884_v19, 1 }
 0x310   :  { %v1807_v31 = vpop.permute.xlu1 %1806 }
 0x311   :  { %v1811_v32 = vsel %vm1810_vm5, %v1807_v31, %v1809_v12  ;;  %v1812_v20 = vsel %vm1810_vm5, %v1809_v12, %v1807_v31  ;;  %vm1887_vm3 = vcmp.eq.s32.totalorder %v1885_v51, 1  ;;  %vm1888_vm2 = vcmp.eq.s32.totalorder %v1886_v17, 1 }
 0x312   :  { %v2099_v34 = vld [vmem:[#allocation1 + $0x9] sm:$0xff]  ;;  %v2098_v11 = vld [vmem:[#allocation1] sm:$0xff]  ;;  %v1829_v0 = vmul.f32 %v1828_v37, %v1811_v32  ;;  %v1830_v45 = vmul.f32 %v1828_v37, %v1812_v20 }
 0x313   :  { %2104 = vrot.lane.b32.xlu1 %v2099_v34, %s2893_s5  ;;  %2102 = vrot.lane.b32.xlu0 %v2098_v11, %s2893_s5  ;;  %2128 = vst [vmem:[#allocation1] ss:$9 sm:$0xff] %v2942_v22  ;;  %v1870_v62 = vpop.permute.xlu2 %1869  ;;  %s4354_s5 = sld [smem:[#allocation2 + $0x2d]] }
 0x314   :  { %2130 = vst [vmem:[#allocation1 + $0x1] ss:$9 sm:$0xff] %v2944_v23 }
 0x319   :  { %v1823_v5 = vpop.permute.xlu1 %1822  ;;  %v1821_v35 = vpop.permute.xlu0 %1820 }
 0x31a   :  { %v1824_v39 = vsel %vm1810_vm5, %v1821_v35, %v1823_v5  ;;  %v1825_v21 = vsel %vm1810_vm5, %v1823_v5, %v1821_v35  ;;  %vm1904_vm5 = vcmp.lt.s32.totalorder %v3073_v59, 97  ;;  %v1922_v5 = vstv %s2632_s11  ;;  %s4486_s11 = sld [smem:[#allocation2 + $0x61]] }
 0x31b   :  { %v2132_v52 = vld [vmem:[#allocation1 + $0x9] sm:$0xff]  ;;  %v2131_v36 = vld [vmem:[#allocation1] sm:$0xff]  ;;  %v1833_v49 = vmul.f32 %v1832_v7, %v1824_v39  ;;  %v1834_v43 = vmul.f32 %v1832_v7, %v1825_v21  ;;  %v1926_v39 = vstv %s2633_s12  ;;  %s2901_s12 = smov [#allocation10]  }
 0x31c   :  { %2137 = vrot.lane.b32.xlu0 %v2132_v52, %s2894_s3  ;;  %2142 = vst [vmem:[#allocation1] ss:$9 sm:$0xff] %v2948_v27  ;;  %2135 = vrot.lane.b32.xlu2 %v2131_v36, %s2894_s3 }
 0x31d   :  { %2144 = vst [vmem:[#allocation1 + $0x1] ss:$9 sm:$0xff] %v2950_v28  ;;  %v1835_v6 = vadd.f32 %v1833_v49, %v1829_v0  ;;  %v1836_v16 = vadd.f32 %v1834_v43, %v1830_v45  ;;  %v1931_v45 = vsel %vm1920_vm12, 1, %v2868_v9  ;;  %vm2014_vm12 = vmand %vm4150_vm9, %vm3288_vm4 }
 0x31e   :  { %v1932_v21 = vperm.slane %v1931_v45, 0  ;;  %v1933_v52 = vperm.slane %v1931_v45, 1 }
 0x31f   :  { %v1842_v13 = vsel %vm1840_vm11, %v1835_v6, 0.0  ;;  %v1843_v61 = vsel %vm1841_vm15, %v1836_v16, 0.0 }
 0x320   :  { %v1844_v50 = vadd.f32 %v1842_v13, %v1797_v48  ;;  %v1845_v47 = vadd.f32 %v1843_v61, %v1798_v3  ;;  %vm1934_vm11 = vcmp.eq.s32.totalorder %v1932_v21, 1  ;;  %vm1935_vm15 = vcmp.eq.s32.totalorder %v1933_v52, 1 }
 0x322   :  { %v1856_v14 = vpop.permute.xlu0 %1855 }
 0x323   :  { %v1858_v54 = vsel %vm1857_vm13, %v1854_v18, %v1856_v14  ;;  %v1859_v46 = vsel %vm1857_vm13, %v1856_v14, %v1854_v18 }
 0x324   :  { %v2145_v55 = vld [vmem:[#allocation1] sm:$0xff]  ;;  %v2146_v56 = vld [vmem:[#allocation1 + $0x9] sm:$0xff]  ;;  %v1876_v10 = vmul.f32 %v1875_v24, %v1858_v54  ;;  %v1877_v1 = vmul.f32 %v1875_v24, %v1859_v46 }
 0x325   :  { %2149 = vrot.lane.b32.xlu1 %v2145_v55, %s2894_s3  ;;  %2175 = vst [vmem:[#allocation1] ss:$9 sm:$0xff] %v2942_v22  ;;  %2151 = vrot.lane.b32.xlu2 %v2146_v56, %s2894_s3  ;;  %v1915_v35 = vpop.permute.xlu2 %1914  ;;  %s4386_s3 = sld [smem:[#allocation2 + $0x5f]] }
 0x326   :  { %2177 = vst [vmem:[#allocation1 + $0x1] ss:$9 sm:$0xff] %v2944_v23 }
 0x32b   :  { %v1868_v40 = vpop.permute.xlu1 %1867 }
 0x32c   :  { %v1871_v44 = vsel %vm1857_vm13, %v1868_v40, %v1870_v62  ;;  %v1872_v15 = vsel %vm1857_vm13, %v1870_v62, %v1868_v40  ;;  %vm1951_vm13 = vcmp.lt.s32.totalorder %v3073_v59, 96  ;;  %v1973_v40 = vstv %s2635_s15 }
 0x32d   :  { %v2178_v58 = vld [vmem:[#allocation1] sm:$0xff]  ;;  %v2179_v38 = vld [vmem:[#allocation1 + $0x9] sm:$0xff]  ;;  %v1880_v48 = vmul.f32 %v1879_v57, %v1871_v44  ;;  %v1881_v3 = vmul.f32 %v1879_v57, %v1872_v15 }
 0x32e   :  { %2182 = vrot.lane.b32.xlu0 %v2178_v58, %s2895_s10  ;;  %2184 = vrot.lane.b32.xlu1 %v2179_v38, %s2895_s10  ;;  %2189 = vst [vmem:[#allocation1] ss:$9 sm:$0xff] %v2948_v27  ;;  %v1950_v19 = vpop.permute.xlu2 %1949 }
 0x32f   :  { %2191 = vst [vmem:[#allocation1 + $0x1] ss:$9 sm:$0xff] %v2950_v28  ;;  %v1882_v12 = vadd.f32 %v1880_v48, %v1876_v10  ;;  %v1883_v31 = vadd.f32 %v1881_v3, %v1877_v1  ;;  %v1978_v10 = vsel %vm1967_vm1, 1, %v2868_v9  ;;  %v1969_v1 = vstv %s2634_s14  ;;  %vm2061_vm1 = vmand %vm4150_vm9, %vm3339_vm14 }
 0x330   :  { %v1979_v44 = vperm.slane %v1978_v10, 0  ;;  %v1980_v15 = vperm.slane %v1978_v10, 1 }
 0x331   :  { %v1889_v32 = vsel %vm1887_vm3, %v1882_v12, 0.0  ;;  %v1890_v20 = vsel %vm1888_vm2, %v1883_v31, 0.0 }
 0x332   :  { %v1891_v34 = vadd.f32 %v1889_v32, %v1844_v50  ;;  %v1892_v11 = vadd.f32 %v1890_v20, %v1845_v47  ;;  %vm1981_vm3 = vcmp.eq.s32.totalorder %v1979_v44, 1  ;;  %vm1982_vm2 = vcmp.eq.s32.totalorder %v1980_v15, 1 }
 0x334   :  { %v1901_v33 = vpop.permute.xlu0 %1900  ;;  %v1903_v37 = vpop.permute.xlu1 %1902 }
 0x335   :  { %v1905_v7 = vsel %vm1904_vm5, %v1901_v33, %v1903_v37  ;;  %v1906_v41 = vsel %vm1904_vm5, %v1903_v37, %v1901_v33 }
 0x336   :  { %v2193_v4 = vld [vmem:[#allocation1 + $0x9] sm:$0xff]  ;;  %v2192_v0 = vld [vmem:[#allocation1] sm:$0xff]  ;;  %v1923_v36 = vmul.f32 %v1922_v5, %v1905_v7  ;;  %v1924_v49 = vmul.f32 %v1922_v5, %v1906_v41 }
 0x337   :  { %2198 = vrot.lane.b32.xlu0 %v2193_v4, %s2895_s10  ;;  %2222 = vst [vmem:[#allocation1] ss:$9 sm:$0xff] %v2942_v22  ;;  %2196 = vrot.lane.b32.xlu2 %v2192_v0, %s2895_s10  ;;  %s4476_s10 = sld [smem:[#allocation2 + $0x30]] }
 0x338   :  { %2224 = vst [vmem:[#allocation1 + $0x1] ss:$9 sm:$0xff] %v2944_v23 }
 0x33d   :  { %v1917_v43 = vpop.permute.xlu0 %1916 }
 0x33e   :  { %v1918_v6 = vsel %vm1904_vm5, %v1915_v35, %v1917_v43  ;;  %v1919_v16 = vsel %vm1904_vm5, %v1917_v43, %v1915_v35  ;;  %vm1998_vm5 = vcmp.lt.s32.totalorder %v3073_v59, 95 }
 0x33f   :  { %v2225_v13 = vld [vmem:[#allocation1] sm:$0xff]  ;;  %v2226_v61 = vld [vmem:[#allocation1 + $0x9] sm:$0xff]  ;;  %v1927_v18 = vmul.f32 %v1926_v39, %v1918_v6  ;;  %v1928_v50 = vmul.f32 %v1926_v39, %v1919_v16  ;;  %v2020_v6 = vstv %s2637_s18 }
 0x340   :  { %2229 = vrot.lane.b32.xlu1 %v2225_v13, %s2896_s13  ;;  %2236 = vst [vmem:[#allocation1] ss:$9 sm:$0xff] %v2948_v27  ;;  %2231 = vrot.lane.b32.xlu2 %v2226_v61, %s2896_s13  ;;  %v1995_v4 = vpop.permute.xlu2 %1994 }
 0x341   :  { %2238 = vst [vmem:[#allocation1 + $0x1] ss:$9 sm:$0xff] %v2950_v28  ;;  %v1929_v47 = vadd.f32 %v1927_v18, %v1923_v36  ;;  %v1930_v14 = vadd.f32 %v1928_v50, %v1924_v49  ;;  %v2025_v36 = vsel %vm2014_vm12, 1, %v2868_v9  ;;  %v2016_v49 = vstv %s2636_s17  ;;  %vm2108_vm12 = vmand %vm4150_vm9, %vm3386_vm8 }
 0x342   :  { %v2026_v16 = vperm.slane %v2025_v36, 0  ;;  %v2027_v13 = vperm.slane %v2025_v36, 1 }
 0x343   :  { %v1936_v54 = vsel %vm1934_vm11, %v1929_v47, 0.0  ;;  %v1937_v46 = vsel %vm1935_vm15, %v1930_v14, 0.0 }
 0x344   :  { %v1938_v55 = vadd.f32 %v1936_v54, %v1891_v34  ;;  %v1939_v56 = vadd.f32 %v1937_v46, %v1892_v11  ;;  %vm2028_vm11 = vcmp.eq.s32.totalorder %v2026_v16, 1  ;;  %vm2029_vm15 = vcmp.eq.s32.totalorder %v2027_v13, 1 }
 0x346   :  { %v1948_v24 = vpop.permute.xlu1 %1947 }
 0x347   :  { %v1952_v62 = vsel %vm1951_vm13, %v1948_v24, %v1950_v19  ;;  %v1953_v57 = vsel %vm1951_vm13, %v1950_v19, %v1948_v24 }
 0x348   :  { %v2240_v51 = vld [vmem:[#allocation1 + $0x9] sm:$0xff]  ;;  %v2239_v17 = vld [vmem:[#allocation1] sm:$0xff]  ;;  %v1970_v58 = vmul.f32 %v1969_v1, %v1952_v62  ;;  %v1971_v38 = vmul.f32 %v1969_v1, %v1953_v57 }
 0x349   :  { %2245 = vrot.lane.b32.xlu1 %v2240_v51, %s2896_s13  ;;  %2243 = vrot.lane.b32.xlu0 %v2239_v17, %s2896_s13  ;;  %2269 = vst [vmem:[#allocation1] ss:$9 sm:$0xff] %v2942_v22  ;;  %v2011_v43 = vpop.permute.xlu2 %2010  ;;  %s2542_s13 = sshll.u32 %s2901_s12, 4  ;;  %s2543_s13 = int_to_ptr.vmem [resolvable:$true] %s2542_s13 }
 0x34a   :  { %2271 = vst [vmem:[#allocation1 + $0x1] ss:$9 sm:$0xff] %v2944_v23 }
 0x34f   :  { %v1964_v48 = vpop.permute.xlu1 %1963  ;;  %v1962_v3 = vpop.permute.xlu0 %1961 }
 0x350   :  { %v1965_v12 = vsel %vm1951_vm13, %v1962_v3, %v1964_v48  ;;  %v1966_v31 = vsel %vm1951_vm13, %v1964_v48, %v1962_v3  ;;  %vm2045_vm13 = vcmp.lt.s32.totalorder %v3073_v59, 94  ;;  %v2063_v48 = vstv %s2638_s20 }
 0x351   :  { %v2273_v32 = vld [vmem:[#allocation1 + $0x9] sm:$0xff]  ;;  %v2272_v20 = vld [vmem:[#allocation1] sm:$0xff]  ;;  %v1974_v34 = vmul.f32 %v1973_v40, %v1965_v12  ;;  %v1975_v11 = vmul.f32 %v1973_v40, %v1966_v31  ;;  %v2067_v12 = vstv %s2639_s21 }
 0x352   :  { %2278 = vrot.lane.b32.xlu0 %v2273_v32, %s2897_s16  ;;  %2283 = vst [vmem:[#allocation1] ss:$9 sm:$0xff] %v2948_v27  ;;  %2276 = vrot.lane.b32.xlu2 %v2272_v20, %s2897_s16 }
 0x353   :  { %2285 = vst [vmem:[#allocation1 + $0x1] ss:$9 sm:$0xff] %v2950_v28  ;;  %v1976_v33 = vadd.f32 %v1974_v34, %v1970_v58  ;;  %v1977_v37 = vadd.f32 %v1975_v11, %v1971_v38  ;;  %v2072_v38 = vsel %vm2061_vm1, 1, %v2868_v9 }
 0x354   :  { %v2073_v31 = vperm.slane %v2072_v38, 0  ;;  %v2074_v32 = vperm.slane %v2072_v38, 1 }
 0x355   :  { %v1983_v7 = vsel %vm1981_vm3, %v1976_v33, 0.0  ;;  %v1984_v41 = vsel %vm1982_vm2, %v1977_v37, 0.0 }
 0x356   :  { %v1985_v0 = vadd.f32 %v1983_v7, %v1938_v55  ;;  %v1986_v45 = vadd.f32 %v1984_v41, %v1939_v56  ;;  %vm2075_vm3 = vcmp.eq.s32.totalorder %v2073_v31, 1  ;;  %vm2076_vm2 = vcmp.eq.s32.totalorder %v2074_v32, 1 }
 0x358   :  { %v1997_v5 = vpop.permute.xlu0 %1996 }
 0x359   :  { %v1999_v35 = vsel %vm1998_vm5, %v1995_v4, %v1997_v5  ;;  %v2000_v39 = vsel %vm1998_vm5, %v1997_v5, %v1995_v4 }
 0x35a   :  { %v2286_v21 = vld [vmem:[#allocation1] sm:$0xff]  ;;  %v2287_v52 = vld [vmem:[#allocation1 + $0x9] sm:$0xff]  ;;  %v2017_v61 = vmul.f32 %v2016_v49, %v1999_v35  ;;  %v2018_v18 = vmul.f32 %v2016_v49, %v2000_v39 }
 0x35b   :  { %2290 = vrot.lane.b32.xlu1 %v2286_v21, %s2897_s16  ;;  %2316 = vst [vmem:[#allocation1] ss:$9 sm:$0xff] %v2942_v22  ;;  %2292 = vrot.lane.b32.xlu2 %v2287_v52, %s2897_s16  ;;  %v2056_v3 = vpop.permute.xlu2 %2055  ;;  %s2544_s16 = sshll.u32 %s4583_s4, 4  ;;  %s2545_s16 = int_to_ptr.hbm [resolvable:$true] %s2544_s16 }
 0x35c   :  { %2318 = vst [vmem:[#allocation1 + $0x1] ss:$9 sm:$0xff] %v2944_v23 }
 0x361   :  { %v2009_v50 = vpop.permute.xlu1 %2008 }
 0x362   :  { %v2012_v47 = vsel %vm1998_vm5, %v2009_v50, %v2011_v43  ;;  %v2013_v14 = vsel %vm1998_vm5, %v2011_v43, %v2009_v50  ;;  %vm2092_vm5 = vcmp.lt.s32.totalorder %v3073_v59, 93  ;;  %v2114_v50 = vstv %s2641_s24 }
 0x363   :  { %v2319_v54 = vld [vmem:[#allocation1] sm:$0xff]  ;;  %v2320_v46 = vld [vmem:[#allocation1 + $0x9] sm:$0xff]  ;;  %v2021_v55 = vmul.f32 %v2020_v6, %v2012_v47  ;;  %v2022_v56 = vmul.f32 %v2020_v6, %v2013_v14 }
 0x364   :  { %2323 = vrot.lane.b32.xlu0 %v2319_v54, %s2898_s19  ;;  %2325 = vrot.lane.b32.xlu1 %v2320_v46, %s2898_s19  ;;  %2330 = vst [vmem:[#allocation1] ss:$9 sm:$0xff] %v2948_v27  ;;  %v2091_v36 = vpop.permute.xlu2 %2090 }
 0x365   :  { %2332 = vst [vmem:[#allocation1 + $0x1] ss:$9 sm:$0xff] %v2950_v28  ;;  %v2023_v19 = vadd.f32 %v2021_v55, %v2017_v61  ;;  %v2024_v24 = vadd.f32 %v2022_v56, %v2018_v18  ;;  %v2119_v61 = vsel %vm2108_vm12, 1, %v2868_v9  ;;  %v2110_v18 = vstv %s2640_s23 }
 0x366   :  { %v2120_v47 = vperm.slane %v2119_v61, 0  ;;  %v2121_v14 = vperm.slane %v2119_v61, 1 }
 0x367   :  { %v2030_v62 = vsel %vm2028_vm11, %v2023_v19, 0.0  ;;  %v2031_v57 = vsel %vm2029_vm15, %v2024_v24, 0.0 }
 0x368   :  { %v2032_v51 = vadd.f32 %v2030_v62, %v1985_v0  ;;  %v2033_v17 = vadd.f32 %v2031_v57, %v1986_v45  ;;  %vm2122_vm9 = vcmp.eq.s32.totalorder %v2120_v47, 1  ;;  %vm2123_vm11 = vcmp.eq.s32.totalorder %v2121_v14, 1 }
 0x36a   :  { %v2042_v10 = vpop.permute.xlu0 %2041  ;;  %v2044_v1 = vpop.permute.xlu1 %2043 }
 0x36b   :  { %v2046_v40 = vsel %vm2045_vm13, %v2042_v10, %v2044_v1  ;;  %v2047_v44 = vsel %vm2045_vm13, %v2044_v1, %v2042_v10 }
 0x36c   :  { %v2334_v15 = vld [vmem:[#allocation1 + $0x9] sm:$0xff]  ;;  %v2333_v58 = vld [vmem:[#allocation1] sm:$0xff]  ;;  %v2064_v20 = vmul.f32 %v2063_v48, %v2046_v40  ;;  %v2065_v34 = vmul.f32 %v2063_v48, %v2047_v44 }
 0x36d   :  { %2339 = vrot.lane.b32.xlu0 %v2334_v15, %s2898_s19  ;;  %2363 = vst [vmem:[#allocation1] ss:$9 sm:$0xff] %v2942_v22  ;;  %2337 = vrot.lane.b32.xlu2 %v2333_v58, %s2898_s19 }
 0x36e   :  { %2365 = vst [vmem:[#allocation1 + $0x1] ss:$9 sm:$0xff] %v2944_v23 }
 0x373   :  { %v2058_v11 = vpop.permute.xlu0 %2057 }
 0x374   :  { %v2059_v33 = vsel %vm2045_vm13, %v2056_v3, %v2058_v11  ;;  %v2060_v37 = vsel %vm2045_vm13, %v2058_v11, %v2056_v3  ;;  %v162_v11 = vadd.s32 3, %v4144_v60 }
 0x375   :  { %v2366_v7 = vld [vmem:[#allocation1] sm:$0xff]  ;;  %v2367_v41 = vld [vmem:[#allocation1 + $0x9] sm:$0xff]  ;;  %v2068_v4 = vmul.f32 %v2067_v12, %v2059_v33  ;;  %v2069_v0 = vmul.f32 %v2067_v12, %v2060_v37 }
 0x376   :  { %2370 = vrot.lane.b32.xlu1 %v2366_v7, %s2899_s22  ;;  %2377 = vst [vmem:[#allocation1] ss:$9 sm:$0xff] %v2948_v27  ;;  %2372 = vrot.lane.b32.xlu2 %v2367_v41, %s2899_s22  ;;  %v2136_v58 = vpop.permute.xlu2 %2135  ;;  %vm163_vm15 = vcmp.ge.s32.totalorder %v162_v11, 0  ;;  %vm164_vm13 = vcmp.lt.s32.totalorder %v162_v11, 16 }
 0x377   :  { %2379 = vst [vmem:[#allocation1 + $0x1] ss:$9 sm:$0xff] %v2950_v28  ;;  %v2070_v45 = vadd.f32 %v2068_v4, %v2064_v20  ;;  %v2071_v5 = vadd.f32 %v2069_v0, %v2065_v34  ;;  %vm4294_vm1 = vmand %vm163_vm15, %vm164_vm13  ;;  %v2157_v0 = vstv %s2642_s26 }
 0x379   :  { %v2077_v35 = vsel %vm2075_vm3, %v2070_v45, 0.0  ;;  %v2078_v39 = vsel %vm2076_vm2, %v2071_v5, 0.0  ;;  %vm2155_vm3 = vmand %vm4294_vm1, %vm3083_vm6  ;;  %vm2139_vm2 = vcmp.lt.s32.totalorder %v3073_v59, 83  ;;  %v2161_v45 = vstv %s2643_s27 }
 0x37a   :  { %v2079_v21 = vadd.f32 %v2077_v35, %v2032_v51  ;;  %v2080_v52 = vadd.f32 %v2078_v39, %v2033_v17  ;;  %v2166_v5 = vsel %vm2155_vm3, 1, %v2868_v9  ;;  %vm2186_vm6 = vcmp.lt.s32.totalorder %v3073_v59, 82 }
 0x37b   :  { %v2168_v61 = vperm.slane %v2166_v5, 1  ;;  %vm2280_vm3 = vcmp.lt.s32.totalorder %v3073_v59, 80 }
 0x37c   :  { %v2089_v49 = vpop.permute.xlu1 %2088 }
 0x37d   :  { %v2093_v43 = vsel %vm2092_vm5, %v2089_v49, %v2091_v36  ;;  %v2094_v6 = vsel %vm2092_vm5, %v2091_v36, %v2089_v49 }
 0x37e   :  { %v2381_v16 = vld [vmem:[#allocation1 + $0x9] sm:$0xff]  ;;  %v2380_v13 = vld [vmem:[#allocation1] sm:$0xff]  ;;  %v2111_v54 = vmul.f32 %v2110_v18, %v2093_v43  ;;  %v2112_v46 = vmul.f32 %v2110_v18, %v2094_v6  ;;  %v2204_v18 = vstv %s4306_s2 }
 0x37f   :  { %2386 = vrot.lane.b32.xlu1 %v2381_v16, %s2899_s22  ;;  %2384 = vrot.lane.b32.xlu0 %v2380_v13, %s2899_s22  ;;  %2410 = vst [vmem:[#allocation1] ss:$9 sm:$0xff] %v2942_v22  ;;  %v2152_v48 = vpop.permute.xlu2 %2151 }
 0x380   :  { %2412 = vst [vmem:[#allocation1 + $0x1] ss:$9 sm:$0xff] %v2944_v23 }
 0x385   :  { %v2105_v55 = vpop.permute.xlu1 %2104  ;;  %v2103_v56 = vpop.permute.xlu0 %2102 }
 0x386   :  { %v2106_v25 = vsel %vm2092_vm5, %v2103_v56, %v2105_v55  ;;  %v2107_v19 = vsel %vm2092_vm5, %v2105_v55, %v2103_v56  ;;  %vm2202_vm5 = vmand %vm4294_vm1, %vm3104_vm10 }
 0x387   :  { %v2414_v24 = vld [vmem:[#allocation1 + $0x9] sm:$0xff]  ;;  %v2413_v22 = vld [vmem:[#allocation1] sm:$0xff]  ;;  %v2115_v62 = vmul.f32 %v2114_v50, %v2106_v25  ;;  %v2116_v23 = vmul.f32 %v2114_v50, %v2107_v19  ;;  %v2208_v50 = vstv %s4309_s28  ;;  %v2213_v47 = vsel %vm2202_vm5, 1, %v2868_v9  ;;  %vm2249_vm10 = vmand %vm4294_vm1, %vm3160_vm0 }
 0x388   :  { %2419 = vrot.lane.b32.xlu0 %v2414_v24, %s2900_s25  ;;  %2424 = vst [vmem:[#allocation1] ss:$9 sm:$0xff] %v2948_v27  ;;  %2417 = vrot.lane.b32.xlu2 %v2413_v22, %s2900_s25  ;;  %vm2233_vm0 = vcmp.lt.s32.totalorder %v3073_v59, 81  ;;  %v2214_v24 = vperm.slane %v2213_v47, 0  ;;  %v2215_v22 = vperm.slane %v2213_v47, 1  ;;  %vm2374_vm5 = vcmp.lt.s32.totalorder %v3073_v59, 78 }
 0x389   :  { %2426 = vst [vmem:[#allocation1 + $0x1] ss:$9 sm:$0xff] %v2950_v28  ;;  %v2117_v57 = vadd.f32 %v2115_v62, %v2111_v54  ;;  %v2118_v51 = vadd.f32 %v2116_v23, %v2112_v46  ;;  %v2260_v62 = vsel %vm2249_vm10, 1, %v2868_v9  ;;  %vm2390_vm10 = vmand %vm4294_vm1, %vm3339_vm14 }
 0x38a   :  { %vm4388_vm15 = vcmp.eq.s32.totalorder %v2214_v24, 1  ;;  %vm4392_vm13 = vcmp.eq.s32.totalorder %v2215_v22, 1 }
 0x38b   :  { %v2124_v17 = vsel %vm2122_vm9, %v2117_v57, 0.0  ;;  %v2125_v10 = vsel %vm2123_vm11, %v2118_v51, 0.0  ;;  %vm4349_vm9 = vcmp.eq.s32.totalorder %v2168_v61, 1  ;;  %vm2296_vm11 = vmand %vm4294_vm1, %vm3213_vm7  ;;  %v2298_v61 = vstv %s4354_s5 }
 0x38c   :  { %v4279_v1 = vadd.f32 %v2124_v17, %v2079_v21  ;;  %v4281_v40 = vadd.f32 %v2125_v10, %v2080_v52  ;;  %v2167_v52 = vperm.slane %v2166_v5, 0  ;;  %v2251_v10 = vstv %s4314_s29  ;;  %vm2343_vm7 = vmand %vm4294_vm1, %vm3288_vm4 }
 0x38d   :  { %vm2327_vm4 = vcmp.lt.s32.totalorder %v3073_v59, 79  ;;  %v2354_v42 = vsel %vm2343_vm7, 1, %v2868_v9 }
 0x38e   :  { %v2138_v38 = vpop.permute.xlu0 %2137  ;;  %vm4344_vm12 = vcmp.eq.s32.totalorder %v2167_v52, 1 }
 0x38f   :  { %v2140_v35 = vsel %vm2139_vm2, %v2136_v58, %v2138_v38  ;;  %v2141_v39 = vsel %vm2139_vm2, %v2138_v38, %v2136_v58 }
 0x390   :  { %v2427_v44 = vld [vmem:[#allocation1] sm:$0xff]  ;;  %v2428_v15 = vld [vmem:[#allocation1 + $0x9] sm:$0xff]  ;;  %v2158_v49 = vmul.f32 %v2157_v0, %v2140_v35  ;;  %v2159_v43 = vmul.f32 %v2157_v0, %v2141_v39 }
 0x391   :  { %2431 = vrot.lane.b32.xlu1 %v2427_v44, %s2900_s25  ;;  %2433 = vrot.lane.b32.xlu2 %v2428_v15, %s2900_s25  ;;  %v2197_v31 = vpop.permute.xlu2 %2196  ;;  %v2255_v15 = vstv %s4321_s30 }
 0x397   :  { %v2150_v27 = vpop.permute.xlu1 %2149 }
 0x398   :  { %v2153_v63 = vsel %vm2139_vm2, %v2150_v27, %v2152_v48  ;;  %v2154_v21 = vsel %vm2139_vm2, %v2152_v48, %v2150_v27 }
 0x399   :  { %v2162_v6 = vmul.f32 %v2161_v45, %v2153_v63  ;;  %v2163_v16 = vmul.f32 %v2161_v45, %v2154_v21  ;;  %v4405_v63 = vsel %vm2296_vm11, 1, %v2868_v9 }
 0x39a   :  { %v4285_v20 = vpop.permute.xlu2 %2231 }
 0x39b   :  { %v2164_v56 = vadd.f32 %v2162_v6, %v2158_v49  ;;  %v2165_v25 = vadd.f32 %v2163_v16, %v2159_v43 }
 0x39d   :  { %v2171_v38 = vsel %vm4344_vm12, %v2164_v56, 0.0  ;;  %v2172_v27 = vsel %vm4349_vm9, %v2165_v25, 0.0  ;;  %v2345_v56 = vstv %s4384_s1  ;;  %v2349_v25 = vstv %s4386_s3  ;;  %vm2437_vm12 = vmand %vm4294_vm1, %vm3386_vm8 }
 0x39e   :  { %v2173_v21 = vadd.f32 %v2171_v38, %v4279_v1  ;;  %v2174_v52 = vadd.f32 %v2172_v27, %v4281_v40  ;;  %v2302_v40 = vstv %s4366_s0  ;;  %vm2421_vm8 = vcmp.lt.s32.totalorder %v3073_v59, 77 }
 0x39f   :  { %v2448_v43 = vsel %vm2437_vm12, 1, %v2868_v9 }
 0x3a0   :  { %v2185_v3 = vpop.permute.xlu1 %2184  ;;  %v2183_v12 = vpop.permute.xlu0 %2182 }
 0x3a1   :  { %v2187_v14 = vsel %vm2186_vm6, %v2183_v12, %v2185_v3  ;;  %v2188_v54 = vsel %vm2186_vm6, %v2185_v3, %v2183_v12  ;;  %v2261_v3 = vperm.slane %v2260_v62, 0  ;;  %v2262_v12 = vperm.slane %v2260_v62, 1 }
 0x3a2   :  { %v2205_v23 = vmul.f32 %v2204_v18, %v2187_v14  ;;  %v2206_v57 = vmul.f32 %v2204_v18, %v2188_v54  ;;  %v2308_v18 = vperm.slane %v4405_v63, 0 }
 0x3a3   :  { %vm4411_vm2 = vcmp.eq.s32.totalorder %v2261_v3, 1 }
 0x3a9   :  { %v2199_v32 = vpop.permute.xlu0 %2198 }
 0x3aa   :  { %v2200_v46 = vsel %vm2186_vm6, %v2197_v31, %v2199_v32  ;;  %v2201_v55 = vsel %vm2186_vm6, %v2199_v32, %v2197_v31  ;;  %vm4415_vm6 = vcmp.eq.s32.totalorder %v2262_v12, 1  ;;  %v2356_v12 = vperm.slane %v2354_v42, 1 }
 0x3ab   :  { %v2209_v51 = vmul.f32 %v2208_v50, %v2200_v46  ;;  %v2210_v17 = vmul.f32 %v2208_v50, %v2201_v55  ;;  %v2309_v50 = vperm.slane %v4405_v63, 1 }
 0x3ac   :  { %v4292_v37 = vpop.permute.xlu2 %2276  ;;  %vm4510_vm11 = vcmp.eq.s32.totalorder %v2356_v12, 1 }
 0x3ad   :  { %v2211_v11 = vadd.f32 %v2209_v51, %v2205_v23  ;;  %v2212_v0 = vadd.f32 %v2210_v17, %v2206_v57  ;;  %v2355_v23 = vperm.slane %v2354_v42, 0  ;;  %v2392_v57 = vstv %s4396_s8 }
 0x3ae   :  { %v2396_v51 = vstv %s4407_s9  ;;  %vm4502_vm9 = vcmp.eq.s32.totalorder %v2309_v50, 1 }
 0x3af   :  { %v2218_v29 = vsel %vm4388_vm15, %v2211_v11, 0.0  ;;  %v2219_v6 = vsel %vm4392_vm13, %v2212_v0, 0.0  ;;  %vm4506_vm14 = vcmp.eq.s32.totalorder %v2355_v23, 1 }
 0x3b0   :  { %v2220_v46 = vadd.f32 %v2218_v29, %v2173_v21  ;;  %v2221_v55 = vadd.f32 %v2219_v6, %v2174_v52 }
 0x3b2   :  { %v4283_v28 = vpop.permute.xlu1 %2229 }
 0x3b3   :  { %v2234_v44 = vsel %vm2233_vm0, %v4283_v28, %v4285_v20  ;;  %v2235_v48 = vsel %vm2233_vm0, %v4285_v20, %v4283_v28 }
 0x3b4   :  { %v2252_v45 = vmul.f32 %v2251_v10, %v2234_v44 }
 0x3b5   :  { %v4311_v60 = vpop.permute.xlu2 %2292 }
 0x3bb   :  { %v4287_v34 = vpop.permute.xlu0 %2243  ;;  %v4290_v33 = vpop.permute.xlu1 %2245 }
 0x3bc   :  { %v2247_v58 = vsel %vm2233_vm0, %v4287_v34, %v4290_v33  ;;  %v2248_v31 = vsel %vm2233_vm0, %v4290_v33, %v4287_v34  ;;  %v2253_v33 = vmul.f32 %v2251_v10, %v2235_v48  ;;  %vm4498_vm0 = vcmp.eq.s32.totalorder %v2308_v18, 1 }
 0x3bd   :  { %v2256_v5 = vmul.f32 %v2255_v15, %v2247_v58  ;;  %v2257_v39 = vmul.f32 %v2255_v15, %v2248_v31  ;;  %v2439_v18 = vstv %s4476_s10 }
 0x3bf   :  { %v2258_v16 = vadd.f32 %v2256_v5, %v2252_v45  ;;  %v2259_v47 = vadd.f32 %v2257_v39, %v2253_v33 }
 0x3c4   :  { %v4298_v41 = vpop.permute.xlu0 %2278 }
 0x3c5   :  { %v2281_v1 = vsel %vm2280_vm3, %v4292_v37, %v4298_v41  ;;  %v2282_v26 = vsel %vm2280_vm3, %v4298_v41, %v4292_v37  ;;  %v2265_v37 = vsel %vm4411_vm2, %v2258_v16, 0.0 }
 0x3c6   :  { %v2299_v41 = vmul.f32 %v2298_v61, %v2281_v1  ;;  %v2300_v24 = vmul.f32 %v2298_v61, %v2282_v26  ;;  %v2267_v39 = vadd.f32 %v2265_v37, %v2220_v46 }
 0x3c7   :  { %v4334_v8 = vpop.permute.xlu2 %2337 }
 0x3cd   :  { %v4300_v4 = vpop.permute.xlu1 %2290 }
 0x3ce   :  { %v2294_v14 = vsel %vm2280_vm3, %v4300_v4, %v4311_v60  ;;  %v2295_v54 = vsel %vm2280_vm3, %v4311_v60, %v4300_v4  ;;  %v2266_v60 = vsel %vm4415_vm6, %v2259_v47, 0.0  ;;  %v2443_v47 = vstv %s4486_s11 }
 0x3cf   :  { %v2303_v22 = vmul.f32 %v2302_v40, %v2294_v14  ;;  %v2304_v62 = vmul.f32 %v2302_v40, %v2295_v54  ;;  %v2268_v63 = vadd.f32 %v2266_v60, %v2221_v55  ;;  %v2449_v14 = vperm.slane %v2448_v43, 0  ;;  %v2515_v40 = vld [vmem:[#allocation9 + $0x9] ss:$4 sm:$0x3] }
 0x3d0   :  { %v2373_v20 = vpop.permute.xlu2 %2372  ;;  %v2450_v54 = vperm.slane %v2448_v43, 1 }
 0x3d1   :  { %v2306_v3 = vadd.f32 %v2304_v62, %v2300_v24  ;;  %vm2451_vm13 = vcmp.eq.s32.totalorder %v2449_v14, 1  ;;  %v2523_v14 = vld [vmem:[#allocation9 + $0xa] ss:$4 sm:$0x3] }
 0x3d2   :  { %vm2452_vm3 = vcmp.eq.s32.totalorder %v2450_v54, 1  ;;  %v2530_v54 = vld [vmem:[#allocation9 + $0x3] ss:$4 sm:$0x3] }
 0x3d3   :  { %v2313_v6 = vsel %vm4502_vm9, %v2306_v3, 0.0  ;;  %vm2500_vm9 = vcmask 1041409  }
 0x3d4   :  { %v2315_v55 = vadd.f32 %v2313_v6, %v2268_v63 }
 0x3d6   :  { %v4323_v36 = vpop.permute.xlu1 %2325  ;;  %v4325_v13 = vpop.permute.xlu0 %2323 }
 0x3d7   :  { %v2328_v10 = vsel %vm2327_vm4, %v4325_v13, %v4323_v36  ;;  %v2329_v44 = vsel %vm2327_vm4, %v4323_v36, %v4325_v13  ;;  %v2305_v13 = vadd.f32 %v2303_v22, %v2299_v41 }
 0x3d8   :  { %v2346_v31 = vmul.f32 %v2345_v56, %v2328_v10 }
 0x3d9   :  { %v2312_v29 = vsel %vm4498_vm0, %v2305_v13, 0.0  ;;  %vm2498_vm0 = vcmask 1040384  }
 0x3da   :  { %v2314_v46 = vadd.f32 %v2312_v29, %v2267_v39  ;;  %v2514_v29 = vld [vmem:[#allocation9 + $0x1] ss:$4 sm:$0x3] }
 0x3df   :  { %v2340_v28 = vpop.permute.xlu0 %2339 }
 0x3e0   :  { %v2341_v15 = vsel %vm2327_vm4, %v4334_v8, %v2340_v28  ;;  %v2342_v58 = vsel %vm2327_vm4, %v2340_v28, %v4334_v8  ;;  %v2401_v8 = vsel %vm2390_vm10, 1, %v2868_v9 }
 0x3e1   :  { %v2350_v11 = vmul.f32 %v2349_v25, %v2341_v15  ;;  %v2351_v0 = vmul.f32 %v2349_v25, %v2342_v58  ;;  %v2402_v34 = vperm.slane %v2401_v8, 0  ;;  %v2403_v33 = vperm.slane %v2401_v8, 1 }
 0x3e2   :  { %v2418_v17 = vpop.permute.xlu2 %2417 }
 0x3e3   :  { %v2352_v7 = vadd.f32 %v2350_v11, %v2346_v31  ;;  %vm4520_vm1 = vcmp.eq.s32.totalorder %v2402_v34, 1  ;;  %vm4524_vm15 = vcmp.eq.s32.totalorder %v2403_v33, 1 }
 0x3e5   :  { %v2359_v42 = vsel %vm4506_vm14, %v2352_v7, 0.0 }
 0x3e6   :  { %v2361_v23 = vadd.f32 %v2359_v42, %v2314_v46  ;;  %v2728_v46 = vld [vmem:[#allocation9 + $0x8] ss:$4 sm:$0x3] }
 0x3e8   :  { %v2371_v32 = vpop.permute.xlu1 %2370 }
 0x3e9   :  { %v2375_v38 = vsel %vm2374_vm5, %v2371_v32, %v2373_v20  ;;  %v2376_v27 = vsel %vm2374_vm5, %v2373_v20, %v2371_v32  ;;  %v2347_v32 = vmul.f32 %v2345_v56, %v2329_v44 }
 0x3ea   :  { %v2393_v45 = vmul.f32 %v2392_v57, %v2375_v38  ;;  %v2394_v5 = vmul.f32 %v2392_v57, %v2376_v27 }
 0x3eb   :  { %v2353_v52 = vadd.f32 %v2351_v0, %v2347_v32  ;;  %v2434_v50 = vpop.permute.xlu2 %2433 }
 0x3ed   :  { %v2360_v37 = vsel %vm4510_vm11, %v2353_v52, 0.0  ;;  %vm4553_vm11 = vcmp.lt.s32.totalorder %v179_v53, 256 }
 0x3ee   :  { %v2362_v57 = vadd.f32 %v2360_v37, %v2315_v55  ;;  %v2531_v37 = vld [vmem:[#allocation9 + $0xb] ss:$4 sm:$0x3] }
 0x3f1   :  { %v2385_v19 = vpop.permute.xlu0 %2384  ;;  %v2387_v4 = vpop.permute.xlu1 %2386 }
 0x3f2   :  { %v2388_v48 = vsel %vm2374_vm5, %v2385_v19, %v2387_v4  ;;  %v2389_v36 = vsel %vm2374_vm5, %v2387_v4, %v2385_v19 }
 0x3f3   :  { %v2397_v28 = vmul.f32 %v2396_v51, %v2388_v48  ;;  %v2398_v20 = vmul.f32 %v2396_v51, %v2389_v36 }
 0x3f5   :  { %v2399_v16 = vadd.f32 %v2397_v28, %v2393_v45  ;;  %v2400_v61 = vadd.f32 %v2398_v20, %v2394_v5 }
 0x3f7   :  { %v2406_v56 = vsel %vm4520_vm1, %v2399_v16, 0.0  ;;  %v2407_v25 = vsel %vm4524_vm15, %v2400_v61, 0.0 }
 0x3f8   :  { %v2408_v10 = vadd.f32 %v2406_v56, %v2361_v23  ;;  %v2409_v44 = vadd.f32 %v2407_v25, %v2362_v57 }
 0x3fa   :  { %v2420_v49 = vpop.permute.xlu0 %2419 }
 0x3fb   :  { %v2422_v9 = vsel %vm2421_vm8, %v2418_v17, %v2420_v49  ;;  %v2423_v26 = vsel %vm2421_vm8, %v2420_v49, %v2418_v17 }
 0x3fc   :  { %v2440_v22 = vmul.f32 %v2439_v18, %v2422_v9  ;;  %v2441_v62 = vmul.f32 %v2439_v18, %v2423_v26  ;;  %v2522_v18 = vld [vmem:[#allocation9 + $0x2] ss:$4 sm:$0x3] }
 0x403   :  { %v2432_v41 = vpop.permute.xlu1 %2431 }
 0x404   :  { %v2435_v19 = vsel %vm2421_vm8, %v2432_v41, %v2434_v50  ;;  %v2436_v24 = vsel %vm2421_vm8, %v2434_v50, %v2432_v41 }
 0x405   :  { %v2444_v4 = vmul.f32 %v2443_v47, %v2435_v19  ;;  %v2445_v60 = vmul.f32 %v2443_v47, %v2436_v24  ;;  %v2727_v47 = vld [vmem:[#allocation9] ss:$4 sm:$0x3] }
 0x407   :  { %v2446_v51 = vadd.f32 %v2444_v4, %v2440_v22  ;;  %v2447_v17 = vadd.f32 %v2445_v60, %v2441_v62 }
 0x409   :  { %v2453_v15 = vsel %vm2451_vm13, %v2446_v51, 0.0  ;;  %v2454_v58 = vsel %vm2452_vm3, %v2447_v17, 0.0 }
 0x40a   :  { %v2455_v38 = vadd.f32 %v2453_v15, %v2408_v10  ;;  %v2456_v27 = vadd.f32 %v2454_v58, %v2409_v44 }
 0x40c   :  { %v2656_v48 = vmul.f32 -1.442695, %v2455_v38  ;;  %v2657_v36 = vmul.f32 -1.442695, %v2456_v27 }
 0x40e   :  { %2717 = vpow2.f32 %v2656_v48 }
 0x40f   :  { %2719 = vpow2.f32 %v2657_v36 }
 0x414   :  { %v2718_v59 = vpop.eup %2717 }
 0x415   :  { %v2720_v13 = vpop.eup %2719  ;;  %v2463_v3 = vadd.f32 1.0, %v2718_v59 }
 0x416   :  { %v2464_v12 = vadd.f32 1.0, %v2720_v13 }
 0x417   :  { %2721 = vrcp.f32 %v2463_v3  ;;  %vm2470_vm7 = vweird.f32 %v2463_v3  ;;  %v2476_v34 = vand.u32 2147483648, %v2463_v3  ;;  %v2474_v39 = vand.u32 2147483647, %v2463_v3 }
 0x418   :  { %2723 = vrcp.f32 %v2464_v12  ;;  %v2491_v28 = vand.u32 2147483648, %v2464_v12  ;;  %v2489_v35 = vand.u32 2147483647, %v2464_v12  ;;  %vm2485_vm5 = vweird.f32 %v2464_v12 }
 0x419   :  { %v2477_v52 = vor.u32 1.1754944e-38, %v2476_v34  ;;  %vm2475_vm14 = vcmp.eq.f32.partialorder %v2474_v39, 8.507059e+37 }
 0x41a   :  { %v2492_v21 = vor.u32 1.1754944e-38, %v2491_v28  ;;  %vm2490_vm12 = vcmp.eq.f32.partialorder %v2489_v35, 8.507059e+37 }
 0x41d   :  { %v2722_v8 = vpop.eup %2721 }
 0x41e   :  { %v2724_v31 = vpop.eup %2723  ;;  %v2466_v32 = vmul.f32 %v2722_v8, %v2463_v3  ;;  %vm2471_vm2 = vweird.f32 %v2722_v8 }
 0x41f   :  { %v2481_v11 = vmul.f32 %v2724_v31, %v2464_v12  ;;  %vm2486_vm6 = vweird.f32 %v2724_v31  ;;  %vm4546_vm4 = vmor %vm2470_vm7, %vm2471_vm2 }
 0x420   :  { %v2467_v0 = vsub.f32 1.0, %v2466_v32  ;;  %vm2487_vm10 = vmor %vm2485_vm5, %vm2486_vm6 }
 0x421   :  { %v2482_v45 = vsub.f32 1.0, %v2481_v11 }
 0x422   :  { %v2468_v5 = vmul.f32 %v2722_v8, %v2467_v0 }
 0x423   :  { %v2483_v20 = vmul.f32 %v2724_v31, %v2482_v45 }
 0x424   :  { %v2469_v2 = vadd.f32 %v2722_v8, %v2468_v5 }
 0x425   :  { %v2484_v63 = vadd.f32 %v2724_v31, %v2483_v20 }
 0x426   :  { %v2473_v30 = vsel %vm4546_vm4, %v2722_v8, %v2469_v2 }
 0x427   :  { %v2488_v7 = vsel %vm2487_vm10, %v2724_v31, %v2484_v63  ;;  %v2478_v6 = vsel %vm2475_vm14, %v2477_v52, %v2473_v30 }
 0x428   :  { %v2493_v49 = vsel %vm2490_vm12, %v2492_v21, %v2488_v7 }
 0x429   :  { %v2497_v43 = vrot.slane %v2493_v49, 7 }
 0x42b   :  { %v2499_v61 = vsel %vm2498_vm0, %v2478_v6, %v2497_v43  ;;  %v2501_v1 = vsel %vm2500_vm9, %v2478_v6, %v2497_v43 }
 0x42c   :  { %v2502_v50 = vrot.slane %v2501_v1, 1  ;;  %v2505_v9 = vmul.f32 %v2727_v47, %v2499_v61  ;;  %v2516_v26 = vmul.f32 %v2514_v29, %v2499_v61  ;;  %v2524_v53 = vmul.f32 %v2522_v18, %v2499_v61 }
 0x42d   :  { %v2532_v56 = vmul.f32 %v2530_v54, %v2499_v61 }
 0x42e   :  { %v2506_v55 = vmul.f32 %v2728_v46, %v2502_v50  ;;  %2511 = vst.msk [vmem:[#allocation10] ss:$4 sm:$0x3] %vm4553_vm11, %v2505_v9  ;;  %v2517_v42 = vmul.f32 %v2515_v40, %v2502_v50  ;;  %v2525_v41 = vmul.f32 %v2523_v14, %v2502_v50  ;;  %v2533_v25 = vmul.f32 %v2531_v37, %v2502_v50 }
 0x42f   :  { %2519 = vst.msk [vmem:[#allocation10 + $0x1] ss:$4 sm:$0x3] %vm4553_vm11, %v2516_v26 }
 0x430   :  { %2513 = vst.msk [vmem:[#allocation10 + $0x8] ss:$4 sm:$0x3] %vm4553_vm11, %v2506_v55 }
 0x431   :  { %2521 = vst.msk [vmem:[#allocation10 + $0x9] ss:$4 sm:$0x3] %vm4553_vm11, %v2517_v42 }
 0x432   :  { %2527 = vst.msk [vmem:[#allocation10 + $0x2] ss:$4 sm:$0x3] %vm4553_vm11, %v2524_v53 }
 0x433   :  { %2529 = vst.msk [vmem:[#allocation10 + $0xa] ss:$4 sm:$0x3] %vm4553_vm11, %v2525_v41 }
 0x434   :  { %2535 = vst.msk [vmem:[#allocation10 + $0x3] ss:$4 sm:$0x3] %vm4553_vm11, %v2532_v56 }
 0x435   :  { %2537 = vst.msk [vmem:[#allocation10 + $0xb] ss:$4 sm:$0x3] %vm4553_vm11, %v2533_v25 }
 0x436   :  { %2550 = dma.vmem_to_hbm [thread:$0]  %s2543_s13, 256, %s2545_s16, [#allocation4], %s2849_s6, %s2849_s6, %s2850_s7  }
 0x437   :  { %2843 = dma.done.wait [#allocation4], 256  }
 0x438   :  { %2844 = vsyncadd [#allocation4], 4294967040 }
 0x439   :  { %2555 = vsyncpa [#allocation3], 1 }
 0x43a   :  { %2556 = vsyncpa [#allocation8], 1 }
 0x43b   :  { %2557 = vsyncpa [#allocation4], 1 }
 0x43c   :  { %2558 = vsyncpa [#allocation5], 1 }

</bundles_post_ra>
